<compile_context>
chip_gen: v7x
topology: tpu7x:2x2x1
jax: 0.10.0
libtpu: 0.0.40
codegen_flags: <defaults>
</compile_context>

<pallas_src>
import jax
import jax.numpy as jnp
from jax.experimental import pallas as pl
from jax.experimental.pallas import tpu as pltpu


# ----------------------------------------------------------------------------
# Kernel 1: fused 3x3 "same" conv + bias + ReLU + 2x2/2 max-pool (lane-dense M)
# ----------------------------------------------------------------------------
def conv_pool_kernel(p_ref, w_ref, b_ref, o_ref):
    # p_ref : (1, 16, Cin, TM) bf16  phase planes, plane index = a*4 + b where
    #                                P[a,b][ci, m] = xpad[ci, 2ho+a, 2wo+b]
    # w_ref : (9, Cout, Cin)    bf16 conv weight, tap index = dy*3 + dx
    # b_ref : (Cout, 1)         f32  bias
    # o_ref : (1, Cout, TM)     bf16 pooled activations, (ho, wo) raster on lanes
    pooled = None
    for ph in range(2):                       # pooling phase over H
        for pw in range(2):                   # pooling phase over W
            acc = None
            for dy in range(3):
                for dx in range(3):
                    t = jnp.dot(w_ref[dy * 3 + dx],
                                p_ref[0, (ph + dy) * 4 + (pw + dx)],
                                preferred_element_type=jnp.float32)
                    acc = t if acc is None else acc + t
            pooled = acc if pooled is None else jnp.maximum(pooled, acc)
    # bias + ReLU after the phase-max (ReLU/bias commute with the max).
    o_ref[0] = jnp.maximum(pooled + b_ref[...], 0.0).astype(o_ref.dtype)


def _pick_tm(m, cap=2048):
    """Largest multiple-of-128 divisor of m that is <= cap (m itself if small
    or if no such divisor exists; a full-extent block is always legal)."""
    if m <= cap:
        return m
    best = 0
    t = 128
    while t <= cap:
        if m % t == 0:
            best = t
        t += 128
    return best if best else m


def conv3x3_relu_pool(x_nchw, w_oihw, b):
    """3x3 'same' conv + ReLU + 2x2/2 max-pool: (N,Cin,H,W) -> (N,Cout,H/2,W/2)."""
    n, cin, h, w = x_nchw.shape
    cout = w_oihw.shape[0]
    ho, wo = h // 2, w // 2
    m = ho * wo

    # ---- wrapper glue (XLA): zero-pad + 16 phase planes (~4x input bytes) ----
    xp = jnp.pad(x_nchw, ((0, 0), (0, 0), (1, 1), (1, 1)))
    planes_a = []
    for a in range(4):
        planes_b = []
        for bb in range(4):
            planes_b.append(xp[:, :, a:a + 2 * ho:2, bb:bb + 2 * wo:2])  # (N,Cin,Ho,Wo)
        planes_a.append(jnp.stack(planes_b, axis=1))                      # (N,4,Cin,Ho,Wo)
    planes = jnp.stack(planes_a, axis=1)                                  # (N,4,4,Cin,Ho,Wo)
    planes = planes.reshape(n, 16, cin, m).astype(jnp.bfloat16)           # (N,16,Cin,M)

    w_taps = jnp.transpose(w_oihw, (2, 3, 0, 1)).reshape(9, cout, cin)    # (9,Cout,Cin)
    w_taps = w_taps.astype(jnp.bfloat16)
    b_col = b.reshape(cout, 1).astype(jnp.float32)

    tm = _pick_tm(m)
    out = pl.pallas_call(
        conv_pool_kernel,
        out_shape=jax.ShapeDtypeStruct((n, cout, m), jnp.bfloat16),
        grid=(n, m // tm),
        in_specs=[
            pl.BlockSpec((1, 16, cin, tm), lambda i, s: (i, 0, 0, s)),
            pl.BlockSpec((9, cout, cin), lambda i, s: (0, 0, 0)),
            pl.BlockSpec((cout, 1), lambda i, s: (0, 0)),
        ],
        out_specs=pl.BlockSpec((1, cout, tm), lambda i, s: (i, 0, s)),
        compiler_params=pltpu.CompilerParams(
            dimension_semantics=("parallel", "parallel")),
    )(planes, w_taps, b_col)
    return out.reshape(n, cout, ho, wo)                                   # NCHW


# ----------------------------------------------------------------------------
# Kernel 2: classifier — K-tiled fc1 (+bias+ReLU) with fc2 fused in finalize
# ----------------------------------------------------------------------------
def mlp_kernel(x_ref, w1_ref, b1_ref, w2_ref, b2_ref, o_ref, acc_ref):
    kk = pl.program_id(0)

    @pl.when(kk == 0)
    def _():
        acc_ref[...] = jnp.zeros_like(acc_ref)

    acc_ref[...] += jnp.dot(x_ref[...], w1_ref[...],
                            preferred_element_type=jnp.float32)

    @pl.when(kk == pl.num_programs(0) - 1)
    def _():
        h = jnp.maximum(acc_ref[...] + b1_ref[...], 0.0)          # f32 epilogue
        o_ref[...] = (jnp.dot(h.astype(jnp.bfloat16), w2_ref[...],
                              preferred_element_type=jnp.float32)
                      + b2_ref[...]).astype(o_ref.dtype)


def _pick_tk(f, h1, cap_bytes=2 << 20):
    """Largest divisor of F whose bf16 (tk, h1) weight tile fits cap_bytes.
    tk is a multiple of 128 (lane/BlockSpec aligned) unless F itself is small."""
    cap_k = max(128, cap_bytes // (h1 * 2))
    if f <= cap_k:
        return f
    best = 0
    t = 128
    while t <= cap_k:
        if f % t == 0:
            best = t
        t += 128
    if best == 0:
        raise ValueError(f"no lane-aligned fc1 K tile <= {cap_k} divides F={f}")
    return best


def mlp(x_flat, w1, b1, w2, b2):
    n, f = x_flat.shape
    h1, co = w1.shape[1], w2.shape[1]
    tk = _pick_tk(f, h1)
    nk = f // tk
    # NOTE: an optional v7x-only dual-TensorCore split of the fc1 weight stream
    # (two partial accumulators + tiny combine) is intentionally not implemented.
    return pl.pallas_call(
        mlp_kernel,
        out_shape=jax.ShapeDtypeStruct((n, co), jnp.float32),
        grid=(nk,),
        in_specs=[
            pl.BlockSpec((n, tk), lambda kk: (0, kk)),
            pl.BlockSpec((tk, h1), lambda kk: (kk, 0)),
            pl.BlockSpec((1, h1), lambda kk: (0, 0)),
            pl.BlockSpec((h1, co), lambda kk: (0, 0)),
            pl.BlockSpec((1, co), lambda kk: (0, 0)),
        ],
        out_specs=pl.BlockSpec((n, co), lambda kk: (0, 0)),
        scratch_shapes=[pltpu.VMEM((n, h1), jnp.float32)],
        compiler_params=pltpu.CompilerParams(
            dimension_semantics=("arbitrary",)),
    )(x_flat.astype(jnp.bfloat16), w1.astype(jnp.bfloat16),
      b1.reshape(1, h1).astype(jnp.float32),
      w2.astype(jnp.bfloat16), b2.reshape(1, co).astype(jnp.float32))


# ----------------------------------------------------------------------------
# Full forward pass (wrapper glue + Pallas kernels)
# ----------------------------------------------------------------------------
def brain_tumor_forward(x_nchw, params):
    y = conv3x3_relu_pool(x_nchw, params["wc1"], params["bc1"])   # (N,16,H/2,W/2)
    y = conv3x3_relu_pool(y, params["wc2"], params["bc2"])        # (N,32,H/4,W/4)
    feat = y.reshape(y.shape[0], -1)     # NCHW flatten == PyTorch x.view(N, -1)
    return mlp(feat, params["wf1"], params["bf1"],
               params["wf2"], params["bf2"])


# ----------------------------------------------------------------------------
# Pure-JAX f32 reference (numerical sanity check)
# ----------------------------------------------------------------------------
def reference_forward(x_nchw, params):
    def conv(x, w, b):
        y = jax.lax.conv_general_dilated(
            x, w, window_strides=(1, 1), padding=((1, 1), (1, 1)),
            dimension_numbers=("NCHW", "OIHW", "NCHW"),
            precision=jax.lax.Precision.HIGHEST)
        return jax.nn.relu(y + b.reshape(1, -1, 1, 1))

    def pool(x):
        return jax.lax.reduce_window(x, -jnp.inf, jax.lax.max,
                                     (1, 1, 2, 2), (1, 1, 2, 2), "VALID")

    y = pool(conv(x_nchw, params["wc1"], params["bc1"]))
    y = pool(conv(y, params["wc2"], params["bc2"]))
    y = y.reshape(y.shape[0], -1)
    h = jax.nn.relu(jnp.dot(y, params["wf1"],
                            precision=jax.lax.Precision.HIGHEST) + params["bf1"])
    return jnp.dot(h, params["wf2"],
                   precision=jax.lax.Precision.HIGHEST) + params["bf2"]


def make_params(key, spatial, num_classes=4):
    ks = jax.random.split(key, 8)
    f = 32 * (spatial // 4) * (spatial // 4)   # classifier in_features
    return {
        "wc1": jax.random.normal(ks[0], (16, 3, 3, 3), jnp.float32) * 0.1,   # OIHW
        "bc1": jax.random.normal(ks[1], (16,), jnp.float32) * 0.1,
        "wc2": jax.random.normal(ks[2], (32, 16, 3, 3), jnp.float32) * 0.1,  # OIHW
        "bc2": jax.random.normal(ks[3], (32,), jnp.float32) * 0.1,
        "wf1": jax.random.normal(ks[4], (f, 128), jnp.float32) * 0.02,       # = W1.T
        "bf1": jax.random.normal(ks[5], (128,), jnp.float32) * 0.02,
        "wf2": jax.random.normal(ks[6], (128, num_classes), jnp.float32) * 0.05,
        "bf2": jax.random.normal(ks[7], (num_classes,), jnp.float32) * 0.05,
    }


if __name__ == "__main__":
    SPATIAL = 32          # original module assumes 224 (-> 32*56*56 features)
    key = jax.random.PRNGKey(0)
    kx, kp = jax.random.split(key)
    x = jax.random.normal(kx, (2, 3, SPATIAL, SPATIAL), jnp.float32)  # NCHW
    params = make_params(kp, SPATIAL)

    out = jax.block_until_ready(jax.jit(brain_tumor_forward)(x, params))
    ref = jax.block_until_ready(reference_forward(x, params))

    assert out.shape == (2, 4), out.shape
    # bf16 MXU operands / bf16 conv activations (f32 accumulation) -> relaxed tol.
    assert jnp.allclose(out, ref, atol=5e-2, rtol=5e-2), (
        f"max abs diff {jnp.max(jnp.abs(out - ref))}")

    print("KERNEL_OK")
</pallas_src>

<mosaic_0001>
module attributes {stable_mosaic.version = 11 : i64} {
  func.func @conv_pool_kernel(%arg0: i32, %arg1: i32, %arg2: memref<1x16x3x256xbf16, #tpu.memory_space<vmem>>, %arg3: memref<9x16x3xbf16, #tpu.memory_space<vmem>>, %arg4: memref<16x1xf32, #tpu.memory_space<vmem>>, %arg5: memref<1x16x256xbf16, #tpu.memory_space<vmem>>) attributes {dimension_semantics = [#tpu.dimension_semantics<parallel>, #tpu.dimension_semantics<parallel>], iteration_bounds = array<i64: 2, 1>, scalar_prefetch = 0 : i64, scratch_operands = 0 : i64, tpu.core_type = #tpu.core_type<tc>, window_params = [{transform_indices = @transform_0, window_bounds = array<i64: 1, 16, 3, 256>}, {pipeline_mode = #tpu.pipeline_mode<synchronous>, transform_indices = @transform_1, window_bounds = array<i64: 9, 16, 3>}, {pipeline_mode = #tpu.pipeline_mode<synchronous>, transform_indices = @transform_2, window_bounds = array<i64: 16, 1>}, {transform_indices = @transform_3, window_bounds = array<i64: 1, 16, 256>}]} {
    %c0 = arith.constant 0 : index
    %c0_0 = arith.constant 0 : index
    %c0_1 = arith.constant 0 : index
    %0 = vector.load %arg3[%c0, %c0_0, %c0_1] : memref<9x16x3xbf16, #tpu.memory_space<vmem>>, vector<1x16x3xbf16>
    %1 = vector.shape_cast %0 : vector<1x16x3xbf16> to vector<16x3xbf16>
    %c0_2 = arith.constant 0 : index
    %c0_3 = arith.constant 0 : index
    %c0_4 = arith.constant 0 : index
    %c0_5 = arith.constant 0 : index
    %2 = vector.load %arg2[%c0_2, %c0_3, %c0_4, %c0_5] : memref<1x16x3x256xbf16, #tpu.memory_space<vmem>>, vector<1x1x3x256xbf16>
    %3 = vector.shape_cast %2 : vector<1x1x3x256xbf16> to vector<3x256xbf16>
    %cst = arith.constant dense<0.000000e+00> : vector<16x256xf32>
    %4 = tpu.matmul %1, %3, %cst {dimension_numbers = #tpu.dot_dimension_numbers<[1], [0], [0], [1], [0, 0, 1, 1], [], []>} : vector<16x3xbf16>, vector<3x256xbf16>, vector<16x256xf32> -> vector<16x256xf32>
    %c1 = arith.constant 1 : index
    %c0_6 = arith.constant 0 : index
    %c0_7 = arith.constant 0 : index
    %5 = vector.load %arg3[%c1, %c0_6, %c0_7] : memref<9x16x3xbf16, #tpu.memory_space<vmem>>, vector<1x16x3xbf16>
    %6 = vector.shape_cast %5 : vector<1x16x3xbf16> to vector<16x3xbf16>
    %c0_8 = arith.constant 0 : index
    %c1_9 = arith.constant 1 : index
    %c0_10 = arith.constant 0 : index
    %c0_11 = arith.constant 0 : index
    %7 = vector.load %arg2[%c0_8, %c1_9, %c0_10, %c0_11] : memref<1x16x3x256xbf16, #tpu.memory_space<vmem>>, vector<1x1x3x256xbf16>
    %8 = vector.shape_cast %7 : vector<1x1x3x256xbf16> to vector<3x256xbf16>
    %cst_12 = arith.constant dense<0.000000e+00> : vector<16x256xf32>
    %9 = tpu.matmul %6, %8, %cst_12 {dimension_numbers = #tpu.dot_dimension_numbers<[1], [0], [0], [1], [0, 0, 1, 1], [], []>} : vector<16x3xbf16>, vector<3x256xbf16>, vector<16x256xf32> -> vector<16x256xf32>
    %10 = arith.addf %4, %9 : vector<16x256xf32>
    %c2 = arith.constant 2 : index
    %c0_13 = arith.constant 0 : index
    %c0_14 = arith.constant 0 : index
    %11 = vector.load %arg3[%c2, %c0_13, %c0_14] : memref<9x16x3xbf16, #tpu.memory_space<vmem>>, vector<1x16x3xbf16>
    %12 = vector.shape_cast %11 : vector<1x16x3xbf16> to vector<16x3xbf16>
    %c0_15 = arith.constant 0 : index
    %c2_16 = arith.constant 2 : index
    %c0_17 = arith.constant 0 : index
    %c0_18 = arith.constant 0 : index
    %13 = vector.load %arg2[%c0_15, %c2_16, %c0_17, %c0_18] : memref<1x16x3x256xbf16, #tpu.memory_space<vmem>>, vector<1x1x3x256xbf16>
    %14 = vector.shape_cast %13 : vector<1x1x3x256xbf16> to vector<3x256xbf16>
    %cst_19 = arith.constant dense<0.000000e+00> : vector<16x256xf32>
    %15 = tpu.matmul %12, %14, %cst_19 {dimension_numbers = #tpu.dot_dimension_numbers<[1], [0], [0], [1], [0, 0, 1, 1], [], []>} : vector<16x3xbf16>, vector<3x256xbf16>, vector<16x256xf32> -> vector<16x256xf32>
    %16 = arith.addf %10, %15 : vector<16x256xf32>
    %c3 = arith.constant 3 : index
    %c0_20 = arith.constant 0 : index
    %c0_21 = arith.constant 0 : index
    %17 = vector.load %arg3[%c3, %c0_20, %c0_21] : memref<9x16x3xbf16, #tpu.memory_space<vmem>>, vector<1x16x3xbf16>
    %18 = vector.shape_cast %17 : vector<1x16x3xbf16> to vector<16x3xbf16>
    %c0_22 = arith.constant 0 : index
    %c4 = arith.constant 4 : index
    %c0_23 = arith.constant 0 : index
    %c0_24 = arith.constant 0 : index
    %19 = vector.load %arg2[%c0_22, %c4, %c0_23, %c0_24] : memref<1x16x3x256xbf16, #tpu.memory_space<vmem>>, vector<1x1x3x256xbf16>
    %20 = vector.shape_cast %19 : vector<1x1x3x256xbf16> to vector<3x256xbf16>
    %cst_25 = arith.constant dense<0.000000e+00> : vector<16x256xf32>
    %21 = tpu.matmul %18, %20, %cst_25 {dimension_numbers = #tpu.dot_dimension_numbers<[1], [0], [0], [1], [0, 0, 1, 1], [], []>} : vector<16x3xbf16>, vector<3x256xbf16>, vector<16x256xf32> -> vector<16x256xf32>
    %22 = arith.addf %16, %21 : vector<16x256xf32>
    %c4_26 = arith.constant 4 : index
    %c0_27 = arith.constant 0 : index
    %c0_28 = arith.constant 0 : index
    %23 = vector.load %arg3[%c4_26, %c0_27, %c0_28] : memref<9x16x3xbf16, #tpu.memory_space<vmem>>, vector<1x16x3xbf16>
    %24 = vector.shape_cast %23 : vector<1x16x3xbf16> to vector<16x3xbf16>
    %c0_29 = arith.constant 0 : index
    %c5 = arith.constant 5 : index
    %c0_30 = arith.constant 0 : index
    %c0_31 = arith.constant 0 : index
    %25 = vector.load %arg2[%c0_29, %c5, %c0_30, %c0_31] : memref<1x16x3x256xbf16, #tpu.memory_space<vmem>>, vector<1x1x3x256xbf16>
    %26 = vector.shape_cast %25 : vector<1x1x3x256xbf16> to vector<3x256xbf16>
    %cst_32 = arith.constant dense<0.000000e+00> : vector<16x256xf32>
    %27 = tpu.matmul %24, %26, %cst_32 {dimension_numbers = #tpu.dot_dimension_numbers<[1], [0], [0], [1], [0, 0, 1, 1], [], []>} : vector<16x3xbf16>, vector<3x256xbf16>, vector<16x256xf32> -> vector<16x256xf32>
    %28 = arith.addf %22, %27 : vector<16x256xf32>
    %c5_33 = arith.constant 5 : index
    %c0_34 = arith.constant 0 : index
    %c0_35 = arith.constant 0 : index
    %29 = vector.load %arg3[%c5_33, %c0_34, %c0_35] : memref<9x16x3xbf16, #tpu.memory_space<vmem>>, vector<1x16x3xbf16>
    %30 = vector.shape_cast %29 : vector<1x16x3xbf16> to vector<16x3xbf16>
    %c0_36 = arith.constant 0 : index
    %c6 = arith.constant 6 : index
    %c0_37 = arith.constant 0 : index
    %c0_38 = arith.constant 0 : index
    %31 = vector.load %arg2[%c0_36, %c6, %c0_37, %c0_38] : memref<1x16x3x256xbf16, #tpu.memory_space<vmem>>, vector<1x1x3x256xbf16>
    %32 = vector.shape_cast %31 : vector<1x1x3x256xbf16> to vector<3x256xbf16>
    %cst_39 = arith.constant dense<0.000000e+00> : vector<16x256xf32>
    %33 = tpu.matmul %30, %32, %cst_39 {dimension_numbers = #tpu.dot_dimension_numbers<[1], [0], [0], [1], [0, 0, 1, 1], [], []>} : vector<16x3xbf16>, vector<3x256xbf16>, vector<16x256xf32> -> vector<16x256xf32>
    %34 = arith.addf %28, %33 : vector<16x256xf32>
    %c6_40 = arith.constant 6 : index
    %c0_41 = arith.constant 0 : index
    %c0_42 = arith.constant 0 : index
    %35 = vector.load %arg3[%c6_40, %c0_41, %c0_42] : memref<9x16x3xbf16, #tpu.memory_space<vmem>>, vector<1x16x3xbf16>
    %36 = vector.shape_cast %35 : vector<1x16x3xbf16> to vector<16x3xbf16>
    %c0_43 = arith.constant 0 : index
    %c8 = arith.constant 8 : index
    %c0_44 = arith.constant 0 : index
    %c0_45 = arith.constant 0 : index
    %37 = vector.load %arg2[%c0_43, %c8, %c0_44, %c0_45] : memref<1x16x3x256xbf16, #tpu.memory_space<vmem>>, vector<1x1x3x256xbf16>
    %38 = vector.shape_cast %37 : vector<1x1x3x256xbf16> to vector<3x256xbf16>
    %cst_46 = arith.constant dense<0.000000e+00> : vector<16x256xf32>
    %39 = tpu.matmul %36, %38, %cst_46 {dimension_numbers = #tpu.dot_dimension_numbers<[1], [0], [0], [1], [0, 0, 1, 1], [], []>} : vector<16x3xbf16>, vector<3x256xbf16>, vector<16x256xf32> -> vector<16x256xf32>
    %40 = arith.addf %34, %39 : vector<16x256xf32>
    %c7 = arith.constant 7 : index
    %c0_47 = arith.constant 0 : index
    %c0_48 = arith.constant 0 : index
    %41 = vector.load %arg3[%c7, %c0_47, %c0_48] : memref<9x16x3xbf16, #tpu.memory_space<vmem>>, vector<1x16x3xbf16>
    %42 = vector.shape_cast %41 : vector<1x16x3xbf16> to vector<16x3xbf16>
    %c0_49 = arith.constant 0 : index
    %c9 = arith.constant 9 : index
    %c0_50 = arith.constant 0 : index
    %c0_51 = arith.constant 0 : index
    %43 = vector.load %arg2[%c0_49, %c9, %c0_50, %c0_51] : memref<1x16x3x256xbf16, #tpu.memory_space<vmem>>, vector<1x1x3x256xbf16>
    %44 = vector.shape_cast %43 : vector<1x1x3x256xbf16> to vector<3x256xbf16>
    %cst_52 = arith.constant dense<0.000000e+00> : vector<16x256xf32>
    %45 = tpu.matmul %42, %44, %cst_52 {dimension_numbers = #tpu.dot_dimension_numbers<[1], [0], [0], [1], [0, 0, 1, 1], [], []>} : vector<16x3xbf16>, vector<3x256xbf16>, vector<16x256xf32> -> vector<16x256xf32>
    %46 = arith.addf %40, %45 : vector<16x256xf32>
    %c8_53 = arith.constant 8 : index
    %c0_54 = arith.constant 0 : index
    %c0_55 = arith.constant 0 : index
    %47 = vector.load %arg3[%c8_53, %c0_54, %c0_55] : memref<9x16x3xbf16, #tpu.memory_space<vmem>>, vector<1x16x3xbf16>
    %48 = vector.shape_cast %47 : vector<1x16x3xbf16> to vector<16x3xbf16>
    %c0_56 = arith.constant 0 : index
    %c10 = arith.constant 10 : index
    %c0_57 = arith.constant 0 : index
    %c0_58 = arith.constant 0 : index
    %49 = vector.load %arg2[%c0_56, %c10, %c0_57, %c0_58] : memref<1x16x3x256xbf16, #tpu.memory_space<vmem>>, vector<1x1x3x256xbf16>
    %50 = vector.shape_cast %49 : vector<1x1x3x256xbf16> to vector<3x256xbf16>
    %cst_59 = arith.constant dense<0.000000e+00> : vector<16x256xf32>
    %51 = tpu.matmul %48, %50, %cst_59 {dimension_numbers = #tpu.dot_dimension_numbers<[1], [0], [0], [1], [0, 0, 1, 1], [], []>} : vector<16x3xbf16>, vector<3x256xbf16>, vector<16x256xf32> -> vector<16x256xf32>
    %52 = arith.addf %46, %51 : vector<16x256xf32>
    %c0_60 = arith.constant 0 : index
    %c0_61 = arith.constant 0 : index
    %c0_62 = arith.constant 0 : index
    %53 = vector.load %arg3[%c0_60, %c0_61, %c0_62] : memref<9x16x3xbf16, #tpu.memory_space<vmem>>, vector<1x16x3xbf16>
    %54 = vector.shape_cast %53 : vector<1x16x3xbf16> to vector<16x3xbf16>
    %c0_63 = arith.constant 0 : index
    %c1_64 = arith.constant 1 : index
    %c0_65 = arith.constant 0 : index
    %c0_66 = arith.constant 0 : index
    %55 = vector.load %arg2[%c0_63, %c1_64, %c0_65, %c0_66] : memref<1x16x3x256xbf16, #tpu.memory_space<vmem>>, vector<1x1x3x256xbf16>
    %56 = vector.shape_cast %55 : vector<1x1x3x256xbf16> to vector<3x256xbf16>
    %cst_67 = arith.constant dense<0.000000e+00> : vector<16x256xf32>
    %57 = tpu.matmul %54, %56, %cst_67 {dimension_numbers = #tpu.dot_dimension_numbers<[1], [0], [0], [1], [0, 0, 1, 1], [], []>} : vector<16x3xbf16>, vector<3x256xbf16>, vector<16x256xf32> -> vector<16x256xf32>
    %c1_68 = arith.constant 1 : index
    %c0_69 = arith.constant 0 : index
    %c0_70 = arith.constant 0 : index
    %58 = vector.load %arg3[%c1_68, %c0_69, %c0_70] : memref<9x16x3xbf16, #tpu.memory_space<vmem>>, vector<1x16x3xbf16>
    %59 = vector.shape_cast %58 : vector<1x16x3xbf16> to vector<16x3xbf16>
    %c0_71 = arith.constant 0 : index
    %c2_72 = arith.constant 2 : index
    %c0_73 = arith.constant 0 : index
    %c0_74 = arith.constant 0 : index
    %60 = vector.load %arg2[%c0_71, %c2_72, %c0_73, %c0_74] : memref<1x16x3x256xbf16, #tpu.memory_space<vmem>>, vector<1x1x3x256xbf16>
    %61 = vector.shape_cast %60 : vector<1x1x3x256xbf16> to vector<3x256xbf16>
    %cst_75 = arith.constant dense<0.000000e+00> : vector<16x256xf32>
    %62 = tpu.matmul %59, %61, %cst_75 {dimension_numbers = #tpu.dot_dimension_numbers<[1], [0], [0], [1], [0, 0, 1, 1], [], []>} : vector<16x3xbf16>, vector<3x256xbf16>, vector<16x256xf32> -> vector<16x256xf32>
    %63 = arith.addf %57, %62 : vector<16x256xf32>
    %c2_76 = arith.constant 2 : index
    %c0_77 = arith.constant 0 : index
    %c0_78 = arith.constant 0 : index
    %64 = vector.load %arg3[%c2_76, %c0_77, %c0_78] : memref<9x16x3xbf16, #tpu.memory_space<vmem>>, vector<1x16x3xbf16>
    %65 = vector.shape_cast %64 : vector<1x16x3xbf16> to vector<16x3xbf16>
    %c0_79 = arith.constant 0 : index
    %c3_80 = arith.constant 3 : index
    %c0_81 = arith.constant 0 : index
    %c0_82 = arith.constant 0 : index
    %66 = vector.load %arg2[%c0_79, %c3_80, %c0_81, %c0_82] : memref<1x16x3x256xbf16, #tpu.memory_space<vmem>>, vector<1x1x3x256xbf16>
    %67 = vector.shape_cast %66 : vector<1x1x3x256xbf16> to vector<3x256xbf16>
    %cst_83 = arith.constant dense<0.000000e+00> : vector<16x256xf32>
    %68 = tpu.matmul %65, %67, %cst_83 {dimension_numbers = #tpu.dot_dimension_numbers<[1], [0], [0], [1], [0, 0, 1, 1], [], []>} : vector<16x3xbf16>, vector<3x256xbf16>, vector<16x256xf32> -> vector<16x256xf32>
    %69 = arith.addf %63, %68 : vector<16x256xf32>
    %c3_84 = arith.constant 3 : index
    %c0_85 = arith.constant 0 : index
    %c0_86 = arith.constant 0 : index
    %70 = vector.load %arg3[%c3_84, %c0_85, %c0_86] : memref<9x16x3xbf16, #tpu.memory_space<vmem>>, vector<1x16x3xbf16>
    %71 = vector.shape_cast %70 : vector<1x16x3xbf16> to vector<16x3xbf16>
    %c0_87 = arith.constant 0 : index
    %c5_88 = arith.constant 5 : index
    %c0_89 = arith.constant 0 : index
    %c0_90 = arith.constant 0 : index
    %72 = vector.load %arg2[%c0_87, %c5_88, %c0_89, %c0_90] : memref<1x16x3x256xbf16, #tpu.memory_space<vmem>>, vector<1x1x3x256xbf16>
    %73 = vector.shape_cast %72 : vector<1x1x3x256xbf16> to vector<3x256xbf16>
    %cst_91 = arith.constant dense<0.000000e+00> : vector<16x256xf32>
    %74 = tpu.matmul %71, %73, %cst_91 {dimension_numbers = #tpu.dot_dimension_numbers<[1], [0], [0], [1], [0, 0, 1, 1], [], []>} : vector<16x3xbf16>, vector<3x256xbf16>, vector<16x256xf32> -> vector<16x256xf32>
    %75 = arith.addf %69, %74 : vector<16x256xf32>
    %c4_92 = arith.constant 4 : index
    %c0_93 = arith.constant 0 : index
    %c0_94 = arith.constant 0 : index
    %76 = vector.load %arg3[%c4_92, %c0_93, %c0_94] : memref<9x16x3xbf16, #tpu.memory_space<vmem>>, vector<1x16x3xbf16>
    %77 = vector.shape_cast %76 : vector<1x16x3xbf16> to vector<16x3xbf16>
    %c0_95 = arith.constant 0 : index
    %c6_96 = arith.constant 6 : index
    %c0_97 = arith.constant 0 : index
    %c0_98 = arith.constant 0 : index
    %78 = vector.load %arg2[%c0_95, %c6_96, %c0_97, %c0_98] : memref<1x16x3x256xbf16, #tpu.memory_space<vmem>>, vector<1x1x3x256xbf16>
    %79 = vector.shape_cast %78 : vector<1x1x3x256xbf16> to vector<3x256xbf16>
    %cst_99 = arith.constant dense<0.000000e+00> : vector<16x256xf32>
    %80 = tpu.matmul %77, %79, %cst_99 {dimension_numbers = #tpu.dot_dimension_numbers<[1], [0], [0], [1], [0, 0, 1, 1], [], []>} : vector<16x3xbf16>, vector<3x256xbf16>, vector<16x256xf32> -> vector<16x256xf32>
    %81 = arith.addf %75, %80 : vector<16x256xf32>
    %c5_100 = arith.constant 5 : index
    %c0_101 = arith.constant 0 : index
    %c0_102 = arith.constant 0 : index
    %82 = vector.load %arg3[%c5_100, %c0_101, %c0_102] : memref<9x16x3xbf16, #tpu.memory_space<vmem>>, vector<1x16x3xbf16>
    %83 = vector.shape_cast %82 : vector<1x16x3xbf16> to vector<16x3xbf16>
    %c0_103 = arith.constant 0 : index
    %c7_104 = arith.constant 7 : index
    %c0_105 = arith.constant 0 : index
    %c0_106 = arith.constant 0 : index
    %84 = vector.load %arg2[%c0_103, %c7_104, %c0_105, %c0_106] : memref<1x16x3x256xbf16, #tpu.memory_space<vmem>>, vector<1x1x3x256xbf16>
    %85 = vector.shape_cast %84 : vector<1x1x3x256xbf16> to vector<3x256xbf16>
    %cst_107 = arith.constant dense<0.000000e+00> : vector<16x256xf32>
    %86 = tpu.matmul %83, %85, %cst_107 {dimension_numbers = #tpu.dot_dimension_numbers<[1], [0], [0], [1], [0, 0, 1, 1], [], []>} : vector<16x3xbf16>, vector<3x256xbf16>, vector<16x256xf32> -> vector<16x256xf32>
    %87 = arith.addf %81, %86 : vector<16x256xf32>
    %c6_108 = arith.constant 6 : index
    %c0_109 = arith.constant 0 : index
    %c0_110 = arith.constant 0 : index
    %88 = vector.load %arg3[%c6_108, %c0_109, %c0_110] : memref<9x16x3xbf16, #tpu.memory_space<vmem>>, vector<1x16x3xbf16>
    %89 = vector.shape_cast %88 : vector<1x16x3xbf16> to vector<16x3xbf16>
    %c0_111 = arith.constant 0 : index
    %c9_112 = arith.constant 9 : index
    %c0_113 = arith.constant 0 : index
    %c0_114 = arith.constant 0 : index
    %90 = vector.load %arg2[%c0_111, %c9_112, %c0_113, %c0_114] : memref<1x16x3x256xbf16, #tpu.memory_space<vmem>>, vector<1x1x3x256xbf16>
    %91 = vector.shape_cast %90 : vector<1x1x3x256xbf16> to vector<3x256xbf16>
    %cst_115 = arith.constant dense<0.000000e+00> : vector<16x256xf32>
    %92 = tpu.matmul %89, %91, %cst_115 {dimension_numbers = #tpu.dot_dimension_numbers<[1], [0], [0], [1], [0, 0, 1, 1], [], []>} : vector<16x3xbf16>, vector<3x256xbf16>, vector<16x256xf32> -> vector<16x256xf32>
    %93 = arith.addf %87, %92 : vector<16x256xf32>
    %c7_116 = arith.constant 7 : index
    %c0_117 = arith.constant 0 : index
    %c0_118 = arith.constant 0 : index
    %94 = vector.load %arg3[%c7_116, %c0_117, %c0_118] : memref<9x16x3xbf16, #tpu.memory_space<vmem>>, vector<1x16x3xbf16>
    %95 = vector.shape_cast %94 : vector<1x16x3xbf16> to vector<16x3xbf16>
    %c0_119 = arith.constant 0 : index
    %c10_120 = arith.constant 10 : index
    %c0_121 = arith.constant 0 : index
    %c0_122 = arith.constant 0 : index
    %96 = vector.load %arg2[%c0_119, %c10_120, %c0_121, %c0_122] : memref<1x16x3x256xbf16, #tpu.memory_space<vmem>>, vector<1x1x3x256xbf16>
    %97 = vector.shape_cast %96 : vector<1x1x3x256xbf16> to vector<3x256xbf16>
    %cst_123 = arith.constant dense<0.000000e+00> : vector<16x256xf32>
    %98 = tpu.matmul %95, %97, %cst_123 {dimension_numbers = #tpu.dot_dimension_numbers<[1], [0], [0], [1], [0, 0, 1, 1], [], []>} : vector<16x3xbf16>, vector<3x256xbf16>, vector<16x256xf32> -> vector<16x256xf32>
    %99 = arith.addf %93, %98 : vector<16x256xf32>
    %c8_124 = arith.constant 8 : index
    %c0_125 = arith.constant 0 : index
    %c0_126 = arith.constant 0 : index
    %100 = vector.load %arg3[%c8_124, %c0_125, %c0_126] : memref<9x16x3xbf16, #tpu.memory_space<vmem>>, vector<1x16x3xbf16>
    %101 = vector.shape_cast %100 : vector<1x16x3xbf16> to vector<16x3xbf16>
    %c0_127 = arith.constant 0 : index
    %c11 = arith.constant 11 : index
    %c0_128 = arith.constant 0 : index
    %c0_129 = arith.constant 0 : index
    %102 = vector.load %arg2[%c0_127, %c11, %c0_128, %c0_129] : memref<1x16x3x256xbf16, #tpu.memory_space<vmem>>, vector<1x1x3x256xbf16>
    %103 = vector.shape_cast %102 : vector<1x1x3x256xbf16> to vector<3x256xbf16>
    %cst_130 = arith.constant dense<0.000000e+00> : vector<16x256xf32>
    %104 = tpu.matmul %101, %103, %cst_130 {dimension_numbers = #tpu.dot_dimension_numbers<[1], [0], [0], [1], [0, 0, 1, 1], [], []>} : vector<16x3xbf16>, vector<3x256xbf16>, vector<16x256xf32> -> vector<16x256xf32>
    %105 = arith.addf %99, %104 : vector<16x256xf32>
    %106 = arith.maximumf %52, %105 : vector<16x256xf32>
    %c0_131 = arith.constant 0 : index
    %c0_132 = arith.constant 0 : index
    %c0_133 = arith.constant 0 : index
    %107 = vector.load %arg3[%c0_131, %c0_132, %c0_133] : memref<9x16x3xbf16, #tpu.memory_space<vmem>>, vector<1x16x3xbf16>
    %108 = vector.shape_cast %107 : vector<1x16x3xbf16> to vector<16x3xbf16>
    %c0_134 = arith.constant 0 : index
    %c4_135 = arith.constant 4 : index
    %c0_136 = arith.constant 0 : index
    %c0_137 = arith.constant 0 : index
    %109 = vector.load %arg2[%c0_134, %c4_135, %c0_136, %c0_137] : memref<1x16x3x256xbf16, #tpu.memory_space<vmem>>, vector<1x1x3x256xbf16>
    %110 = vector.shape_cast %109 : vector<1x1x3x256xbf16> to vector<3x256xbf16>
    %cst_138 = arith.constant dense<0.000000e+00> : vector<16x256xf32>
    %111 = tpu.matmul %108, %110, %cst_138 {dimension_numbers = #tpu.dot_dimension_numbers<[1], [0], [0], [1], [0, 0, 1, 1], [], []>} : vector<16x3xbf16>, vector<3x256xbf16>, vector<16x256xf32> -> vector<16x256xf32>
    %c1_139 = arith.constant 1 : index
    %c0_140 = arith.constant 0 : index
    %c0_141 = arith.constant 0 : index
    %112 = vector.load %arg3[%c1_139, %c0_140, %c0_141] : memref<9x16x3xbf16, #tpu.memory_space<vmem>>, vector<1x16x3xbf16>
    %113 = vector.shape_cast %112 : vector<1x16x3xbf16> to vector<16x3xbf16>
    %c0_142 = arith.constant 0 : index
    %c5_143 = arith.constant 5 : index
    %c0_144 = arith.constant 0 : index
    %c0_145 = arith.constant 0 : index
    %114 = vector.load %arg2[%c0_142, %c5_143, %c0_144, %c0_145] : memref<1x16x3x256xbf16, #tpu.memory_space<vmem>>, vector<1x1x3x256xbf16>
    %115 = vector.shape_cast %114 : vector<1x1x3x256xbf16> to vector<3x256xbf16>
    %cst_146 = arith.constant dense<0.000000e+00> : vector<16x256xf32>
    %116 = tpu.matmul %113, %115, %cst_146 {dimension_numbers = #tpu.dot_dimension_numbers<[1], [0], [0], [1], [0, 0, 1, 1], [], []>} : vector<16x3xbf16>, vector<3x256xbf16>, vector<16x256xf32> -> vector<16x256xf32>
    %117 = arith.addf %111, %116 : vector<16x256xf32>
    %c2_147 = arith.constant 2 : index
    %c0_148 = arith.constant 0 : index
    %c0_149 = arith.constant 0 : index
    %118 = vector.load %arg3[%c2_147, %c0_148, %c0_149] : memref<9x16x3xbf16, #tpu.memory_space<vmem>>, vector<1x16x3xbf16>
    %119 = vector.shape_cast %118 : vector<1x16x3xbf16> to vector<16x3xbf16>
    %c0_150 = arith.constant 0 : index
    %c6_151 = arith.constant 6 : index
    %c0_152 = arith.constant 0 : index
    %c0_153 = arith.constant 0 : index
    %120 = vector.load %arg2[%c0_150, %c6_151, %c0_152, %c0_153] : memref<1x16x3x256xbf16, #tpu.memory_space<vmem>>, vector<1x1x3x256xbf16>
    %121 = vector.shape_cast %120 : vector<1x1x3x256xbf16> to vector<3x256xbf16>
    %cst_154 = arith.constant dense<0.000000e+00> : vector<16x256xf32>
    %122 = tpu.matmul %119, %121, %cst_154 {dimension_numbers = #tpu.dot_dimension_numbers<[1], [0], [0], [1], [0, 0, 1, 1], [], []>} : vector<16x3xbf16>, vector<3x256xbf16>, vector<16x256xf32> -> vector<16x256xf32>
    %123 = arith.addf %117, %122 : vector<16x256xf32>
    %c3_155 = arith.constant 3 : index
    %c0_156 = arith.constant 0 : index
    %c0_157 = arith.constant 0 : index
    %124 = vector.load %arg3[%c3_155, %c0_156, %c0_157] : memref<9x16x3xbf16, #tpu.memory_space<vmem>>, vector<1x16x3xbf16>
    %125 = vector.shape_cast %124 : vector<1x16x3xbf16> to vector<16x3xbf16>
    %c0_158 = arith.constant 0 : index
    %c8_159 = arith.constant 8 : index
    %c0_160 = arith.constant 0 : index
    %c0_161 = arith.constant 0 : index
    %126 = vector.load %arg2[%c0_158, %c8_159, %c0_160, %c0_161] : memref<1x16x3x256xbf16, #tpu.memory_space<vmem>>, vector<1x1x3x256xbf16>
    %127 = vector.shape_cast %126 : vector<1x1x3x256xbf16> to vector<3x256xbf16>
    %cst_162 = arith.constant dense<0.000000e+00> : vector<16x256xf32>
    %128 = tpu.matmul %125, %127, %cst_162 {dimension_numbers = #tpu.dot_dimension_numbers<[1], [0], [0], [1], [0, 0, 1, 1], [], []>} : vector<16x3xbf16>, vector<3x256xbf16>, vector<16x256xf32> -> vector<16x256xf32>
    %129 = arith.addf %123, %128 : vector<16x256xf32>
    %c4_163 = arith.constant 4 : index
    %c0_164 = arith.constant 0 : index
    %c0_165 = arith.constant 0 : index
    %130 = vector.load %arg3[%c4_163, %c0_164, %c0_165] : memref<9x16x3xbf16, #tpu.memory_space<vmem>>, vector<1x16x3xbf16>
    %131 = vector.shape_cast %130 : vector<1x16x3xbf16> to vector<16x3xbf16>
    %c0_166 = arith.constant 0 : index
    %c9_167 = arith.constant 9 : index
    %c0_168 = arith.constant 0 : index
    %c0_169 = arith.constant 0 : index
    %132 = vector.load %arg2[%c0_166, %c9_167, %c0_168, %c0_169] : memref<1x16x3x256xbf16, #tpu.memory_space<vmem>>, vector<1x1x3x256xbf16>
    %133 = vector.shape_cast %132 : vector<1x1x3x256xbf16> to vector<3x256xbf16>
    %cst_170 = arith.constant dense<0.000000e+00> : vector<16x256xf32>
    %134 = tpu.matmul %131, %133, %cst_170 {dimension_numbers = #tpu.dot_dimension_numbers<[1], [0], [0], [1], [0, 0, 1, 1], [], []>} : vector<16x3xbf16>, vector<3x256xbf16>, vector<16x256xf32> -> vector<16x256xf32>
    %135 = arith.addf %129, %134 : vector<16x256xf32>
    %c5_171 = arith.constant 5 : index
    %c0_172 = arith.constant 0 : index
    %c0_173 = arith.constant 0 : index
    %136 = vector.load %arg3[%c5_171, %c0_172, %c0_173] : memref<9x16x3xbf16, #tpu.memory_space<vmem>>, vector<1x16x3xbf16>
    %137 = vector.shape_cast %136 : vector<1x16x3xbf16> to vector<16x3xbf16>
    %c0_174 = arith.constant 0 : index
    %c10_175 = arith.constant 10 : index
    %c0_176 = arith.constant 0 : index
    %c0_177 = arith.constant 0 : index
    %138 = vector.load %arg2[%c0_174, %c10_175, %c0_176, %c0_177] : memref<1x16x3x256xbf16, #tpu.memory_space<vmem>>, vector<1x1x3x256xbf16>
    %139 = vector.shape_cast %138 : vector<1x1x3x256xbf16> to vector<3x256xbf16>
    %cst_178 = arith.constant dense<0.000000e+00> : vector<16x256xf32>
    %140 = tpu.matmul %137, %139, %cst_178 {dimension_numbers = #tpu.dot_dimension_numbers<[1], [0], [0], [1], [0, 0, 1, 1], [], []>} : vector<16x3xbf16>, vector<3x256xbf16>, vector<16x256xf32> -> vector<16x256xf32>
    %141 = arith.addf %135, %140 : vector<16x256xf32>
    %c6_179 = arith.constant 6 : index
    %c0_180 = arith.constant 0 : index
    %c0_181 = arith.constant 0 : index
    %142 = vector.load %arg3[%c6_179, %c0_180, %c0_181] : memref<9x16x3xbf16, #tpu.memory_space<vmem>>, vector<1x16x3xbf16>
    %143 = vector.shape_cast %142 : vector<1x16x3xbf16> to vector<16x3xbf16>
    %c0_182 = arith.constant 0 : index
    %c12 = arith.constant 12 : index
    %c0_183 = arith.constant 0 : index
    %c0_184 = arith.constant 0 : index
    %144 = vector.load %arg2[%c0_182, %c12, %c0_183, %c0_184] : memref<1x16x3x256xbf16, #tpu.memory_space<vmem>>, vector<1x1x3x256xbf16>
    %145 = vector.shape_cast %144 : vector<1x1x3x256xbf16> to vector<3x256xbf16>
    %cst_185 = arith.constant dense<0.000000e+00> : vector<16x256xf32>
    %146 = tpu.matmul %143, %145, %cst_185 {dimension_numbers = #tpu.dot_dimension_numbers<[1], [0], [0], [1], [0, 0, 1, 1], [], []>} : vector<16x3xbf16>, vector<3x256xbf16>, vector<16x256xf32> -> vector<16x256xf32>
    %147 = arith.addf %141, %146 : vector<16x256xf32>
    %c7_186 = arith.constant 7 : index
    %c0_187 = arith.constant 0 : index
    %c0_188 = arith.constant 0 : index
    %148 = vector.load %arg3[%c7_186, %c0_187, %c0_188] : memref<9x16x3xbf16, #tpu.memory_space<vmem>>, vector<1x16x3xbf16>
    %149 = vector.shape_cast %148 : vector<1x16x3xbf16> to vector<16x3xbf16>
    %c0_189 = arith.constant 0 : index
    %c13 = arith.constant 13 : index
    %c0_190 = arith.constant 0 : index
    %c0_191 = arith.constant 0 : index
    %150 = vector.load %arg2[%c0_189, %c13, %c0_190, %c0_191] : memref<1x16x3x256xbf16, #tpu.memory_space<vmem>>, vector<1x1x3x256xbf16>
    %151 = vector.shape_cast %150 : vector<1x1x3x256xbf16> to vector<3x256xbf16>
    %cst_192 = arith.constant dense<0.000000e+00> : vector<16x256xf32>
    %152 = tpu.matmul %149, %151, %cst_192 {dimension_numbers = #tpu.dot_dimension_numbers<[1], [0], [0], [1], [0, 0, 1, 1], [], []>} : vector<16x3xbf16>, vector<3x256xbf16>, vector<16x256xf32> -> vector<16x256xf32>
    %153 = arith.addf %147, %152 : vector<16x256xf32>
    %c8_193 = arith.constant 8 : index
    %c0_194 = arith.constant 0 : index
    %c0_195 = arith.constant 0 : index
    %154 = vector.load %arg3[%c8_193, %c0_194, %c0_195] : memref<9x16x3xbf16, #tpu.memory_space<vmem>>, vector<1x16x3xbf16>
    %155 = vector.shape_cast %154 : vector<1x16x3xbf16> to vector<16x3xbf16>
    %c0_196 = arith.constant 0 : index
    %c14 = arith.constant 14 : index
    %c0_197 = arith.constant 0 : index
    %c0_198 = arith.constant 0 : index
    %156 = vector.load %arg2[%c0_196, %c14, %c0_197, %c0_198] : memref<1x16x3x256xbf16, #tpu.memory_space<vmem>>, vector<1x1x3x256xbf16>
    %157 = vector.shape_cast %156 : vector<1x1x3x256xbf16> to vector<3x256xbf16>
    %cst_199 = arith.constant dense<0.000000e+00> : vector<16x256xf32>
    %158 = tpu.matmul %155, %157, %cst_199 {dimension_numbers = #tpu.dot_dimension_numbers<[1], [0], [0], [1], [0, 0, 1, 1], [], []>} : vector<16x3xbf16>, vector<3x256xbf16>, vector<16x256xf32> -> vector<16x256xf32>
    %159 = arith.addf %153, %158 : vector<16x256xf32>
    %160 = arith.maximumf %106, %159 : vector<16x256xf32>
    %c0_200 = arith.constant 0 : index
    %c0_201 = arith.constant 0 : index
    %c0_202 = arith.constant 0 : index
    %161 = vector.load %arg3[%c0_200, %c0_201, %c0_202] : memref<9x16x3xbf16, #tpu.memory_space<vmem>>, vector<1x16x3xbf16>
    %162 = vector.shape_cast %161 : vector<1x16x3xbf16> to vector<16x3xbf16>
    %c0_203 = arith.constant 0 : index
    %c5_204 = arith.constant 5 : index
    %c0_205 = arith.constant 0 : index
    %c0_206 = arith.constant 0 : index
    %163 = vector.load %arg2[%c0_203, %c5_204, %c0_205, %c0_206] : memref<1x16x3x256xbf16, #tpu.memory_space<vmem>>, vector<1x1x3x256xbf16>
    %164 = vector.shape_cast %163 : vector<1x1x3x256xbf16> to vector<3x256xbf16>
    %cst_207 = arith.constant dense<0.000000e+00> : vector<16x256xf32>
    %165 = tpu.matmul %162, %164, %cst_207 {dimension_numbers = #tpu.dot_dimension_numbers<[1], [0], [0], [1], [0, 0, 1, 1], [], []>} : vector<16x3xbf16>, vector<3x256xbf16>, vector<16x256xf32> -> vector<16x256xf32>
    %c1_208 = arith.constant 1 : index
    %c0_209 = arith.constant 0 : index
    %c0_210 = arith.constant 0 : index
    %166 = vector.load %arg3[%c1_208, %c0_209, %c0_210] : memref<9x16x3xbf16, #tpu.memory_space<vmem>>, vector<1x16x3xbf16>
    %167 = vector.shape_cast %166 : vector<1x16x3xbf16> to vector<16x3xbf16>
    %c0_211 = arith.constant 0 : index
    %c6_212 = arith.constant 6 : index
    %c0_213 = arith.constant 0 : index
    %c0_214 = arith.constant 0 : index
    %168 = vector.load %arg2[%c0_211, %c6_212, %c0_213, %c0_214] : memref<1x16x3x256xbf16, #tpu.memory_space<vmem>>, vector<1x1x3x256xbf16>
    %169 = vector.shape_cast %168 : vector<1x1x3x256xbf16> to vector<3x256xbf16>
    %cst_215 = arith.constant dense<0.000000e+00> : vector<16x256xf32>
    %170 = tpu.matmul %167, %169, %cst_215 {dimension_numbers = #tpu.dot_dimension_numbers<[1], [0], [0], [1], [0, 0, 1, 1], [], []>} : vector<16x3xbf16>, vector<3x256xbf16>, vector<16x256xf32> -> vector<16x256xf32>
    %171 = arith.addf %165, %170 : vector<16x256xf32>
    %c2_216 = arith.constant 2 : index
    %c0_217 = arith.constant 0 : index
    %c0_218 = arith.constant 0 : index
    %172 = vector.load %arg3[%c2_216, %c0_217, %c0_218] : memref<9x16x3xbf16, #tpu.memory_space<vmem>>, vector<1x16x3xbf16>
    %173 = vector.shape_cast %172 : vector<1x16x3xbf16> to vector<16x3xbf16>
    %c0_219 = arith.constant 0 : index
    %c7_220 = arith.constant 7 : index
    %c0_221 = arith.constant 0 : index
    %c0_222 = arith.constant 0 : index
    %174 = vector.load %arg2[%c0_219, %c7_220, %c0_221, %c0_222] : memref<1x16x3x256xbf16, #tpu.memory_space<vmem>>, vector<1x1x3x256xbf16>
    %175 = vector.shape_cast %174 : vector<1x1x3x256xbf16> to vector<3x256xbf16>
    %cst_223 = arith.constant dense<0.000000e+00> : vector<16x256xf32>
    %176 = tpu.matmul %173, %175, %cst_223 {dimension_numbers = #tpu.dot_dimension_numbers<[1], [0], [0], [1], [0, 0, 1, 1], [], []>} : vector<16x3xbf16>, vector<3x256xbf16>, vector<16x256xf32> -> vector<16x256xf32>
    %177 = arith.addf %171, %176 : vector<16x256xf32>
    %c3_224 = arith.constant 3 : index
    %c0_225 = arith.constant 0 : index
    %c0_226 = arith.constant 0 : index
    %178 = vector.load %arg3[%c3_224, %c0_225, %c0_226] : memref<9x16x3xbf16, #tpu.memory_space<vmem>>, vector<1x16x3xbf16>
    %179 = vector.shape_cast %178 : vector<1x16x3xbf16> to vector<16x3xbf16>
    %c0_227 = arith.constant 0 : index
    %c9_228 = arith.constant 9 : index
    %c0_229 = arith.constant 0 : index
    %c0_230 = arith.constant 0 : index
    %180 = vector.load %arg2[%c0_227, %c9_228, %c0_229, %c0_230] : memref<1x16x3x256xbf16, #tpu.memory_space<vmem>>, vector<1x1x3x256xbf16>
    %181 = vector.shape_cast %180 : vector<1x1x3x256xbf16> to vector<3x256xbf16>
    %cst_231 = arith.constant dense<0.000000e+00> : vector<16x256xf32>
    %182 = tpu.matmul %179, %181, %cst_231 {dimension_numbers = #tpu.dot_dimension_numbers<[1], [0], [0], [1], [0, 0, 1, 1], [], []>} : vector<16x3xbf16>, vector<3x256xbf16>, vector<16x256xf32> -> vector<16x256xf32>
    %183 = arith.addf %177, %182 : vector<16x256xf32>
    %c4_232 = arith.constant 4 : index
    %c0_233 = arith.constant 0 : index
    %c0_234 = arith.constant 0 : index
    %184 = vector.load %arg3[%c4_232, %c0_233, %c0_234] : memref<9x16x3xbf16, #tpu.memory_space<vmem>>, vector<1x16x3xbf16>
    %185 = vector.shape_cast %184 : vector<1x16x3xbf16> to vector<16x3xbf16>
    %c0_235 = arith.constant 0 : index
    %c10_236 = arith.constant 10 : index
    %c0_237 = arith.constant 0 : index
    %c0_238 = arith.constant 0 : index
    %186 = vector.load %arg2[%c0_235, %c10_236, %c0_237, %c0_238] : memref<1x16x3x256xbf16, #tpu.memory_space<vmem>>, vector<1x1x3x256xbf16>
    %187 = vector.shape_cast %186 : vector<1x1x3x256xbf16> to vector<3x256xbf16>
    %cst_239 = arith.constant dense<0.000000e+00> : vector<16x256xf32>
    %188 = tpu.matmul %185, %187, %cst_239 {dimension_numbers = #tpu.dot_dimension_numbers<[1], [0], [0], [1], [0, 0, 1, 1], [], []>} : vector<16x3xbf16>, vector<3x256xbf16>, vector<16x256xf32> -> vector<16x256xf32>
    %189 = arith.addf %183, %188 : vector<16x256xf32>
    %c5_240 = arith.constant 5 : index
    %c0_241 = arith.constant 0 : index
    %c0_242 = arith.constant 0 : index
    %190 = vector.load %arg3[%c5_240, %c0_241, %c0_242] : memref<9x16x3xbf16, #tpu.memory_space<vmem>>, vector<1x16x3xbf16>
    %191 = vector.shape_cast %190 : vector<1x16x3xbf16> to vector<16x3xbf16>
    %c0_243 = arith.constant 0 : index
    %c11_244 = arith.constant 11 : index
    %c0_245 = arith.constant 0 : index
    %c0_246 = arith.constant 0 : index
    %192 = vector.load %arg2[%c0_243, %c11_244, %c0_245, %c0_246] : memref<1x16x3x256xbf16, #tpu.memory_space<vmem>>, vector<1x1x3x256xbf16>
    %193 = vector.shape_cast %192 : vector<1x1x3x256xbf16> to vector<3x256xbf16>
    %cst_247 = arith.constant dense<0.000000e+00> : vector<16x256xf32>
    %194 = tpu.matmul %191, %193, %cst_247 {dimension_numbers = #tpu.dot_dimension_numbers<[1], [0], [0], [1], [0, 0, 1, 1], [], []>} : vector<16x3xbf16>, vector<3x256xbf16>, vector<16x256xf32> -> vector<16x256xf32>
    %195 = arith.addf %189, %194 : vector<16x256xf32>
    %c6_248 = arith.constant 6 : index
    %c0_249 = arith.constant 0 : index
    %c0_250 = arith.constant 0 : index
    %196 = vector.load %arg3[%c6_248, %c0_249, %c0_250] : memref<9x16x3xbf16, #tpu.memory_space<vmem>>, vector<1x16x3xbf16>
    %197 = vector.shape_cast %196 : vector<1x16x3xbf16> to vector<16x3xbf16>
    %c0_251 = arith.constant 0 : index
    %c13_252 = arith.constant 13 : index
    %c0_253 = arith.constant 0 : index
    %c0_254 = arith.constant 0 : index
    %198 = vector.load %arg2[%c0_251, %c13_252, %c0_253, %c0_254] : memref<1x16x3x256xbf16, #tpu.memory_space<vmem>>, vector<1x1x3x256xbf16>
    %199 = vector.shape_cast %198 : vector<1x1x3x256xbf16> to vector<3x256xbf16>
    %cst_255 = arith.constant dense<0.000000e+00> : vector<16x256xf32>
    %200 = tpu.matmul %197, %199, %cst_255 {dimension_numbers = #tpu.dot_dimension_numbers<[1], [0], [0], [1], [0, 0, 1, 1], [], []>} : vector<16x3xbf16>, vector<3x256xbf16>, vector<16x256xf32> -> vector<16x256xf32>
    %201 = arith.addf %195, %200 : vector<16x256xf32>
    %c7_256 = arith.constant 7 : index
    %c0_257 = arith.constant 0 : index
    %c0_258 = arith.constant 0 : index
    %202 = vector.load %arg3[%c7_256, %c0_257, %c0_258] : memref<9x16x3xbf16, #tpu.memory_space<vmem>>, vector<1x16x3xbf16>
    %203 = vector.shape_cast %202 : vector<1x16x3xbf16> to vector<16x3xbf16>
    %c0_259 = arith.constant 0 : index
    %c14_260 = arith.constant 14 : index
    %c0_261 = arith.constant 0 : index
    %c0_262 = arith.constant 0 : index
    %204 = vector.load %arg2[%c0_259, %c14_260, %c0_261, %c0_262] : memref<1x16x3x256xbf16, #tpu.memory_space<vmem>>, vector<1x1x3x256xbf16>
    %205 = vector.shape_cast %204 : vector<1x1x3x256xbf16> to vector<3x256xbf16>
    %cst_263 = arith.constant dense<0.000000e+00> : vector<16x256xf32>
    %206 = tpu.matmul %203, %205, %cst_263 {dimension_numbers = #tpu.dot_dimension_numbers<[1], [0], [0], [1], [0, 0, 1, 1], [], []>} : vector<16x3xbf16>, vector<3x256xbf16>, vector<16x256xf32> -> vector<16x256xf32>
    %207 = arith.addf %201, %206 : vector<16x256xf32>
    %c8_264 = arith.constant 8 : index
    %c0_265 = arith.constant 0 : index
    %c0_266 = arith.constant 0 : index
    %208 = vector.load %arg3[%c8_264, %c0_265, %c0_266] : memref<9x16x3xbf16, #tpu.memory_space<vmem>>, vector<1x16x3xbf16>
    %209 = vector.shape_cast %208 : vector<1x16x3xbf16> to vector<16x3xbf16>
    %c0_267 = arith.constant 0 : index
    %c15 = arith.constant 15 : index
    %c0_268 = arith.constant 0 : index
    %c0_269 = arith.constant 0 : index
    %210 = vector.load %arg2[%c0_267, %c15, %c0_268, %c0_269] : memref<1x16x3x256xbf16, #tpu.memory_space<vmem>>, vector<1x1x3x256xbf16>
    %211 = vector.shape_cast %210 : vector<1x1x3x256xbf16> to vector<3x256xbf16>
    %cst_270 = arith.constant dense<0.000000e+00> : vector<16x256xf32>
    %212 = tpu.matmul %209, %211, %cst_270 {dimension_numbers = #tpu.dot_dimension_numbers<[1], [0], [0], [1], [0, 0, 1, 1], [], []>} : vector<16x3xbf16>, vector<3x256xbf16>, vector<16x256xf32> -> vector<16x256xf32>
    %213 = arith.addf %207, %212 : vector<16x256xf32>
    %214 = arith.maximumf %160, %213 : vector<16x256xf32>
    %c0_271 = arith.constant 0 : index
    %c0_272 = arith.constant 0 : index
    %215 = vector.load %arg4[%c0_271, %c0_272] : memref<16x1xf32, #tpu.memory_space<vmem>>, vector<16x1xf32>
    %216 = vector.broadcast %215 : vector<16x1xf32> to vector<16x256xf32>
    %217 = arith.addf %214, %216 : vector<16x256xf32>
    %cst_273 = arith.constant 0.000000e+00 : f32
    %218 = vector.broadcast %cst_273 : f32 to vector<16x256xf32>
    %219 = arith.maximumf %217, %218 : vector<16x256xf32>
    %220 = arith.truncf %219 : vector<16x256xf32> to vector<16x256xbf16>
    %c0_274 = arith.constant 0 : index
    %c0_275 = arith.constant 0 : index
    %c0_276 = arith.constant 0 : index
    %221 = vector.load %arg5[%c0_274, %c0_275, %c0_276] : memref<1x16x256xbf16, #tpu.memory_space<vmem>>, vector<1x16x256xbf16>
    %222 = vector.shape_cast %221 : vector<1x16x256xbf16> to vector<16x256xbf16>
    %223 = vector.shape_cast %220 : vector<16x256xbf16> to vector<1x16x256xbf16>
    tpu.vector_store %arg5[%c0_274, %c0_275, %c0_276], %223 {strides = array<i32>} : memref<1x16x256xbf16, #tpu.memory_space<vmem>>, vector<1x16x256xbf16>,
    return
  }
  func.func @transform_0(%arg0: i32, %arg1: i32) -> (i32, i32, i32, i32) {
    %c0_i32 = arith.constant 0 : i32
    %c0_i32_0 = arith.constant 0 : i32
    %c0_i32_1 = arith.constant 0 : i32
    return %arg0, %c0_i32, %c0_i32_0, %arg1 : i32, i32, i32, i32
  }
  func.func @transform_1(%arg0: i32, %arg1: i32) -> (i32, i32, i32) {
    %c0_i32 = arith.constant 0 : i32
    %c0_i32_0 = arith.constant 0 : i32
    %c0_i32_1 = arith.constant 0 : i32
    %c0_i32_2 = arith.constant 0 : i32
    return %c0_i32, %c0_i32_0, %c0_i32_1 : i32, i32, i32
  }
  func.func @transform_2(%arg0: i32, %arg1: i32) -> (i32, i32) {
    %c0_i32 = arith.constant 0 : i32
    %c0_i32_0 = arith.constant 0 : i32
    %c0_i32_1 = arith.constant 0 : i32
    return %c0_i32, %c0_i32_0 : i32, i32
  }
  func.func @transform_3(%arg0: i32, %arg1: i32) -> (i32, i32, i32) {
    %c0_i32 = arith.constant 0 : i32
    %c0_i32_0 = arith.constant 0 : i32
    return %arg0, %c0_i32, %arg1 : i32, i32, i32
  }
}

module attributes {stable_mosaic.version = 11 : i64} {
  func.func @conv_pool_kernel(%arg0: i32, %arg1: i32, %arg2: memref<1x16x16x64xbf16, #tpu.memory_space<vmem>>, %arg3: memref<9x32x16xbf16, #tpu.memory_space<vmem>>, %arg4: memref<32x1xf32, #tpu.memory_space<vmem>>, %arg5: memref<1x32x64xbf16, #tpu.memory_space<vmem>>) attributes {dimension_semantics = [#tpu.dimension_semantics<parallel>, #tpu.dimension_semantics<parallel>], iteration_bounds = array<i64: 2, 1>, scalar_prefetch = 0 : i64, scratch_operands = 0 : i64, tpu.core_type = #tpu.core_type<tc>, window_params = [{transform_indices = @transform_0, window_bounds = array<i64: 1, 16, 16, 64>}, {pipeline_mode = #tpu.pipeline_mode<synchronous>, transform_indices = @transform_1, window_bounds = array<i64: 9, 32, 16>}, {pipeline_mode = #tpu.pipeline_mode<synchronous>, transform_indices = @transform_2, window_bounds = array<i64: 32, 1>}, {transform_indices = @transform_3, window_bounds = array<i64: 1, 32, 64>}]} {
    %c0 = arith.constant 0 : index
    %c0_0 = arith.constant 0 : index
    %c0_1 = arith.constant 0 : index
    %0 = vector.load %arg3[%c0, %c0_0, %c0_1] : memref<9x32x16xbf16, #tpu.memory_space<vmem>>, vector<1x32x16xbf16>
    %1 = vector.shape_cast %0 : vector<1x32x16xbf16> to vector<32x16xbf16>
    %c0_2 = arith.constant 0 : index
    %c0_3 = arith.constant 0 : index
    %c0_4 = arith.constant 0 : index
    %c0_5 = arith.constant 0 : index
    %2 = vector.load %arg2[%c0_2, %c0_3, %c0_4, %c0_5] : memref<1x16x16x64xbf16, #tpu.memory_space<vmem>>, vector<1x1x16x64xbf16>
    %3 = vector.shape_cast %2 : vector<1x1x16x64xbf16> to vector<16x64xbf16>
    %cst = arith.constant dense<0.000000e+00> : vector<32x64xf32>
    %4 = tpu.matmul %1, %3, %cst {dimension_numbers = #tpu.dot_dimension_numbers<[1], [0], [0], [1], [0, 0, 1, 1], [], []>} : vector<32x16xbf16>, vector<16x64xbf16>, vector<32x64xf32> -> vector<32x64xf32>
    %c1 = arith.constant 1 : index
    %c0_6 = arith.constant 0 : index
    %c0_7 = arith.constant 0 : index
    %5 = vector.load %arg3[%c1, %c0_6, %c0_7] : memref<9x32x16xbf16, #tpu.memory_space<vmem>>, vector<1x32x16xbf16>
    %6 = vector.shape_cast %5 : vector<1x32x16xbf16> to vector<32x16xbf16>
    %c0_8 = arith.constant 0 : index
    %c1_9 = arith.constant 1 : index
    %c0_10 = arith.constant 0 : index
    %c0_11 = arith.constant 0 : index
    %7 = vector.load %arg2[%c0_8, %c1_9, %c0_10, %c0_11] : memref<1x16x16x64xbf16, #tpu.memory_space<vmem>>, vector<1x1x16x64xbf16>
    %8 = vector.shape_cast %7 : vector<1x1x16x64xbf16> to vector<16x64xbf16>
    %cst_12 = arith.constant dense<0.000000e+00> : vector<32x64xf32>
    %9 = tpu.matmul %6, %8, %cst_12 {dimension_numbers = #tpu.dot_dimension_numbers<[1], [0], [0], [1], [0, 0, 1, 1], [], []>} : vector<32x16xbf16>, vector<16x64xbf16>, vector<32x64xf32> -> vector<32x64xf32>
    %10 = arith.addf %4, %9 : vector<32x64xf32>
    %c2 = arith.constant 2 : index
    %c0_13 = arith.constant 0 : index
    %c0_14 = arith.constant 0 : index
    %11 = vector.load %arg3[%c2, %c0_13, %c0_14] : memref<9x32x16xbf16, #tpu.memory_space<vmem>>, vector<1x32x16xbf16>
    %12 = vector.shape_cast %11 : vector<1x32x16xbf16> to vector<32x16xbf16>
    %c0_15 = arith.constant 0 : index
    %c2_16 = arith.constant 2 : index
    %c0_17 = arith.constant 0 : index
    %c0_18 = arith.constant 0 : index
    %13 = vector.load %arg2[%c0_15, %c2_16, %c0_17, %c0_18] : memref<1x16x16x64xbf16, #tpu.memory_space<vmem>>, vector<1x1x16x64xbf16>
    %14 = vector.shape_cast %13 : vector<1x1x16x64xbf16> to vector<16x64xbf16>
    %cst_19 = arith.constant dense<0.000000e+00> : vector<32x64xf32>
    %15 = tpu.matmul %12, %14, %cst_19 {dimension_numbers = #tpu.dot_dimension_numbers<[1], [0], [0], [1], [0, 0, 1, 1], [], []>} : vector<32x16xbf16>, vector<16x64xbf16>, vector<32x64xf32> -> vector<32x64xf32>
    %16 = arith.addf %10, %15 : vector<32x64xf32>
    %c3 = arith.constant 3 : index
    %c0_20 = arith.constant 0 : index
    %c0_21 = arith.constant 0 : index
    %17 = vector.load %arg3[%c3, %c0_20, %c0_21] : memref<9x32x16xbf16, #tpu.memory_space<vmem>>, vector<1x32x16xbf16>
    %18 = vector.shape_cast %17 : vector<1x32x16xbf16> to vector<32x16xbf16>
    %c0_22 = arith.constant 0 : index
    %c4 = arith.constant 4 : index
    %c0_23 = arith.constant 0 : index
    %c0_24 = arith.constant 0 : index
    %19 = vector.load %arg2[%c0_22, %c4, %c0_23, %c0_24] : memref<1x16x16x64xbf16, #tpu.memory_space<vmem>>, vector<1x1x16x64xbf16>
    %20 = vector.shape_cast %19 : vector<1x1x16x64xbf16> to vector<16x64xbf16>
    %cst_25 = arith.constant dense<0.000000e+00> : vector<32x64xf32>
    %21 = tpu.matmul %18, %20, %cst_25 {dimension_numbers = #tpu.dot_dimension_numbers<[1], [0], [0], [1], [0, 0, 1, 1], [], []>} : vector<32x16xbf16>, vector<16x64xbf16>, vector<32x64xf32> -> vector<32x64xf32>
    %22 = arith.addf %16, %21 : vector<32x64xf32>
    %c4_26 = arith.constant 4 : index
    %c0_27 = arith.constant 0 : index
    %c0_28 = arith.constant 0 : index
    %23 = vector.load %arg3[%c4_26, %c0_27, %c0_28] : memref<9x32x16xbf16, #tpu.memory_space<vmem>>, vector<1x32x16xbf16>
    %24 = vector.shape_cast %23 : vector<1x32x16xbf16> to vector<32x16xbf16>
    %c0_29 = arith.constant 0 : index
    %c5 = arith.constant 5 : index
    %c0_30 = arith.constant 0 : index
    %c0_31 = arith.constant 0 : index
    %25 = vector.load %arg2[%c0_29, %c5, %c0_30, %c0_31] : memref<1x16x16x64xbf16, #tpu.memory_space<vmem>>, vector<1x1x16x64xbf16>
    %26 = vector.shape_cast %25 : vector<1x1x16x64xbf16> to vector<16x64xbf16>
    %cst_32 = arith.constant dense<0.000000e+00> : vector<32x64xf32>
    %27 = tpu.matmul %24, %26, %cst_32 {dimension_numbers = #tpu.dot_dimension_numbers<[1], [0], [0], [1], [0, 0, 1, 1], [], []>} : vector<32x16xbf16>, vector<16x64xbf16>, vector<32x64xf32> -> vector<32x64xf32>
    %28 = arith.addf %22, %27 : vector<32x64xf32>
    %c5_33 = arith.constant 5 : index
    %c0_34 = arith.constant 0 : index
    %c0_35 = arith.constant 0 : index
    %29 = vector.load %arg3[%c5_33, %c0_34, %c0_35] : memref<9x32x16xbf16, #tpu.memory_space<vmem>>, vector<1x32x16xbf16>
    %30 = vector.shape_cast %29 : vector<1x32x16xbf16> to vector<32x16xbf16>
    %c0_36 = arith.constant 0 : index
    %c6 = arith.constant 6 : index
    %c0_37 = arith.constant 0 : index
    %c0_38 = arith.constant 0 : index
    %31 = vector.load %arg2[%c0_36, %c6, %c0_37, %c0_38] : memref<1x16x16x64xbf16, #tpu.memory_space<vmem>>, vector<1x1x16x64xbf16>
    %32 = vector.shape_cast %31 : vector<1x1x16x64xbf16> to vector<16x64xbf16>
    %cst_39 = arith.constant dense<0.000000e+00> : vector<32x64xf32>
    %33 = tpu.matmul %30, %32, %cst_39 {dimension_numbers = #tpu.dot_dimension_numbers<[1], [0], [0], [1], [0, 0, 1, 1], [], []>} : vector<32x16xbf16>, vector<16x64xbf16>, vector<32x64xf32> -> vector<32x64xf32>
    %34 = arith.addf %28, %33 : vector<32x64xf32>
    %c6_40 = arith.constant 6 : index
    %c0_41 = arith.constant 0 : index
    %c0_42 = arith.constant 0 : index
    %35 = vector.load %arg3[%c6_40, %c0_41, %c0_42] : memref<9x32x16xbf16, #tpu.memory_space<vmem>>, vector<1x32x16xbf16>
    %36 = vector.shape_cast %35 : vector<1x32x16xbf16> to vector<32x16xbf16>
    %c0_43 = arith.constant 0 : index
    %c8 = arith.constant 8 : index
    %c0_44 = arith.constant 0 : index
    %c0_45 = arith.constant 0 : index
    %37 = vector.load %arg2[%c0_43, %c8, %c0_44, %c0_45] : memref<1x16x16x64xbf16, #tpu.memory_space<vmem>>, vector<1x1x16x64xbf16>
    %38 = vector.shape_cast %37 : vector<1x1x16x64xbf16> to vector<16x64xbf16>
    %cst_46 = arith.constant dense<0.000000e+00> : vector<32x64xf32>
    %39 = tpu.matmul %36, %38, %cst_46 {dimension_numbers = #tpu.dot_dimension_numbers<[1], [0], [0], [1], [0, 0, 1, 1], [], []>} : vector<32x16xbf16>, vector<16x64xbf16>, vector<32x64xf32> -> vector<32x64xf32>
    %40 = arith.addf %34, %39 : vector<32x64xf32>
    %c7 = arith.constant 7 : index
    %c0_47 = arith.constant 0 : index
    %c0_48 = arith.constant 0 : index
    %41 = vector.load %arg3[%c7, %c0_47, %c0_48] : memref<9x32x16xbf16, #tpu.memory_space<vmem>>, vector<1x32x16xbf16>
    %42 = vector.shape_cast %41 : vector<1x32x16xbf16> to vector<32x16xbf16>
    %c0_49 = arith.constant 0 : index
    %c9 = arith.constant 9 : index
    %c0_50 = arith.constant 0 : index
    %c0_51 = arith.constant 0 : index
    %43 = vector.load %arg2[%c0_49, %c9, %c0_50, %c0_51] : memref<1x16x16x64xbf16, #tpu.memory_space<vmem>>, vector<1x1x16x64xbf16>
    %44 = vector.shape_cast %43 : vector<1x1x16x64xbf16> to vector<16x64xbf16>
    %cst_52 = arith.constant dense<0.000000e+00> : vector<32x64xf32>
    %45 = tpu.matmul %42, %44, %cst_52 {dimension_numbers = #tpu.dot_dimension_numbers<[1], [0], [0], [1], [0, 0, 1, 1], [], []>} : vector<32x16xbf16>, vector<16x64xbf16>, vector<32x64xf32> -> vector<32x64xf32>
    %46 = arith.addf %40, %45 : vector<32x64xf32>
    %c8_53 = arith.constant 8 : index
    %c0_54 = arith.constant 0 : index
    %c0_55 = arith.constant 0 : index
    %47 = vector.load %arg3[%c8_53, %c0_54, %c0_55] : memref<9x32x16xbf16, #tpu.memory_space<vmem>>, vector<1x32x16xbf16>
    %48 = vector.shape_cast %47 : vector<1x32x16xbf16> to vector<32x16xbf16>
    %c0_56 = arith.constant 0 : index
    %c10 = arith.constant 10 : index
    %c0_57 = arith.constant 0 : index
    %c0_58 = arith.constant 0 : index
    %49 = vector.load %arg2[%c0_56, %c10, %c0_57, %c0_58] : memref<1x16x16x64xbf16, #tpu.memory_space<vmem>>, vector<1x1x16x64xbf16>
    %50 = vector.shape_cast %49 : vector<1x1x16x64xbf16> to vector<16x64xbf16>
    %cst_59 = arith.constant dense<0.000000e+00> : vector<32x64xf32>
    %51 = tpu.matmul %48, %50, %cst_59 {dimension_numbers = #tpu.dot_dimension_numbers<[1], [0], [0], [1], [0, 0, 1, 1], [], []>} : vector<32x16xbf16>, vector<16x64xbf16>, vector<32x64xf32> -> vector<32x64xf32>
    %52 = arith.addf %46, %51 : vector<32x64xf32>
    %c0_60 = arith.constant 0 : index
    %c0_61 = arith.constant 0 : index
    %c0_62 = arith.constant 0 : index
    %53 = vector.load %arg3[%c0_60, %c0_61, %c0_62] : memref<9x32x16xbf16, #tpu.memory_space<vmem>>, vector<1x32x16xbf16>
    %54 = vector.shape_cast %53 : vector<1x32x16xbf16> to vector<32x16xbf16>
    %c0_63 = arith.constant 0 : index
    %c1_64 = arith.constant 1 : index
    %c0_65 = arith.constant 0 : index
    %c0_66 = arith.constant 0 : index
    %55 = vector.load %arg2[%c0_63, %c1_64, %c0_65, %c0_66] : memref<1x16x16x64xbf16, #tpu.memory_space<vmem>>, vector<1x1x16x64xbf16>
    %56 = vector.shape_cast %55 : vector<1x1x16x64xbf16> to vector<16x64xbf16>
    %cst_67 = arith.constant dense<0.000000e+00> : vector<32x64xf32>
    %57 = tpu.matmul %54, %56, %cst_67 {dimension_numbers = #tpu.dot_dimension_numbers<[1], [0], [0], [1], [0, 0, 1, 1], [], []>} : vector<32x16xbf16>, vector<16x64xbf16>, vector<32x64xf32> -> vector<32x64xf32>
    %c1_68 = arith.constant 1 : index
    %c0_69 = arith.constant 0 : index
    %c0_70 = arith.constant 0 : index
    %58 = vector.load %arg3[%c1_68, %c0_69, %c0_70] : memref<9x32x16xbf16, #tpu.memory_space<vmem>>, vector<1x32x16xbf16>
    %59 = vector.shape_cast %58 : vector<1x32x16xbf16> to vector<32x16xbf16>
    %c0_71 = arith.constant 0 : index
    %c2_72 = arith.constant 2 : index
    %c0_73 = arith.constant 0 : index
    %c0_74 = arith.constant 0 : index
    %60 = vector.load %arg2[%c0_71, %c2_72, %c0_73, %c0_74] : memref<1x16x16x64xbf16, #tpu.memory_space<vmem>>, vector<1x1x16x64xbf16>
    %61 = vector.shape_cast %60 : vector<1x1x16x64xbf16> to vector<16x64xbf16>
    %cst_75 = arith.constant dense<0.000000e+00> : vector<32x64xf32>
    %62 = tpu.matmul %59, %61, %cst_75 {dimension_numbers = #tpu.dot_dimension_numbers<[1], [0], [0], [1], [0, 0, 1, 1], [], []>} : vector<32x16xbf16>, vector<16x64xbf16>, vector<32x64xf32> -> vector<32x64xf32>
    %63 = arith.addf %57, %62 : vector<32x64xf32>
    %c2_76 = arith.constant 2 : index
    %c0_77 = arith.constant 0 : index
    %c0_78 = arith.constant 0 : index
    %64 = vector.load %arg3[%c2_76, %c0_77, %c0_78] : memref<9x32x16xbf16, #tpu.memory_space<vmem>>, vector<1x32x16xbf16>
    %65 = vector.shape_cast %64 : vector<1x32x16xbf16> to vector<32x16xbf16>
    %c0_79 = arith.constant 0 : index
    %c3_80 = arith.constant 3 : index
    %c0_81 = arith.constant 0 : index
    %c0_82 = arith.constant 0 : index
    %66 = vector.load %arg2[%c0_79, %c3_80, %c0_81, %c0_82] : memref<1x16x16x64xbf16, #tpu.memory_space<vmem>>, vector<1x1x16x64xbf16>
    %67 = vector.shape_cast %66 : vector<1x1x16x64xbf16> to vector<16x64xbf16>
    %cst_83 = arith.constant dense<0.000000e+00> : vector<32x64xf32>
    %68 = tpu.matmul %65, %67, %cst_83 {dimension_numbers = #tpu.dot_dimension_numbers<[1], [0], [0], [1], [0, 0, 1, 1], [], []>} : vector<32x16xbf16>, vector<16x64xbf16>, vector<32x64xf32> -> vector<32x64xf32>
    %69 = arith.addf %63, %68 : vector<32x64xf32>
    %c3_84 = arith.constant 3 : index
    %c0_85 = arith.constant 0 : index
    %c0_86 = arith.constant 0 : index
    %70 = vector.load %arg3[%c3_84, %c0_85, %c0_86] : memref<9x32x16xbf16, #tpu.memory_space<vmem>>, vector<1x32x16xbf16>
    %71 = vector.shape_cast %70 : vector<1x32x16xbf16> to vector<32x16xbf16>
    %c0_87 = arith.constant 0 : index
    %c5_88 = arith.constant 5 : index
    %c0_89 = arith.constant 0 : index
    %c0_90 = arith.constant 0 : index
    %72 = vector.load %arg2[%c0_87, %c5_88, %c0_89, %c0_90] : memref<1x16x16x64xbf16, #tpu.memory_space<vmem>>, vector<1x1x16x64xbf16>
    %73 = vector.shape_cast %72 : vector<1x1x16x64xbf16> to vector<16x64xbf16>
    %cst_91 = arith.constant dense<0.000000e+00> : vector<32x64xf32>
    %74 = tpu.matmul %71, %73, %cst_91 {dimension_numbers = #tpu.dot_dimension_numbers<[1], [0], [0], [1], [0, 0, 1, 1], [], []>} : vector<32x16xbf16>, vector<16x64xbf16>, vector<32x64xf32> -> vector<32x64xf32>
    %75 = arith.addf %69, %74 : vector<32x64xf32>
    %c4_92 = arith.constant 4 : index
    %c0_93 = arith.constant 0 : index
    %c0_94 = arith.constant 0 : index
    %76 = vector.load %arg3[%c4_92, %c0_93, %c0_94] : memref<9x32x16xbf16, #tpu.memory_space<vmem>>, vector<1x32x16xbf16>
    %77 = vector.shape_cast %76 : vector<1x32x16xbf16> to vector<32x16xbf16>
    %c0_95 = arith.constant 0 : index
    %c6_96 = arith.constant 6 : index
    %c0_97 = arith.constant 0 : index
    %c0_98 = arith.constant 0 : index
    %78 = vector.load %arg2[%c0_95, %c6_96, %c0_97, %c0_98] : memref<1x16x16x64xbf16, #tpu.memory_space<vmem>>, vector<1x1x16x64xbf16>
    %79 = vector.shape_cast %78 : vector<1x1x16x64xbf16> to vector<16x64xbf16>
    %cst_99 = arith.constant dense<0.000000e+00> : vector<32x64xf32>
    %80 = tpu.matmul %77, %79, %cst_99 {dimension_numbers = #tpu.dot_dimension_numbers<[1], [0], [0], [1], [0, 0, 1, 1], [], []>} : vector<32x16xbf16>, vector<16x64xbf16>, vector<32x64xf32> -> vector<32x64xf32>
    %81 = arith.addf %75, %80 : vector<32x64xf32>
    %c5_100 = arith.constant 5 : index
    %c0_101 = arith.constant 0 : index
    %c0_102 = arith.constant 0 : index
    %82 = vector.load %arg3[%c5_100, %c0_101, %c0_102] : memref<9x32x16xbf16, #tpu.memory_space<vmem>>, vector<1x32x16xbf16>
    %83 = vector.shape_cast %82 : vector<1x32x16xbf16> to vector<32x16xbf16>
    %c0_103 = arith.constant 0 : index
    %c7_104 = arith.constant 7 : index
    %c0_105 = arith.constant 0 : index
    %c0_106 = arith.constant 0 : index
    %84 = vector.load %arg2[%c0_103, %c7_104, %c0_105, %c0_106] : memref<1x16x16x64xbf16, #tpu.memory_space<vmem>>, vector<1x1x16x64xbf16>
    %85 = vector.shape_cast %84 : vector<1x1x16x64xbf16> to vector<16x64xbf16>
    %cst_107 = arith.constant dense<0.000000e+00> : vector<32x64xf32>
    %86 = tpu.matmul %83, %85, %cst_107 {dimension_numbers = #tpu.dot_dimension_numbers<[1], [0], [0], [1], [0, 0, 1, 1], [], []>} : vector<32x16xbf16>, vector<16x64xbf16>, vector<32x64xf32> -> vector<32x64xf32>
    %87 = arith.addf %81, %86 : vector<32x64xf32>
    %c6_108 = arith.constant 6 : index
    %c0_109 = arith.constant 0 : index
    %c0_110 = arith.constant 0 : index
    %88 = vector.load %arg3[%c6_108, %c0_109, %c0_110] : memref<9x32x16xbf16, #tpu.memory_space<vmem>>, vector<1x32x16xbf16>
    %89 = vector.shape_cast %88 : vector<1x32x16xbf16> to vector<32x16xbf16>
    %c0_111 = arith.constant 0 : index
    %c9_112 = arith.constant 9 : index
    %c0_113 = arith.constant 0 : index
    %c0_114 = arith.constant 0 : index
    %90 = vector.load %arg2[%c0_111, %c9_112, %c0_113, %c0_114] : memref<1x16x16x64xbf16, #tpu.memory_space<vmem>>, vector<1x1x16x64xbf16>
    %91 = vector.shape_cast %90 : vector<1x1x16x64xbf16> to vector<16x64xbf16>
    %cst_115 = arith.constant dense<0.000000e+00> : vector<32x64xf32>
    %92 = tpu.matmul %89, %91, %cst_115 {dimension_numbers = #tpu.dot_dimension_numbers<[1], [0], [0], [1], [0, 0, 1, 1], [], []>} : vector<32x16xbf16>, vector<16x64xbf16>, vector<32x64xf32> -> vector<32x64xf32>
    %93 = arith.addf %87, %92 : vector<32x64xf32>
    %c7_116 = arith.constant 7 : index
    %c0_117 = arith.constant 0 : index
    %c0_118 = arith.constant 0 : index
    %94 = vector.load %arg3[%c7_116, %c0_117, %c0_118] : memref<9x32x16xbf16, #tpu.memory_space<vmem>>, vector<1x32x16xbf16>
    %95 = vector.shape_cast %94 : vector<1x32x16xbf16> to vector<32x16xbf16>
    %c0_119 = arith.constant 0 : index
    %c10_120 = arith.constant 10 : index
    %c0_121 = arith.constant 0 : index
    %c0_122 = arith.constant 0 : index
    %96 = vector.load %arg2[%c0_119, %c10_120, %c0_121, %c0_122] : memref<1x16x16x64xbf16, #tpu.memory_space<vmem>>, vector<1x1x16x64xbf16>
    %97 = vector.shape_cast %96 : vector<1x1x16x64xbf16> to vector<16x64xbf16>
    %cst_123 = arith.constant dense<0.000000e+00> : vector<32x64xf32>
    %98 = tpu.matmul %95, %97, %cst_123 {dimension_numbers = #tpu.dot_dimension_numbers<[1], [0], [0], [1], [0, 0, 1, 1], [], []>} : vector<32x16xbf16>, vector<16x64xbf16>, vector<32x64xf32> -> vector<32x64xf32>
    %99 = arith.addf %93, %98 : vector<32x64xf32>
    %c8_124 = arith.constant 8 : index
    %c0_125 = arith.constant 0 : index
    %c0_126 = arith.constant 0 : index
    %100 = vector.load %arg3[%c8_124, %c0_125, %c0_126] : memref<9x32x16xbf16, #tpu.memory_space<vmem>>, vector<1x32x16xbf16>
    %101 = vector.shape_cast %100 : vector<1x32x16xbf16> to vector<32x16xbf16>
    %c0_127 = arith.constant 0 : index
    %c11 = arith.constant 11 : index
    %c0_128 = arith.constant 0 : index
    %c0_129 = arith.constant 0 : index
    %102 = vector.load %arg2[%c0_127, %c11, %c0_128, %c0_129] : memref<1x16x16x64xbf16, #tpu.memory_space<vmem>>, vector<1x1x16x64xbf16>
    %103 = vector.shape_cast %102 : vector<1x1x16x64xbf16> to vector<16x64xbf16>
    %cst_130 = arith.constant dense<0.000000e+00> : vector<32x64xf32>
    %104 = tpu.matmul %101, %103, %cst_130 {dimension_numbers = #tpu.dot_dimension_numbers<[1], [0], [0], [1], [0, 0, 1, 1], [], []>} : vector<32x16xbf16>, vector<16x64xbf16>, vector<32x64xf32> -> vector<32x64xf32>
    %105 = arith.addf %99, %104 : vector<32x64xf32>
    %106 = arith.maximumf %52, %105 : vector<32x64xf32>
    %c0_131 = arith.constant 0 : index
    %c0_132 = arith.constant 0 : index
    %c0_133 = arith.constant 0 : index
    %107 = vector.load %arg3[%c0_131, %c0_132, %c0_133] : memref<9x32x16xbf16, #tpu.memory_space<vmem>>, vector<1x32x16xbf16>
    %108 = vector.shape_cast %107 : vector<1x32x16xbf16> to vector<32x16xbf16>
    %c0_134 = arith.constant 0 : index
    %c4_135 = arith.constant 4 : index
    %c0_136 = arith.constant 0 : index
    %c0_137 = arith.constant 0 : index
    %109 = vector.load %arg2[%c0_134, %c4_135, %c0_136, %c0_137] : memref<1x16x16x64xbf16, #tpu.memory_space<vmem>>, vector<1x1x16x64xbf16>
    %110 = vector.shape_cast %109 : vector<1x1x16x64xbf16> to vector<16x64xbf16>
    %cst_138 = arith.constant dense<0.000000e+00> : vector<32x64xf32>
    %111 = tpu.matmul %108, %110, %cst_138 {dimension_numbers = #tpu.dot_dimension_numbers<[1], [0], [0], [1], [0, 0, 1, 1], [], []>} : vector<32x16xbf16>, vector<16x64xbf16>, vector<32x64xf32> -> vector<32x64xf32>
    %c1_139 = arith.constant 1 : index
    %c0_140 = arith.constant 0 : index
    %c0_141 = arith.constant 0 : index
    %112 = vector.load %arg3[%c1_139, %c0_140, %c0_141] : memref<9x32x16xbf16, #tpu.memory_space<vmem>>, vector<1x32x16xbf16>
    %113 = vector.shape_cast %112 : vector<1x32x16xbf16> to vector<32x16xbf16>
    %c0_142 = arith.constant 0 : index
    %c5_143 = arith.constant 5 : index
    %c0_144 = arith.constant 0 : index
    %c0_145 = arith.constant 0 : index
    %114 = vector.load %arg2[%c0_142, %c5_143, %c0_144, %c0_145] : memref<1x16x16x64xbf16, #tpu.memory_space<vmem>>, vector<1x1x16x64xbf16>
    %115 = vector.shape_cast %114 : vector<1x1x16x64xbf16> to vector<16x64xbf16>
    %cst_146 = arith.constant dense<0.000000e+00> : vector<32x64xf32>
    %116 = tpu.matmul %113, %115, %cst_146 {dimension_numbers = #tpu.dot_dimension_numbers<[1], [0], [0], [1], [0, 0, 1, 1], [], []>} : vector<32x16xbf16>, vector<16x64xbf16>, vector<32x64xf32> -> vector<32x64xf32>
    %117 = arith.addf %111, %116 : vector<32x64xf32>
    %c2_147 = arith.constant 2 : index
    %c0_148 = arith.constant 0 : index
    %c0_149 = arith.constant 0 : index
    %118 = vector.load %arg3[%c2_147, %c0_148, %c0_149] : memref<9x32x16xbf16, #tpu.memory_space<vmem>>, vector<1x32x16xbf16>
    %119 = vector.shape_cast %118 : vector<1x32x16xbf16> to vector<32x16xbf16>
    %c0_150 = arith.constant 0 : index
    %c6_151 = arith.constant 6 : index
    %c0_152 = arith.constant 0 : index
    %c0_153 = arith.constant 0 : index
    %120 = vector.load %arg2[%c0_150, %c6_151, %c0_152, %c0_153] : memref<1x16x16x64xbf16, #tpu.memory_space<vmem>>, vector<1x1x16x64xbf16>
    %121 = vector.shape_cast %120 : vector<1x1x16x64xbf16> to vector<16x64xbf16>
    %cst_154 = arith.constant dense<0.000000e+00> : vector<32x64xf32>
    %122 = tpu.matmul %119, %121, %cst_154 {dimension_numbers = #tpu.dot_dimension_numbers<[1], [0], [0], [1], [0, 0, 1, 1], [], []>} : vector<32x16xbf16>, vector<16x64xbf16>, vector<32x64xf32> -> vector<32x64xf32>
    %123 = arith.addf %117, %122 : vector<32x64xf32>
    %c3_155 = arith.constant 3 : index
    %c0_156 = arith.constant 0 : index
    %c0_157 = arith.constant 0 : index
    %124 = vector.load %arg3[%c3_155, %c0_156, %c0_157] : memref<9x32x16xbf16, #tpu.memory_space<vmem>>, vector<1x32x16xbf16>
    %125 = vector.shape_cast %124 : vector<1x32x16xbf16> to vector<32x16xbf16>
    %c0_158 = arith.constant 0 : index
    %c8_159 = arith.constant 8 : index
    %c0_160 = arith.constant 0 : index
    %c0_161 = arith.constant 0 : index
    %126 = vector.load %arg2[%c0_158, %c8_159, %c0_160, %c0_161] : memref<1x16x16x64xbf16, #tpu.memory_space<vmem>>, vector<1x1x16x64xbf16>
    %127 = vector.shape_cast %126 : vector<1x1x16x64xbf16> to vector<16x64xbf16>
    %cst_162 = arith.constant dense<0.000000e+00> : vector<32x64xf32>
    %128 = tpu.matmul %125, %127, %cst_162 {dimension_numbers = #tpu.dot_dimension_numbers<[1], [0], [0], [1], [0, 0, 1, 1], [], []>} : vector<32x16xbf16>, vector<16x64xbf16>, vector<32x64xf32> -> vector<32x64xf32>
    %129 = arith.addf %123, %128 : vector<32x64xf32>
    %c4_163 = arith.constant 4 : index
    %c0_164 = arith.constant 0 : index
    %c0_165 = arith.constant 0 : index
    %130 = vector.load %arg3[%c4_163, %c0_164, %c0_165] : memref<9x32x16xbf16, #tpu.memory_space<vmem>>, vector<1x32x16xbf16>
    %131 = vector.shape_cast %130 : vector<1x32x16xbf16> to vector<32x16xbf16>
    %c0_166 = arith.constant 0 : index
    %c9_167 = arith.constant 9 : index
    %c0_168 = arith.constant 0 : index
    %c0_169 = arith.constant 0 : index
    %132 = vector.load %arg2[%c0_166, %c9_167, %c0_168, %c0_169] : memref<1x16x16x64xbf16, #tpu.memory_space<vmem>>, vector<1x1x16x64xbf16>
    %133 = vector.shape_cast %132 : vector<1x1x16x64xbf16> to vector<16x64xbf16>
    %cst_170 = arith.constant dense<0.000000e+00> : vector<32x64xf32>
    %134 = tpu.matmul %131, %133, %cst_170 {dimension_numbers = #tpu.dot_dimension_numbers<[1], [0], [0], [1], [0, 0, 1, 1], [], []>} : vector<32x16xbf16>, vector<16x64xbf16>, vector<32x64xf32> -> vector<32x64xf32>
    %135 = arith.addf %129, %134 : vector<32x64xf32>
    %c5_171 = arith.constant 5 : index
    %c0_172 = arith.constant 0 : index
    %c0_173 = arith.constant 0 : index
    %136 = vector.load %arg3[%c5_171, %c0_172, %c0_173] : memref<9x32x16xbf16, #tpu.memory_space<vmem>>, vector<1x32x16xbf16>
    %137 = vector.shape_cast %136 : vector<1x32x16xbf16> to vector<32x16xbf16>
    %c0_174 = arith.constant 0 : index
    %c10_175 = arith.constant 10 : index
    %c0_176 = arith.constant 0 : index
    %c0_177 = arith.constant 0 : index
    %138 = vector.load %arg2[%c0_174, %c10_175, %c0_176, %c0_177] : memref<1x16x16x64xbf16, #tpu.memory_space<vmem>>, vector<1x1x16x64xbf16>
    %139 = vector.shape_cast %138 : vector<1x1x16x64xbf16> to vector<16x64xbf16>
    %cst_178 = arith.constant dense<0.000000e+00> : vector<32x64xf32>
    %140 = tpu.matmul %137, %139, %cst_178 {dimension_numbers = #tpu.dot_dimension_numbers<[1], [0], [0], [1], [0, 0, 1, 1], [], []>} : vector<32x16xbf16>, vector<16x64xbf16>, vector<32x64xf32> -> vector<32x64xf32>
    %141 = arith.addf %135, %140 : vector<32x64xf32>
    %c6_179 = arith.constant 6 : index
    %c0_180 = arith.constant 0 : index
    %c0_181 = arith.constant 0 : index
    %142 = vector.load %arg3[%c6_179, %c0_180, %c0_181] : memref<9x32x16xbf16, #tpu.memory_space<vmem>>, vector<1x32x16xbf16>
    %143 = vector.shape_cast %142 : vector<1x32x16xbf16> to vector<32x16xbf16>
    %c0_182 = arith.constant 0 : index
    %c12 = arith.constant 12 : index
    %c0_183 = arith.constant 0 : index
    %c0_184 = arith.constant 0 : index
    %144 = vector.load %arg2[%c0_182, %c12, %c0_183, %c0_184] : memref<1x16x16x64xbf16, #tpu.memory_space<vmem>>, vector<1x1x16x64xbf16>
    %145 = vector.shape_cast %144 : vector<1x1x16x64xbf16> to vector<16x64xbf16>
    %cst_185 = arith.constant dense<0.000000e+00> : vector<32x64xf32>
    %146 = tpu.matmul %143, %145, %cst_185 {dimension_numbers = #tpu.dot_dimension_numbers<[1], [0], [0], [1], [0, 0, 1, 1], [], []>} : vector<32x16xbf16>, vector<16x64xbf16>, vector<32x64xf32> -> vector<32x64xf32>
    %147 = arith.addf %141, %146 : vector<32x64xf32>
    %c7_186 = arith.constant 7 : index
    %c0_187 = arith.constant 0 : index
    %c0_188 = arith.constant 0 : index
    %148 = vector.load %arg3[%c7_186, %c0_187, %c0_188] : memref<9x32x16xbf16, #tpu.memory_space<vmem>>, vector<1x32x16xbf16>
    %149 = vector.shape_cast %148 : vector<1x32x16xbf16> to vector<32x16xbf16>
    %c0_189 = arith.constant 0 : index
    %c13 = arith.constant 13 : index
    %c0_190 = arith.constant 0 : index
    %c0_191 = arith.constant 0 : index
    %150 = vector.load %arg2[%c0_189, %c13, %c0_190, %c0_191] : memref<1x16x16x64xbf16, #tpu.memory_space<vmem>>, vector<1x1x16x64xbf16>
    %151 = vector.shape_cast %150 : vector<1x1x16x64xbf16> to vector<16x64xbf16>
    %cst_192 = arith.constant dense<0.000000e+00> : vector<32x64xf32>
    %152 = tpu.matmul %149, %151, %cst_192 {dimension_numbers = #tpu.dot_dimension_numbers<[1], [0], [0], [1], [0, 0, 1, 1], [], []>} : vector<32x16xbf16>, vector<16x64xbf16>, vector<32x64xf32> -> vector<32x64xf32>
    %153 = arith.addf %147, %152 : vector<32x64xf32>
    %c8_193 = arith.constant 8 : index
    %c0_194 = arith.constant 0 : index
    %c0_195 = arith.constant 0 : index
    %154 = vector.load %arg3[%c8_193, %c0_194, %c0_195] : memref<9x32x16xbf16, #tpu.memory_space<vmem>>, vector<1x32x16xbf16>
    %155 = vector.shape_cast %154 : vector<1x32x16xbf16> to vector<32x16xbf16>
    %c0_196 = arith.constant 0 : index
    %c14 = arith.constant 14 : index
    %c0_197 = arith.constant 0 : index
    %c0_198 = arith.constant 0 : index
    %156 = vector.load %arg2[%c0_196, %c14, %c0_197, %c0_198] : memref<1x16x16x64xbf16, #tpu.memory_space<vmem>>, vector<1x1x16x64xbf16>
    %157 = vector.shape_cast %156 : vector<1x1x16x64xbf16> to vector<16x64xbf16>
    %cst_199 = arith.constant dense<0.000000e+00> : vector<32x64xf32>
    %158 = tpu.matmul %155, %157, %cst_199 {dimension_numbers = #tpu.dot_dimension_numbers<[1], [0], [0], [1], [0, 0, 1, 1], [], []>} : vector<32x16xbf16>, vector<16x64xbf16>, vector<32x64xf32> -> vector<32x64xf32>
    %159 = arith.addf %153, %158 : vector<32x64xf32>
    %160 = arith.maximumf %106, %159 : vector<32x64xf32>
    %c0_200 = arith.constant 0 : index
    %c0_201 = arith.constant 0 : index
    %c0_202 = arith.constant 0 : index
    %161 = vector.load %arg3[%c0_200, %c0_201, %c0_202] : memref<9x32x16xbf16, #tpu.memory_space<vmem>>, vector<1x32x16xbf16>
    %162 = vector.shape_cast %161 : vector<1x32x16xbf16> to vector<32x16xbf16>
    %c0_203 = arith.constant 0 : index
    %c5_204 = arith.constant 5 : index
    %c0_205 = arith.constant 0 : index
    %c0_206 = arith.constant 0 : index
    %163 = vector.load %arg2[%c0_203, %c5_204, %c0_205, %c0_206] : memref<1x16x16x64xbf16, #tpu.memory_space<vmem>>, vector<1x1x16x64xbf16>
    %164 = vector.shape_cast %163 : vector<1x1x16x64xbf16> to vector<16x64xbf16>
    %cst_207 = arith.constant dense<0.000000e+00> : vector<32x64xf32>
    %165 = tpu.matmul %162, %164, %cst_207 {dimension_numbers = #tpu.dot_dimension_numbers<[1], [0], [0], [1], [0, 0, 1, 1], [], []>} : vector<32x16xbf16>, vector<16x64xbf16>, vector<32x64xf32> -> vector<32x64xf32>
    %c1_208 = arith.constant 1 : index
    %c0_209 = arith.constant 0 : index
    %c0_210 = arith.constant 0 : index
    %166 = vector.load %arg3[%c1_208, %c0_209, %c0_210] : memref<9x32x16xbf16, #tpu.memory_space<vmem>>, vector<1x32x16xbf16>
    %167 = vector.shape_cast %166 : vector<1x32x16xbf16> to vector<32x16xbf16>
    %c0_211 = arith.constant 0 : index
    %c6_212 = arith.constant 6 : index
    %c0_213 = arith.constant 0 : index
    %c0_214 = arith.constant 0 : index
    %168 = vector.load %arg2[%c0_211, %c6_212, %c0_213, %c0_214] : memref<1x16x16x64xbf16, #tpu.memory_space<vmem>>, vector<1x1x16x64xbf16>
    %169 = vector.shape_cast %168 : vector<1x1x16x64xbf16> to vector<16x64xbf16>
    %cst_215 = arith.constant dense<0.000000e+00> : vector<32x64xf32>
    %170 = tpu.matmul %167, %169, %cst_215 {dimension_numbers = #tpu.dot_dimension_numbers<[1], [0], [0], [1], [0, 0, 1, 1], [], []>} : vector<32x16xbf16>, vector<16x64xbf16>, vector<32x64xf32> -> vector<32x64xf32>
    %171 = arith.addf %165, %170 : vector<32x64xf32>
    %c2_216 = arith.constant 2 : index
    %c0_217 = arith.constant 0 : index
    %c0_218 = arith.constant 0 : index
    %172 = vector.load %arg3[%c2_216, %c0_217, %c0_218] : memref<9x32x16xbf16, #tpu.memory_space<vmem>>, vector<1x32x16xbf16>
    %173 = vector.shape_cast %172 : vector<1x32x16xbf16> to vector<32x16xbf16>
    %c0_219 = arith.constant 0 : index
    %c7_220 = arith.constant 7 : index
    %c0_221 = arith.constant 0 : index
    %c0_222 = arith.constant 0 : index
    %174 = vector.load %arg2[%c0_219, %c7_220, %c0_221, %c0_222] : memref<1x16x16x64xbf16, #tpu.memory_space<vmem>>, vector<1x1x16x64xbf16>
    %175 = vector.shape_cast %174 : vector<1x1x16x64xbf16> to vector<16x64xbf16>
    %cst_223 = arith.constant dense<0.000000e+00> : vector<32x64xf32>
    %176 = tpu.matmul %173, %175, %cst_223 {dimension_numbers = #tpu.dot_dimension_numbers<[1], [0], [0], [1], [0, 0, 1, 1], [], []>} : vector<32x16xbf16>, vector<16x64xbf16>, vector<32x64xf32> -> vector<32x64xf32>
    %177 = arith.addf %171, %176 : vector<32x64xf32>
    %c3_224 = arith.constant 3 : index
    %c0_225 = arith.constant 0 : index
    %c0_226 = arith.constant 0 : index
    %178 = vector.load %arg3[%c3_224, %c0_225, %c0_226] : memref<9x32x16xbf16, #tpu.memory_space<vmem>>, vector<1x32x16xbf16>
    %179 = vector.shape_cast %178 : vector<1x32x16xbf16> to vector<32x16xbf16>
    %c0_227 = arith.constant 0 : index
    %c9_228 = arith.constant 9 : index
    %c0_229 = arith.constant 0 : index
    %c0_230 = arith.constant 0 : index
    %180 = vector.load %arg2[%c0_227, %c9_228, %c0_229, %c0_230] : memref<1x16x16x64xbf16, #tpu.memory_space<vmem>>, vector<1x1x16x64xbf16>
    %181 = vector.shape_cast %180 : vector<1x1x16x64xbf16> to vector<16x64xbf16>
    %cst_231 = arith.constant dense<0.000000e+00> : vector<32x64xf32>
    %182 = tpu.matmul %179, %181, %cst_231 {dimension_numbers = #tpu.dot_dimension_numbers<[1], [0], [0], [1], [0, 0, 1, 1], [], []>} : vector<32x16xbf16>, vector<16x64xbf16>, vector<32x64xf32> -> vector<32x64xf32>
    %183 = arith.addf %177, %182 : vector<32x64xf32>
    %c4_232 = arith.constant 4 : index
    %c0_233 = arith.constant 0 : index
    %c0_234 = arith.constant 0 : index
    %184 = vector.load %arg3[%c4_232, %c0_233, %c0_234] : memref<9x32x16xbf16, #tpu.memory_space<vmem>>, vector<1x32x16xbf16>
    %185 = vector.shape_cast %184 : vector<1x32x16xbf16> to vector<32x16xbf16>
    %c0_235 = arith.constant 0 : index
    %c10_236 = arith.constant 10 : index
    %c0_237 = arith.constant 0 : index
    %c0_238 = arith.constant 0 : index
    %186 = vector.load %arg2[%c0_235, %c10_236, %c0_237, %c0_238] : memref<1x16x16x64xbf16, #tpu.memory_space<vmem>>, vector<1x1x16x64xbf16>
    %187 = vector.shape_cast %186 : vector<1x1x16x64xbf16> to vector<16x64xbf16>
    %cst_239 = arith.constant dense<0.000000e+00> : vector<32x64xf32>
    %188 = tpu.matmul %185, %187, %cst_239 {dimension_numbers = #tpu.dot_dimension_numbers<[1], [0], [0], [1], [0, 0, 1, 1], [], []>} : vector<32x16xbf16>, vector<16x64xbf16>, vector<32x64xf32> -> vector<32x64xf32>
    %189 = arith.addf %183, %188 : vector<32x64xf32>
    %c5_240 = arith.constant 5 : index
    %c0_241 = arith.constant 0 : index
    %c0_242 = arith.constant 0 : index
    %190 = vector.load %arg3[%c5_240, %c0_241, %c0_242] : memref<9x32x16xbf16, #tpu.memory_space<vmem>>, vector<1x32x16xbf16>
    %191 = vector.shape_cast %190 : vector<1x32x16xbf16> to vector<32x16xbf16>
    %c0_243 = arith.constant 0 : index
    %c11_244 = arith.constant 11 : index
    %c0_245 = arith.constant 0 : index
    %c0_246 = arith.constant 0 : index
    %192 = vector.load %arg2[%c0_243, %c11_244, %c0_245, %c0_246] : memref<1x16x16x64xbf16, #tpu.memory_space<vmem>>, vector<1x1x16x64xbf16>
    %193 = vector.shape_cast %192 : vector<1x1x16x64xbf16> to vector<16x64xbf16>
    %cst_247 = arith.constant dense<0.000000e+00> : vector<32x64xf32>
    %194 = tpu.matmul %191, %193, %cst_247 {dimension_numbers = #tpu.dot_dimension_numbers<[1], [0], [0], [1], [0, 0, 1, 1], [], []>} : vector<32x16xbf16>, vector<16x64xbf16>, vector<32x64xf32> -> vector<32x64xf32>
    %195 = arith.addf %189, %194 : vector<32x64xf32>
    %c6_248 = arith.constant 6 : index
    %c0_249 = arith.constant 0 : index
    %c0_250 = arith.constant 0 : index
    %196 = vector.load %arg3[%c6_248, %c0_249, %c0_250] : memref<9x32x16xbf16, #tpu.memory_space<vmem>>, vector<1x32x16xbf16>
    %197 = vector.shape_cast %196 : vector<1x32x16xbf16> to vector<32x16xbf16>
    %c0_251 = arith.constant 0 : index
    %c13_252 = arith.constant 13 : index
    %c0_253 = arith.constant 0 : index
    %c0_254 = arith.constant 0 : index
    %198 = vector.load %arg2[%c0_251, %c13_252, %c0_253, %c0_254] : memref<1x16x16x64xbf16, #tpu.memory_space<vmem>>, vector<1x1x16x64xbf16>
    %199 = vector.shape_cast %198 : vector<1x1x16x64xbf16> to vector<16x64xbf16>
    %cst_255 = arith.constant dense<0.000000e+00> : vector<32x64xf32>
    %200 = tpu.matmul %197, %199, %cst_255 {dimension_numbers = #tpu.dot_dimension_numbers<[1], [0], [0], [1], [0, 0, 1, 1], [], []>} : vector<32x16xbf16>, vector<16x64xbf16>, vector<32x64xf32> -> vector<32x64xf32>
    %201 = arith.addf %195, %200 : vector<32x64xf32>
    %c7_256 = arith.constant 7 : index
    %c0_257 = arith.constant 0 : index
    %c0_258 = arith.constant 0 : index
    %202 = vector.load %arg3[%c7_256, %c0_257, %c0_258] : memref<9x32x16xbf16, #tpu.memory_space<vmem>>, vector<1x32x16xbf16>
    %203 = vector.shape_cast %202 : vector<1x32x16xbf16> to vector<32x16xbf16>
    %c0_259 = arith.constant 0 : index
    %c14_260 = arith.constant 14 : index
    %c0_261 = arith.constant 0 : index
    %c0_262 = arith.constant 0 : index
    %204 = vector.load %arg2[%c0_259, %c14_260, %c0_261, %c0_262] : memref<1x16x16x64xbf16, #tpu.memory_space<vmem>>, vector<1x1x16x64xbf16>
    %205 = vector.shape_cast %204 : vector<1x1x16x64xbf16> to vector<16x64xbf16>
    %cst_263 = arith.constant dense<0.000000e+00> : vector<32x64xf32>
    %206 = tpu.matmul %203, %205, %cst_263 {dimension_numbers = #tpu.dot_dimension_numbers<[1], [0], [0], [1], [0, 0, 1, 1], [], []>} : vector<32x16xbf16>, vector<16x64xbf16>, vector<32x64xf32> -> vector<32x64xf32>
    %207 = arith.addf %201, %206 : vector<32x64xf32>
    %c8_264 = arith.constant 8 : index
    %c0_265 = arith.constant 0 : index
    %c0_266 = arith.constant 0 : index
    %208 = vector.load %arg3[%c8_264, %c0_265, %c0_266] : memref<9x32x16xbf16, #tpu.memory_space<vmem>>, vector<1x32x16xbf16>
    %209 = vector.shape_cast %208 : vector<1x32x16xbf16> to vector<32x16xbf16>
    %c0_267 = arith.constant 0 : index
    %c15 = arith.constant 15 : index
    %c0_268 = arith.constant 0 : index
    %c0_269 = arith.constant 0 : index
    %210 = vector.load %arg2[%c0_267, %c15, %c0_268, %c0_269] : memref<1x16x16x64xbf16, #tpu.memory_space<vmem>>, vector<1x1x16x64xbf16>
    %211 = vector.shape_cast %210 : vector<1x1x16x64xbf16> to vector<16x64xbf16>
    %cst_270 = arith.constant dense<0.000000e+00> : vector<32x64xf32>
    %212 = tpu.matmul %209, %211, %cst_270 {dimension_numbers = #tpu.dot_dimension_numbers<[1], [0], [0], [1], [0, 0, 1, 1], [], []>} : vector<32x16xbf16>, vector<16x64xbf16>, vector<32x64xf32> -> vector<32x64xf32>
    %213 = arith.addf %207, %212 : vector<32x64xf32>
    %214 = arith.maximumf %160, %213 : vector<32x64xf32>
    %c0_271 = arith.constant 0 : index
    %c0_272 = arith.constant 0 : index
    %215 = vector.load %arg4[%c0_271, %c0_272] : memref<32x1xf32, #tpu.memory_space<vmem>>, vector<32x1xf32>
    %216 = vector.broadcast %215 : vector<32x1xf32> to vector<32x64xf32>
    %217 = arith.addf %214, %216 : vector<32x64xf32>
    %cst_273 = arith.constant 0.000000e+00 : f32
    %218 = vector.broadcast %cst_273 : f32 to vector<32x64xf32>
    %219 = arith.maximumf %217, %218 : vector<32x64xf32>
    %220 = arith.truncf %219 : vector<32x64xf32> to vector<32x64xbf16>
    %c0_274 = arith.constant 0 : index
    %c0_275 = arith.constant 0 : index
    %c0_276 = arith.constant 0 : index
    %221 = vector.load %arg5[%c0_274, %c0_275, %c0_276] : memref<1x32x64xbf16, #tpu.memory_space<vmem>>, vector<1x32x64xbf16>
    %222 = vector.shape_cast %221 : vector<1x32x64xbf16> to vector<32x64xbf16>
    %223 = vector.shape_cast %220 : vector<32x64xbf16> to vector<1x32x64xbf16>
    tpu.vector_store %arg5[%c0_274, %c0_275, %c0_276], %223 {strides = array<i32>} : memref<1x32x64xbf16, #tpu.memory_space<vmem>>, vector<1x32x64xbf16>,
    return
  }
  func.func @transform_0(%arg0: i32, %arg1: i32) -> (i32, i32, i32, i32) {
    %c0_i32 = arith.constant 0 : i32
    %c0_i32_0 = arith.constant 0 : i32
    %c0_i32_1 = arith.constant 0 : i32
    return %arg0, %c0_i32, %c0_i32_0, %arg1 : i32, i32, i32, i32
  }
  func.func @transform_1(%arg0: i32, %arg1: i32) -> (i32, i32, i32) {
    %c0_i32 = arith.constant 0 : i32
    %c0_i32_0 = arith.constant 0 : i32
    %c0_i32_1 = arith.constant 0 : i32
    %c0_i32_2 = arith.constant 0 : i32
    return %c0_i32, %c0_i32_0, %c0_i32_1 : i32, i32, i32
  }
  func.func @transform_2(%arg0: i32, %arg1: i32) -> (i32, i32) {
    %c0_i32 = arith.constant 0 : i32
    %c0_i32_0 = arith.constant 0 : i32
    %c0_i32_1 = arith.constant 0 : i32
    return %c0_i32, %c0_i32_0 : i32, i32
  }
  func.func @transform_3(%arg0: i32, %arg1: i32) -> (i32, i32, i32) {
    %c0_i32 = arith.constant 0 : i32
    %c0_i32_0 = arith.constant 0 : i32
    return %arg0, %c0_i32, %arg1 : i32, i32, i32
  }
}

module attributes {stable_mosaic.version = 11 : i64} {
  func.func @mlp_kernel(%arg0: i32, %arg1: memref<2x2048xbf16, #tpu.memory_space<vmem>>, %arg2: memref<2048x128xbf16, #tpu.memory_space<vmem>>, %arg3: memref<1x128xf32, #tpu.memory_space<vmem>>, %arg4: memref<128x4xbf16, #tpu.memory_space<vmem>>, %arg5: memref<1x4xf32, #tpu.memory_space<vmem>>, %arg6: memref<2x4xf32, #tpu.memory_space<vmem>>, %arg7: memref<2x128xf32, #tpu.memory_space<vmem>>) attributes {dimension_semantics = [#tpu.dimension_semantics<arbitrary>], iteration_bounds = array<i64: 1>, scalar_prefetch = 0 : i64, scratch_operands = 1 : i64, tpu.core_type = #tpu.core_type<tc>, window_params = [{transform_indices = @transform_0, window_bounds = array<i64: 2, 2048>}, {transform_indices = @transform_1, window_bounds = array<i64: 2048, 128>}, {pipeline_mode = #tpu.pipeline_mode<synchronous>, transform_indices = @transform_2, window_bounds = array<i64: 1, 128>}, {pipeline_mode = #tpu.pipeline_mode<synchronous>, transform_indices = @transform_3, window_bounds = array<i64: 128, 4>}, {pipeline_mode = #tpu.pipeline_mode<synchronous>, transform_indices = @transform_4, window_bounds = array<i64: 1, 4>}, {pipeline_mode = #tpu.pipeline_mode<synchronous>, transform_indices = @transform_5, window_bounds = array<i64: 2, 4>}]} {
    %c0_i32 = arith.constant 0 : i32
    %0 = arith.cmpi eq, %arg0, %c0_i32 : i32
    %1 = arith.extui %0 : i1 to i32
    %c0_i32_0 = arith.constant 0 : i32
    %2 = arith.cmpi ne, %1, %c0_i32_0 : i32
    scf.if %2 {
      %cst_10 = arith.constant 0.000000e+00 : f32
      %12 = vector.broadcast %cst_10 : f32 to vector<2x128xf32>
      %c0_11 = arith.constant 0 : index
      %c0_12 = arith.constant 0 : index
      %13 = vector.load %arg7[%c0_11, %c0_12] : memref<2x128xf32, #tpu.memory_space<vmem>>, vector<2x128xf32>
      tpu.vector_store %arg7[%c0_11, %c0_12], %12 {strides = array<i32>} : memref<2x128xf32, #tpu.memory_space<vmem>>, vector<2x128xf32>,
    } else {
    }
    %c0 = arith.constant 0 : index
    %c0_1 = arith.constant 0 : index
    %3 = vector.load %arg7[%c0, %c0_1] : memref<2x128xf32, #tpu.memory_space<vmem>>, vector<2x128xf32>
    %c0_2 = arith.constant 0 : index
    %c0_3 = arith.constant 0 : index
    %4 = vector.load %arg1[%c0_2, %c0_3] : memref<2x2048xbf16, #tpu.memory_space<vmem>>, vector<2x2048xbf16>
    %c0_4 = arith.constant 0 : index
    %c0_5 = arith.constant 0 : index
    %5 = vector.load %arg2[%c0_4, %c0_5] : memref<2048x128xbf16, #tpu.memory_space<vmem>>, vector<2048x128xbf16>
    %cst = arith.constant dense<0.000000e+00> : vector<2x128xf32>
    %6 = tpu.matmul %4, %5, %cst {dimension_numbers = #tpu.dot_dimension_numbers<[1], [0], [0], [1], [0, 0, 1, 1], [], []>} : vector<2x2048xbf16>, vector<2048x128xbf16>, vector<2x128xf32> -> vector<2x128xf32>
    %7 = arith.addf %3, %6 : vector<2x128xf32>
    %c0_6 = arith.constant 0 : index
    %c0_7 = arith.constant 0 : index
    %8 = vector.load %arg7[%c0_6, %c0_7] : memref<2x128xf32, #tpu.memory_space<vmem>>, vector<2x128xf32>
    tpu.vector_store %arg7[%c0_6, %c0_7], %7 {strides = array<i32>} : memref<2x128xf32, #tpu.memory_space<vmem>>, vector<2x128xf32>,
    %c0_i32_8 = arith.constant 0 : i32
    %9 = arith.cmpi eq, %arg0, %c0_i32_8 : i32
    %10 = arith.extui %9 : i1 to i32
    %c0_i32_9 = arith.constant 0 : i32
    %11 = arith.cmpi ne, %10, %c0_i32_9 : i32
    scf.if %11 {
      %c0_10 = arith.constant 0 : index
      %c0_11 = arith.constant 0 : index
      %12 = vector.load %arg7[%c0_10, %c0_11] : memref<2x128xf32, #tpu.memory_space<vmem>>, vector<2x128xf32>
      %c0_12 = arith.constant 0 : index
      %c0_13 = arith.constant 0 : index
      %13 = vector.load %arg3[%c0_12, %c0_13] : memref<1x128xf32, #tpu.memory_space<vmem>>, vector<1x128xf32>
      %14 = vector.broadcast %13 : vector<1x128xf32> to vector<2x128xf32>
      %15 = arith.addf %12, %14 : vector<2x128xf32>
      %cst_14 = arith.constant 0.000000e+00 : f32
      %16 = vector.broadcast %cst_14 : f32 to vector<2x128xf32>
      %17 = arith.maximumf %15, %16 : vector<2x128xf32>
      %18 = arith.truncf %17 : vector<2x128xf32> to vector<2x128xbf16>
      %c0_15 = arith.constant 0 : index
      %c0_16 = arith.constant 0 : index
      %19 = vector.load %arg4[%c0_15, %c0_16] : memref<128x4xbf16, #tpu.memory_space<vmem>>, vector<128x4xbf16>
      %cst_17 = arith.constant dense<0.000000e+00> : vector<2x4xf32>
      %20 = tpu.matmul %18, %19, %cst_17 {dimension_numbers = #tpu.dot_dimension_numbers<[1], [0], [0], [1], [0, 0, 1, 1], [], []>} : vector<2x128xbf16>, vector<128x4xbf16>, vector<2x4xf32> -> vector<2x4xf32>
      %c0_18 = arith.constant 0 : index
      %c0_19 = arith.constant 0 : index
      %21 = vector.load %arg5[%c0_18, %c0_19] : memref<1x4xf32, #tpu.memory_space<vmem>>, vector<1x4xf32>
      %22 = vector.broadcast %21 : vector<1x4xf32> to vector<2x4xf32>
      %23 = arith.addf %20, %22 : vector<2x4xf32>
      %c0_20 = arith.constant 0 : index
      %c0_21 = arith.constant 0 : index
      %24 = vector.load %arg6[%c0_20, %c0_21] : memref<2x4xf32, #tpu.memory_space<vmem>>, vector<2x4xf32>
      tpu.vector_store %arg6[%c0_20, %c0_21], %23 {strides = array<i32>} : memref<2x4xf32, #tpu.memory_space<vmem>>, vector<2x4xf32>,
    } else {
    }
    return
  }
  func.func @transform_0(%arg0: i32) -> (i32, i32) {
    %c0_i32 = arith.constant 0 : i32
    %c0_i32_0 = arith.constant 0 : i32
    return %c0_i32, %arg0 : i32, i32
  }
  func.func @transform_1(%arg0: i32) -> (i32, i32) {
    %c0_i32 = arith.constant 0 : i32
    %c0_i32_0 = arith.constant 0 : i32
    return %arg0, %c0_i32 : i32, i32
  }
  func.func @transform_2(%arg0: i32) -> (i32, i32) {
    %c0_i32 = arith.constant 0 : i32
    %c0_i32_0 = arith.constant 0 : i32
    %c0_i32_1 = arith.constant 0 : i32
    return %c0_i32, %c0_i32_0 : i32, i32
  }
  func.func @transform_3(%arg0: i32) -> (i32, i32) {
    %c0_i32 = arith.constant 0 : i32
    %c0_i32_0 = arith.constant 0 : i32
    %c0_i32_1 = arith.constant 0 : i32
    return %c0_i32, %c0_i32_0 : i32, i32
  }
  func.func @transform_4(%arg0: i32) -> (i32, i32) {
    %c0_i32 = arith.constant 0 : i32
    %c0_i32_0 = arith.constant 0 : i32
    %c0_i32_1 = arith.constant 0 : i32
    return %c0_i32, %c0_i32_0 : i32, i32
  }
  func.func @transform_5(%arg0: i32) -> (i32, i32) {
    %c0_i32 = arith.constant 0 : i32
    %c0_i32_0 = arith.constant 0 : i32
    %c0_i32_1 = arith.constant 0 : i32
    return %c0_i32, %c0_i32_0 : i32, i32
  }
}

</mosaic_0001>

<bundles_post_ra>
// kernel: brain_tumor_forward.3
= control target key start
LH: loop header
LB: loop body
LE: loop exit
PB: predicated region body
PF: predicated region fallthrough
CT: control target
= control target key end

     0   :  { %s2697_s12 = smov 0   ;;  %s2699_s13 = smov 0   ;;  %s3018_s0 = inlined_call_operand.vmem [shape: bf16[2,16,3,256], index: 0, kind: input, shape index: {}]   ;;  %s3019_s1 = inlined_call_operand.vmem [shape: bf16[9,16,3], index: 1, kind: input, shape index: {}]   ;;  %s3020_s2 = inlined_call_operand.vmem [shape: f32[16,1], index: 2, kind: input, shape index: {}]   ;;  %s3021_s3 = inlined_call_operand.vmem [shape: bf16[2,16,256], index: 3, kind: output, shape index: {}]  }
   0x1   :  { %s2701_s14 = smov 0  }
   0x2 LB: > { %s25_s15 = sadd.s32 1, %s2669_s13  ;;  %p2382_p0 = scmp.ge.s32.totalorder %s2673_s14, 1  ;;  %s2673_s14 = sphi %s2701_s14, %s13_s14   ;;  %s2669_s13 = sphi %s2699_s13, %s3023_s13   ;;  %s2665_s12 = sphi %s2697_s12, %s3022_s12  }
   0x3   : > { %p27_p1 = scmp.ge.s32.totalorder %s25_s15, 2  ;;  %p158_p2 = scmp.lt.s32.totalorder %s2673_s14, 3 }
   0x5   : > { %s3025_s15 = smov (%p27_p1, %s25_s15), 0  ;;  %p159_p3 = pnand %p2382_p0, %p158_p2 }
   0x6   : > { %p191_p4 = scmp.lt.s32.totalorder (!%p159_p3), %s2665_s12, 1  ;;  %vm237_vm0 = vcmask (!%p159_p3), 1040384   ;;  %vm238_vm1 = vcmask (!%p159_p3), 1041408   ;;  %v2675_v0 = vmov (!%p159_p3), 0   ;;  %v2676_v1 = vmov (!%p159_p3), 65535   ;;  %v2739_v15 = vld [vmem:[%s3019_s1 + $0x8] sm:$0xff] (!%p159_p3)  }
   0x7   : > { %162 = sbr.rel (%p159_p3) target bundleno = 452 (0x1c4), region = 32  ;;  %279 = vmatprep.mubr.bf16.mxu0 (!%p159_p3), %v2675_v0  ;;  %913 = vmatprep.mubr.bf16.mxu1 (!%p159_p3), %v2675_v0  ;;  %v239_v2 = vsel (!%p159_p3), %vm237_vm0, 4294967295, %v2676_v1  ;;  %vm233_vm2 = vcmask (!%p159_p3), 23552   ;;  %v2755_v23 = vld [vmem:[%s3019_s1] sm:$0xff] (!%p159_p3)   ;;  %v2776_v29 = vld [vmem:[%s3019_s1 + $0x10] sm:$0xff] (!%p159_p3)   ;;  %v2801_v35 = vld [vmem:[%s3019_s1 + $0x18] sm:$0xff] (!%p159_p3)  }
   0x8   : > { %2641 = vset.pattern.permute.xlu0 (!%p159_p3), %v2675_v0  ;;  %v2726_v3 = vsel (!%p159_p3), %vm238_vm1, %v239_v2, 0  ;;  %v2824_v42 = vld [vmem:[%s3019_s1 + $0x20] sm:$0xff] (!%p159_p3)   ;;  %v2849_v48 = vld [vmem:[%s3019_s1 + $0x28] sm:$0xff] (!%p159_p3)   ;;  %v2874_v54 = vld [vmem:[%s3019_s1 + $0x30] sm:$0xff] (!%p159_p3)  }
   0x9   : > { %v2257_v58 = vld [vmem:[%s3020_s2] sm:$0xff] (!%p159_p3)  ;;  %v2258_v59 = vld [vmem:[%s3020_s2 + $0x8] sm:$0xff] (!%p159_p3)  ;;  %v2898_v60 = vld [vmem:[%s3019_s1 + $0x38] sm:$0xff] (!%p159_p3)  }
   0xa   : > { %2261 = vperm.xlu0 (!%p159_p3), %2641, %v2257_v58   ;;  %v2913_v62 = vld [vmem:[%s3019_s1 + $0x40] sm:$0xff] (!%p159_p3)  }
   0xe   : > { %s3027_s12 = smov (!%p191_p4, %s2665_s12), 1  ;;  %2266 = vperm.xlu0 %2641, %v2258_v59  }
   0xf   : > { %s2483_s16 = sshll.u32 %s3027_s12, 6 }
  0x10   : > { %s2724_s19 = scalar_lea.vmem %s3018_s0, %s2483_s16 }
  0x11   : > { %v2391_v4 = vld.sshfl [vmem:[%s2724_s19 + $0x4] sm:$0x33 pattern:$0x76325410] }
  0x12   : > { %v232_v5 = vcombine.high %v2391_v4, %v2391_v4  ;;  %v2400_v6 = vld.sshfl [vmem:[%s2724_s19 + $0x8] sm:$0x33 pattern:$0x76325410]  ;;  %v242_v8 = vand.u32 %v2391_v4, %v2726_v3 }
  0x13   : > { %v374_v7 = vcombine.high %v2400_v6, %v2400_v6  ;;  %v2394_v9 = vld.sshfl [vmem:[%s2724_s19] sm:$0x33 pattern:$0x76325410]  ;;  %v379_v11 = vand.u32 %v2400_v6, %v2726_v3 }
  0x14   : > { %v245_v10 = vand.u32 %v2726_v3, %v232_v5  ;;  %v303_v12 = vcombine.high %v2394_v9, %v2394_v9  ;;  %v2441_v13 = vld.sshfl [vmem:[%s2724_s19 + $0xc] sm:$0x33 pattern:$0x76325410]  ;;  %v308_v18 = vand.u32 %v2394_v9, %v2726_v3 }
  0x15   : > { %v382_v14 = vand.u32 %v374_v7, %v2726_v3  ;;  %v977_v17 = vcombine.high %v2441_v13, %v2441_v13  ;;  %v2406_v20 = vld.sshfl [vmem:[%s2724_s19 + $0x10] sm:$0x33 pattern:$0x76325410]  ;;  %v979_v25 = vand.u32 %v2441_v13, %v2726_v3 }
  0x16   : > { %247 = vmatprep.subr.bf16.mxu0 %v245_v10  ;;  %v311_v16 = vand.u32 %v303_v12, %v2726_v3  ;;  %v2412_v21 = vld.sshfl [vmem:[%s2724_s19 + $0x14] sm:$0x33 pattern:$0x76325410]  ;;  %v449_v22 = vcombine.high %v2406_v20, %v2406_v20  ;;  %v2779_v31 = vand.u32 %v2406_v20, %v2726_v3 }
  0x17   : > { %881 = vmatprep.subr.bf16.mxu1 %v382_v14  ;;  %248 = vmatpush1.bf16.msra.mxu0 %v242_v8  ;;  %v982_v19 = vand.u32 %v977_v17, %v2726_v3  ;;  %v524_v24 = vcombine.high %v2412_v21, %v2412_v21  ;;  %v2418_v28 = vld.sshfl [vmem:[%s2724_s19 + $0x18] sm:$0x33 pattern:$0x76325410]  ;;  %v2782_v32 = vand.u32 %v2412_v21, %v2726_v3 }
  0x18   : > { %882 = vmatpush1.bf16.msra.mxu1 %v379_v11  ;;  %313 = vmatprep.subr.bf16.mxu0 %v311_v16  ;;  %v2759_v26 = vand.u32 %v449_v22, %v2726_v3  ;;  %v599_v30 = vcombine.high %v2418_v28, %v2418_v28  ;;  %v2446_v34 = vld.sshfl [vmem:[%s2724_s19 + $0x1c] sm:$0x33 pattern:$0x76325410]  ;;  %v2804_v37 = vand.u32 %v2418_v28, %v2726_v3 }
  0x19   : > { %924 = vmatprep.subr.bf16.mxu1 %v245_v10  ;;  %v2764_v27 = vand.u32 %v524_v24, %v2726_v3  ;;  %v1135_v36 = vcombine.high %v2446_v34, %v2446_v34  ;;  %v2424_v39 = vld.sshfl [vmem:[%s2724_s19 + $0x20] sm:$0x33 pattern:$0x76325410]  ;;  %v2827_v44 = vand.u32 %v2446_v34, %v2726_v3 }
  0x1a   : > { %2392 = vmatmul.mubr.msk.bf16.vlgmr.msra.gmra.mrb[0].mxu0 %vm233_vm2, %v2739_v15  ;;  %v2787_v33 = vand.u32 %v599_v30, %v2726_v3  ;;  %v2430_v40 = vld.sshfl [vmem:[%s2724_s19 + $0x24] sm:$0x33 pattern:$0x76325410]  ;;  %v674_v41 = vcombine.high %v2424_v39, %v2424_v39  ;;  %v2852_v50 = vand.u32 %v2424_v39, %v2726_v3 }
  0x1b   : > { %2438 = vmatmul.mubr.msk.bf16.vlgmr.msra.gmra.mrb[0].mxu1 %vm233_vm2, %v2739_v15  ;;  %314 = vmatpush1.bf16.msra.mxu0 %v308_v18  ;;  %v2809_v38 = vand.u32 %v1135_v36, %v2726_v3  ;;  %v749_v43 = vcombine.high %v2430_v40, %v2430_v40  ;;  %v2436_v47 = vld.sshfl [vmem:[%s2724_s19 + $0x28] sm:$0x33 pattern:$0x76325410]  ;;  %v2855_v51 = vand.u32 %v2430_v40, %v2726_v3 }
  0x1c   : > { %925 = vmatpush1.bf16.msra.mxu1 %v242_v8  ;;  %345 = vmatprep.mubr.bf16.mxu0 %v2675_v0  ;;  %v2830_v45 = vand.u32 %v674_v41, %v2726_v3  ;;  %v824_v49 = vcombine.high %v2436_v47, %v2436_v47  ;;  %v2451_v53 = vld.sshfl [vmem:[%s2724_s19 + $0x2c] sm:$0x33 pattern:$0x76325410]  ;;  %v2877_v56 = vand.u32 %v2436_v47, %v2726_v3 }
  0x1d   : > { %956 = vmatprep.mubr.bf16.mxu1 %v2675_v0  ;;  %384 = vmatprep.subr.bf16.mxu0 %v382_v14  ;;  %v2835_v46 = vand.u32 %v749_v43, %v2726_v3  ;;  %v1293_v55 = vcombine.high %v2451_v53, %v2451_v53  ;;  %v1295_v61 = vand.u32 %v2451_v53, %v2726_v3  ;;  %v2460_v63 = vld.sshfl [vmem:[%s2724_s19 + $0x30] sm:$0x33 pattern:$0x76325410] }
  0x1e   : > { %984 = vmatprep.subr.bf16.mxu1 %v982_v19  ;;  %v2860_v52 = vand.u32 %v824_v49, %v2726_v3  ;;  %v2463_v1 = vld.sshfl [vmem:[%s2724_s19 + $0x34] sm:$0x33 pattern:$0x76325410]  ;;  %v1635_v2 = vcombine.high %v2460_v63, %v2460_v63  ;;  %v1637_v9 = vand.u32 %v2460_v63, %v2726_v3 }
  0x1f   : > { %v1298_v57 = vand.u32 %v1293_v55, %v2726_v3  ;;  %v1699_v4 = vcombine.high %v2463_v1, %v2463_v1  ;;  %v2466_v7 = vld.sshfl [vmem:[%s2724_s19 + $0x38] sm:$0x33 pattern:$0x76325410]  ;;  %v1701_v10 = vand.u32 %v2463_v1, %v2726_v3 }
  0x20   : > { %v1640_v5 = vand.u32 %v1635_v2, %v2726_v3  ;;  %v1763_v8 = vcombine.high %v2466_v7, %v2466_v7  ;;  %v2477_v12 = vld.sshfl [vmem:[%s2724_s19 + $0x3c] sm:$0x33 pattern:$0x76325410]  ;;  %v1765_v14 = vand.u32 %v2466_v7, %v2726_v3  ;;  %s2484_s19 = sshll.u32 %s3027_s12, 4 }
  0x21   : > { %v1704_v6 = vand.u32 %v1699_v4, %v2726_v3  ;;  %v2199_v13 = vcombine.high %v2477_v12, %v2477_v12  ;;  %v2201_v16 = vand.u32 %v2477_v12, %v2726_v3  ;;  %s208_s22 = scalar_lea.vmem %s3021_s3, %s2484_s19 }
  0x26   : > { %2395 = vmatmul.mubr.msk.bf16.vlgmr.msra.gmra.mrb[0].mxu0 %vm233_vm2, %v2755_v23 }
  0x27   : > { %2439 = vmatmul.mubr.msk.bf16.vlgmr.msra.gmra.mrb[0].mxu1 %vm233_vm2, %v2755_v23  ;;  %385 = vmatpush1.bf16.msra.mxu0 %v379_v11  ;;  %v1768_v11 = vand.u32 %v1763_v8, %v2726_v3 }
  0x28   : > { %985 = vmatpush1.bf16.msra.mxu1 %v979_v25  ;;  %416 = vmatprep.mubr.bf16.mxu0 %v2675_v0 }
  0x29   : > { %1016 = vmatprep.mubr.bf16.mxu1 %v2675_v0  ;;  %459 = vmatprep.subr.bf16.mxu0 %v2759_v26 }
  0x2a   : > { %1031 = vmatprep.subr.bf16.mxu1 %v2764_v27 }
  0x32   : > { %2401 = vmatmul.mubr.msk.bf16.vlgmr.msra.gmra.mrb[0].mxu0 %vm233_vm2, %v2776_v29 }
  0x33   : > { %2442 = vmatmul.mubr.msk.bf16.vlgmr.msra.gmra.mrb[0].mxu1 %vm233_vm2, %v2776_v29  ;;  %460 = vmatpush1.bf16.msra.mxu0 %v2779_v31 }
  0x34   : > { %1032 = vmatpush1.bf16.msra.mxu1 %v2782_v32  ;;  %491 = vmatprep.mubr.bf16.mxu0 %v2675_v0 }
  0x35   : > { %1063 = vmatprep.mubr.bf16.mxu1 %v2675_v0  ;;  %534 = vmatprep.subr.bf16.mxu0 %v2764_v27 }
  0x36   : > { %1078 = vmatprep.subr.bf16.mxu1 %v2787_v33 }
  0x3e   : > { %2407 = vmatmul.mubr.msk.bf16.vlgmr.msra.gmra.mrb[0].mxu0 %vm233_vm2, %v2801_v35 }
  0x3f   : > { %2443 = vmatmul.mubr.msk.bf16.vlgmr.msra.gmra.mrb[0].mxu1 %vm233_vm2, %v2801_v35  ;;  %535 = vmatpush1.bf16.msra.mxu0 %v2782_v32 }
  0x40   : > { %1079 = vmatpush1.bf16.msra.mxu1 %v2804_v37  ;;  %566 = vmatprep.mubr.bf16.mxu0 %v2675_v0 }
  0x41   : > { %1110 = vmatprep.mubr.bf16.mxu1 %v2675_v0  ;;  %609 = vmatprep.subr.bf16.mxu0 %v2787_v33 }
  0x42   : > { %1142 = vmatprep.subr.bf16.mxu1 %v2809_v38 }
  0x4a   : > { %2413 = vmatmul.mubr.msk.bf16.vlgmr.msra.gmra.mrb[0].mxu0 %vm233_vm2, %v2824_v42 }
  0x4b   : > { %2444 = vmatmul.mubr.msk.bf16.vlgmr.msra.gmra.mrb[0].mxu1 %vm233_vm2, %v2824_v42  ;;  %610 = vmatpush1.bf16.msra.mxu0 %v2804_v37 }
  0x4c   : > { %1143 = vmatpush1.bf16.msra.mxu1 %v2827_v44  ;;  %641 = vmatprep.mubr.bf16.mxu0 %v2675_v0 }
  0x4d   : > { %1174 = vmatprep.mubr.bf16.mxu1 %v2675_v0  ;;  %684 = vmatprep.subr.bf16.mxu0 %v2830_v45 }
  0x4e   : > { %1189 = vmatprep.subr.bf16.mxu1 %v2835_v46 }
  0x56   : > { %2419 = vmatmul.mubr.msk.bf16.vlgmr.msra.gmra.mrb[0].mxu0 %vm233_vm2, %v2849_v48 }
  0x57   : > { %2447 = vmatmul.mubr.msk.bf16.vlgmr.msra.gmra.mrb[0].mxu1 %vm233_vm2, %v2849_v48  ;;  %685 = vmatpush1.bf16.msra.mxu0 %v2852_v50 }
  0x58   : > { %1190 = vmatpush1.bf16.msra.mxu1 %v2855_v51  ;;  %716 = vmatprep.mubr.bf16.mxu0 %v2675_v0 }
  0x59   : > { %1221 = vmatprep.mubr.bf16.mxu1 %v2675_v0  ;;  %759 = vmatprep.subr.bf16.mxu0 %v2835_v46 }
  0x5a   : > { %1236 = vmatprep.subr.bf16.mxu1 %v2860_v52 }
  0x62   : > { %2425 = vmatmul.mubr.msk.bf16.vlgmr.msra.gmra.mrb[0].mxu0 %vm233_vm2, %v2874_v54 }
  0x63   : > { %2448 = vmatmul.mubr.msk.bf16.vlgmr.msra.gmra.mrb[0].mxu1 %vm233_vm2, %v2874_v54  ;;  %760 = vmatpush1.bf16.msra.mxu0 %v2855_v51 }
  0x64   : > { %1237 = vmatpush1.bf16.msra.mxu1 %v2877_v56  ;;  %791 = vmatprep.mubr.bf16.mxu0 %v2675_v0 }
  0x65   : > { %1268 = vmatprep.mubr.bf16.mxu1 %v2675_v0  ;;  %834 = vmatprep.subr.bf16.mxu0 %v2860_v52 }
  0x66   : > { %1300 = vmatprep.subr.bf16.mxu1 %v1298_v57 }
  0x6e   : > { %2431 = vmatmul.mubr.msk.bf16.vlgmr.msra.gmra.mrb[0].mxu0 %vm233_vm2, %v2898_v60 }
  0x6f   : > { %2449 = vmatmul.mubr.msk.bf16.vlgmr.msra.gmra.mrb[0].mxu1 %vm233_vm2, %v2898_v60  ;;  %835 = vmatpush1.bf16.msra.mxu0 %v2877_v56 }
  0x70   : > { %1301 = vmatpush1.bf16.msra.mxu1 %v1295_v61  ;;  %866 = vmatprep.mubr.bf16.mxu0 %v2675_v0 }
  0x71   : > { %1332 = vmatprep.mubr.bf16.mxu1 %v2675_v0  ;;  %1351 = vmatprep.subr.bf16.mxu0 %v2764_v27 }
  0x72   : > { %1821 = vmatprep.subr.bf16.mxu1 %v2787_v33 }
  0x7a   : > { %2437 = vmatmul.mubr.msk.bf16.vlgmr.msra.gmra.mrb[0].mxu0 %vm233_vm2, %v2913_v62 }
  0x7b   : > { %2452 = vmatmul.mubr.msk.bf16.vlgmr.msra.gmra.mrb[0].mxu1 %vm233_vm2, %v2913_v62  ;;  %1352 = vmatpush1.bf16.msra.mxu0 %v2782_v32 }
  0x7c   : > { %1822 = vmatpush1.bf16.msra.mxu1 %v2804_v37  ;;  %1383 = vmatprep.mubr.bf16.mxu0 %v2675_v0 }
  0x7d   : > { %1853 = vmatprep.mubr.bf16.mxu1 %v2675_v0  ;;  %1394 = vmatprep.subr.bf16.mxu0 %v2759_v26 }
  0x7e   : > { %1864 = vmatprep.subr.bf16.mxu1 %v2764_v27 }
  0x82   : > { %2453 = vmatmul.mubr.msk.bf16.vlgmr.msra.gmra.mrb[4].mxu0 %vm233_vm2, %v2739_v15 }
  0x83   : > { %2468 = vmatmul.mubr.msk.bf16.vlgmr.msra.gmra.mrb[4].mxu1 %vm233_vm2, %v2739_v15  ;;  %1395 = vmatpush1.bf16.msra.mxu0 %v2779_v31  ;;  %v2204_v15 = vand.u32 %v2199_v13, %v2726_v3 }
  0x84   : > { %1865 = vmatpush1.bf16.msra.mxu1 %v2782_v32  ;;  %1426 = vmatprep.mubr.bf16.mxu0 %v2675_v0 }
  0x85   : > { %1896 = vmatprep.mubr.bf16.mxu1 %v2675_v0  ;;  %1437 = vmatprep.subr.bf16.mxu0 %v2787_v33 }
  0x86   : > { %1907 = vmatprep.subr.bf16.mxu1 %v2809_v38 }
  0x89   : > { %v2262_v28 = vpop.permute.xlu0 %2261 }
  0x8e   : > { %2454 = vmatmul.mubr.msk.bf16.vlgmr.msra.gmra.mrb[4].mxu0 %vm233_vm2, %v2755_v23 }
  0x8f   : > { %2469 = vmatmul.mubr.msk.bf16.vlgmr.msra.gmra.mrb[4].mxu1 %vm233_vm2, %v2755_v23  ;;  %1438 = vmatpush1.bf16.msra.mxu0 %v2804_v37 }
  0x90   : > { %1908 = vmatpush1.bf16.msra.mxu1 %v2827_v44  ;;  %1469 = vmatprep.mubr.bf16.mxu0 %v2675_v0 }
  0x91   : > { %1939 = vmatprep.mubr.bf16.mxu1 %v2675_v0  ;;  %1484 = vmatprep.subr.bf16.mxu0 %v2830_v45 }
  0x92   : > { %1954 = vmatprep.subr.bf16.mxu1 %v2835_v46 }
  0x9a   : > { %2455 = vmatmul.mubr.msk.bf16.vlgmr.msra.gmra.mrb[4].mxu0 %vm233_vm2, %v2776_v29 }
  0x9b   : > { %2470 = vmatmul.mubr.msk.bf16.vlgmr.msra.gmra.mrb[4].mxu1 %vm233_vm2, %v2776_v29  ;;  %1485 = vmatpush1.bf16.msra.mxu0 %v2852_v50 }
  0x9c   : > { %1955 = vmatpush1.bf16.msra.mxu1 %v2855_v51  ;;  %1516 = vmatprep.mubr.bf16.mxu0 %v2675_v0 }
  0x9d   : > { %1986 = vmatprep.mubr.bf16.mxu1 %v2675_v0  ;;  %1531 = vmatprep.subr.bf16.mxu0 %v2835_v46  ;;  %v2267_v46 = vpop.permute.xlu0 %2266 }
  0x9e   : > { %2001 = vmatprep.subr.bf16.mxu1 %v2860_v52 }
  0xa6   : > { %2456 = vmatmul.mubr.msk.bf16.vlgmr.msra.gmra.mrb[4].mxu0 %vm233_vm2, %v2801_v35 }
  0xa7   : > { %2471 = vmatmul.mubr.msk.bf16.vlgmr.msra.gmra.mrb[4].mxu1 %vm233_vm2, %v2801_v35  ;;  %1532 = vmatpush1.bf16.msra.mxu0 %v2855_v51 }
  0xa8   : > { %2002 = vmatpush1.bf16.msra.mxu1 %v2877_v56  ;;  %1563 = vmatprep.mubr.bf16.mxu0 %v2675_v0 }
  0xa9   : > { %2033 = vmatprep.mubr.bf16.mxu1 %v2675_v0  ;;  %1578 = vmatprep.subr.bf16.mxu0 %v2860_v52 }
  0xaa   : > { %2048 = vmatprep.subr.bf16.mxu1 %v1298_v57 }
  0xb2   : > { %2457 = vmatmul.mubr.msk.bf16.vlgmr.msra.gmra.mrb[4].mxu0 %vm233_vm2, %v2824_v42 }
  0xb3   : > { %2472 = vmatmul.mubr.msk.bf16.vlgmr.msra.gmra.mrb[4].mxu1 %vm233_vm2, %v2824_v42  ;;  %1579 = vmatpush1.bf16.msra.mxu0 %v2877_v56 }
  0xb4   : > { %2049 = vmatpush1.bf16.msra.mxu1 %v1295_v61  ;;  %1610 = vmatprep.mubr.bf16.mxu0 %v2675_v0 }
  0xb5   : > { %2080 = vmatprep.mubr.bf16.mxu1 %v2675_v0  ;;  %1642 = vmatprep.subr.bf16.mxu0 %v1640_v5 }
  0xb6   : > { %2095 = vmatprep.subr.bf16.mxu1 %v1704_v6 }
  0xbe   : > { %2458 = vmatmul.mubr.msk.bf16.vlgmr.msra.gmra.mrb[4].mxu0 %vm233_vm2, %v2849_v48 }
  0xbf   : > { %2473 = vmatmul.mubr.msk.bf16.vlgmr.msra.gmra.mrb[4].mxu1 %vm233_vm2, %v2849_v48  ;;  %1643 = vmatpush1.bf16.msra.mxu0 %v1637_v9 }
  0xc0   : > { %2096 = vmatpush1.bf16.msra.mxu1 %v1701_v10  ;;  %1674 = vmatprep.mubr.bf16.mxu0 %v2675_v0 }
  0xc1   : > { %2127 = vmatprep.mubr.bf16.mxu1 %v2675_v0  ;;  %1706 = vmatprep.subr.bf16.mxu0 %v1704_v6 }
  0xc2   : > { %2142 = vmatprep.subr.bf16.mxu1 %v1768_v11 }
  0xca   : > { %2461 = vmatmul.mubr.msk.bf16.vlgmr.msra.gmra.mrb[4].mxu0 %vm233_vm2, %v2874_v54 }
  0xcb   : > { %2474 = vmatmul.mubr.msk.bf16.vlgmr.msra.gmra.mrb[4].mxu1 %vm233_vm2, %v2874_v54  ;;  %1707 = vmatpush1.bf16.msra.mxu0 %v1701_v10 }
  0xcc   : > { %2143 = vmatpush1.bf16.msra.mxu1 %v1765_v14  ;;  %1738 = vmatprep.mubr.bf16.mxu0 %v2675_v0 }
  0xcd   : > { %2174 = vmatprep.mubr.bf16.mxu1 %v2675_v0  ;;  %1770 = vmatprep.subr.bf16.mxu0 %v1768_v11 }
  0xce   : > { %2206 = vmatprep.subr.bf16.mxu1 %v2204_v15 }
  0xd6   : > { %2464 = vmatmul.mubr.msk.bf16.vlgmr.msra.gmra.mrb[4].mxu0 %vm233_vm2, %v2898_v60 }
  0xd7   : > { %2475 = vmatmul.mubr.msk.bf16.vlgmr.msra.gmra.mrb[4].mxu1 %vm233_vm2, %v2898_v60  ;;  %1771 = vmatpush1.bf16.msra.mxu0 %v1765_v14 }
  0xd8   : > { %2207 = vmatpush1.bf16.msra.mxu1 %v2201_v16  ;;  %1802 = vmatprep.mubr.bf16.mxu0 %v2675_v0 }
  0xd9   : > { %2238 = vmatprep.mubr.bf16.mxu1 %v2675_v0 }
  0xe2   : > { %2467 = vmatmul.mubr.msk.bf16.vlgmr.msra.gmra.mrb[4].mxu0 %vm233_vm2, %v2913_v62 }
  0xe3   : > { %2478 = vmatmul.mubr.msk.bf16.vlgmr.msra.gmra.mrb[4].mxu1 %vm233_vm2, %v2913_v62 }
 0x14d   : > { %v868_v17 = vpop.f32.mrb[0].mxu0 }
 0x14e   : > { %v1334_v3 = vpop.f32.mrb[0].mxu1  ;;  %v870_v18 = vpop.f32.mrb[1].mxu0 }
 0x14f   : > { %v1347_v19 = vmax.f32 %v868_v17, %v1334_v3  ;;  %v1336_v20 = vpop.f32.mrb[1].mxu1  ;;  %v872_v21 = vpop.f32.mrb[2].mxu0 }
 0x150   : > { %v1348_v22 = vmax.f32 %v870_v18, %v1336_v20  ;;  %v1338_v23 = vpop.f32.mrb[2].mxu1  ;;  %v874_v24 = vpop.f32.mrb[3].mxu0 }
 0x151   : > { %v1349_v25 = vmax.f32 %v872_v21, %v1338_v23  ;;  %v1340_v26 = vpop.f32.mrb[3].mxu1 }
 0x152   : > { %v1350_v27 = vmax.f32 %v874_v24, %v1340_v26 }
 0x1b5   : > { %v1804_v0 = vpop.f32.mrb[4].mxu0 }
 0x1b6   : > { %v1817_v29 = vmax.f32 %v1347_v19, %v1804_v0  ;;  %v2240_v30 = vpop.f32.mrb[4].mxu1  ;;  %v1806_v31 = vpop.f32.mrb[5].mxu0 }
 0x1b7   : > { %v1818_v32 = vmax.f32 %v1348_v22, %v1806_v31  ;;  %v2242_v33 = vpop.f32.mrb[5].mxu1  ;;  %v1808_v34 = vpop.f32.mrb[6].mxu0 }
 0x1b8   : > { %v2253_v35 = vmax.f32 %v1817_v29, %v2240_v30  ;;  %v1819_v36 = vmax.f32 %v1349_v25, %v1808_v34  ;;  %v2244_v37 = vpop.f32.mrb[6].mxu1  ;;  %v1810_v38 = vpop.f32.mrb[7].mxu0 }
 0x1b9   : > { %v2254_v39 = vmax.f32 %v1818_v32, %v2242_v33  ;;  %v1820_v40 = vmax.f32 %v1350_v27, %v1810_v38  ;;  %v2246_v41 = vpop.f32.mrb[7].mxu1 }
 0x1ba   : > { %v2269_v42 = vadd.f32 %v2262_v28, %v2253_v35  ;;  %v2255_v43 = vmax.f32 %v1819_v36, %v2244_v37 }
 0x1bb   : > { %v2270_v44 = vadd.f32 %v2262_v28, %v2254_v39  ;;  %v2256_v45 = vmax.f32 %v1820_v40, %v2246_v41 }
 0x1bc   : > { %v2273_v47 = vmax.f32 %v2269_v42, 0.0  ;;  %v2271_v48 = vadd.f32 %v2267_v46, %v2255_v43 }
 0x1bd   : > { %v2274_v49 = vmax.f32 %v2270_v44, 0.0  ;;  %v2272_v50 = vadd.f32 %v2267_v46, %v2256_v45 }
 0x1be   : > { %v2275_v51 = vmax.f32 %v2271_v48, 0.0 }
 0x1bf   : > { %v2485_v52 = vpack.c.bf16 %v2274_v49, %v2273_v47  ;;  %v2276_v53 = vmax.f32 %v2272_v50, 0.0 }
 0x1c1   : > { %v2486_v54 = vpack.c.bf16 %v2276_v53, %v2275_v51  ;;  %2289 = vst [vmem:[%s208_s22] sm:$0xff] %v2485_v52 }
 0x1c3   : > { %2290 = vst [vmem:[%s208_s22 + $0x8] sm:$0xff] %v2486_v54 }
 0x1c4 PF: > { %s13_s14 = sadd.s32 1, %s2673_s14   ;;  %s3022_s12 = smov %s2669_s13 }
 0x1c5   : > { %p10_p5 = scmp.ge.s32.totalorder %s13_s14, 4   ;;  %s3023_s13 = smov %s3025_s15 }
 0x1c7   :  { %12 = sbr.rel (!%p10_p5) target bundleno = 2 (0x2), region = 85 }

// kernel: brain_tumor_forward.4
= control target key start
LH: loop header
LB: loop body
LE: loop exit
PB: predicated region body
PF: predicated region fallthrough
CT: control target
= control target key end

     0   :  { %s3306_s12 = smov 0   ;;  %s3308_s13 = smov 0   ;;  %s3671_s0 = inlined_call_operand.vmem [shape: bf16[2,16,16,64], index: 0, kind: input, shape index: {}]   ;;  %s3672_s1 = inlined_call_operand.vmem [shape: bf16[9,32,16], index: 1, kind: input, shape index: {}]   ;;  %s3673_s2 = inlined_call_operand.vmem [shape: f32[32,1], index: 2, kind: input, shape index: {}]   ;;  %s3674_s3 = inlined_call_operand.vmem [shape: bf16[2,32,64], index: 3, kind: output, shape index: {}]  }
   0x1   :  { %s3310_s14 = smov 0  }
   0x2 LB: > { %s25_s15 = sadd.s32 1, %s3279_s13  ;;  %p2563_p0 = scmp.ge.s32.totalorder %s3283_s14, 1  ;;  %s3283_s14 = sphi %s3310_s14, %s13_s14   ;;  %s3279_s13 = sphi %s3308_s13, %s3676_s13   ;;  %s3275_s12 = sphi %s3306_s12, %s3675_s12  }
   0x3   : > { %p27_p1 = scmp.ge.s32.totalorder %s25_s15, 2  ;;  %p156_p2 = scmp.lt.s32.totalorder %s3283_s14, 3 }
   0x5   : > { %s3678_s15 = smov (%p27_p1, %s25_s15), 0  ;;  %p157_p3 = pnand %p2563_p0, %p156_p2 }
   0x6   : > { %p186_p4 = scmp.lt.s32.totalorder (!%p157_p3), %s3275_s12, 1  ;;  %v3327_v0 = vld [vmem:[%s3672_s1 + $0x10] sm:$0xff] (!%p157_p3)   ;;  %vm233_vm0 = vcmask (!%p157_p3), 130048   ;;  %v3345_v2 = vld [vmem:[%s3672_s1 + $0x18] sm:$0xff] (!%p157_p3)   ;;  %v3352_v5 = vld [vmem:[%s3672_s1] sm:$0xff] (!%p157_p3)   ;;  %v3285_v29 = vmov (!%p157_p3), 0  }
   0x7   : > { %160 = sbr.rel (%p157_p3) target bundleno = 448 (0x1c0), region = 32  ;;  %2858 = vmatprep.mubr.msk.bf16.mxu0 (!%p157_p3), %vm233_vm0, %v3327_v0  ;;  %2912 = vmatprep.mubr.msk.bf16.mxu1 (!%p157_p3), %vm233_vm0, %v3327_v0  ;;  %v3366_v7 = vld [vmem:[%s3672_s1 + $0x8] sm:$0xff] (!%p157_p3)   ;;  %v3371_v8 = vld [vmem:[%s3672_s1 + $0x20] sm:$0xff] (!%p157_p3)   ;;  %v3397_v12 = vld [vmem:[%s3672_s1 + $0x30] sm:$0xff] (!%p157_p3)   ;;  %vm2471_vm1 = vcmask (!%p157_p3), 519168  }
   0x8   : > { %v3392_v11 = vld [vmem:[%s3672_s1 + $0x28] sm:$0xff] (!%p157_p3)   ;;  %v3417_v14 = vld [vmem:[%s3672_s1 + $0x38] sm:$0xff] (!%p157_p3)   ;;  %v3422_v15 = vld [vmem:[%s3672_s1 + $0x40] sm:$0xff] (!%p157_p3)   ;;  %3226 = vset.pattern.permute.xlu1 (!%p157_p3), %v3285_v29  ;;  %3225 = vset.pattern.permute.xlu0 (!%p157_p3), %v3285_v29 }
   0x9   : > { %v3442_v17 = vld [vmem:[%s3672_s1 + $0x48] sm:$0xff] (!%p157_p3)   ;;  %v3447_v18 = vld [vmem:[%s3672_s1 + $0x50] sm:$0xff] (!%p157_p3)   ;;  %v3470_v21 = vld [vmem:[%s3672_s1 + $0x58] sm:$0xff] (!%p157_p3)  }
   0xa   : > { %v3475_v22 = vld [vmem:[%s3672_s1 + $0x60] sm:$0xff] (!%p157_p3)   ;;  %v3495_v24 = vld [vmem:[%s3672_s1 + $0x68] sm:$0xff] (!%p157_p3)   ;;  %v3500_v25 = vld [vmem:[%s3672_s1 + $0x70] sm:$0xff] (!%p157_p3)  }
   0xb   : > { %v2425_v27 = vld [vmem:[%s3673_s2 + $0x10] sm:$0xff] (!%p157_p3)  ;;  %v2423_v28 = vld [vmem:[%s3673_s2] sm:$0xff] (!%p157_p3)  ;;  %v2426_v30 = vld [vmem:[%s3673_s2 + $0x18] sm:$0xff] (!%p157_p3) }
   0xc   : > { %2439 = vperm.xlu1 (!%p157_p3), %3226, %v2425_v27   ;;  %2429 = vperm.xlu0 (!%p157_p3), %3225, %v2423_v28   ;;  %v2424_v31 = vld [vmem:[%s3673_s2 + $0x8] sm:$0xff] (!%p157_p3)  ;;  %v3532_v32 = vld [vmem:[%s3672_s1 + $0x78] sm:$0xff] (!%p157_p3)   ;;  %v3537_v33 = vld [vmem:[%s3672_s1 + $0x80] sm:$0xff] (!%p157_p3)  }
   0xd   : > { %v3554_v34 = vld [vmem:[%s3672_s1 + $0x88] sm:$0xff] (!%p157_p3)  }
   0xe   : > { %s3680_s12 = smov (!%p186_p4, %s3275_s12), 1 }
   0xf   : > { %s2742_s18 = sshll.u32 %s3680_s12, 7 }
  0x10   : > { %s3339_s21 = scalar_lea.vmem %s3671_s0, %s2742_s18  ;;  %2444 = vperm.xlu1 %3226, %v2426_v30   ;;  %2434 = vperm.xlu0 %3225, %v2424_v31  }
  0x11   : > { %v3227_v1 = vld [vmem:[%s3339_s21 + $0x8] sm:$0xff]   ;;  %v3228_v3 = vld [vmem:[%s3339_s21 + $0x10] sm:$0xff]   ;;  %v3231_v4 = vld [vmem:[%s3339_s21] sm:$0xff]  }
  0x12   : > { %2856 = vmatprep.subr.bf16.mxu0 %v3227_v1  ;;  %2910 = vmatprep.subr.bf16.mxu1 %v3228_v3  ;;  %v3234_v6 = vld [vmem:[%s3339_s21 + $0x18] sm:$0xff]   ;;  %v3374_v9 = vld [vmem:[%s3339_s21 + $0x20] sm:$0xff]   ;;  %v3379_v10 = vld [vmem:[%s3339_s21 + $0x28] sm:$0xff]  }
  0x13   : > { %2857 = vmatpush3.bf16.msra.mxu0 %v3227_v1  ;;  %2911 = vmatpush3.bf16.msra.mxu1 %v3228_v3  ;;  %v3402_v13 = vld [vmem:[%s3339_s21 + $0x30] sm:$0xff]   ;;  %v3427_v16 = vld [vmem:[%s3339_s21 + $0x38] sm:$0xff]   ;;  %v3450_v19 = vld [vmem:[%s3339_s21 + $0x40] sm:$0xff]  }
  0x14   : > { %2862 = vmatprep.subr.bf16.mxu0 %v3231_v4  ;;  %2916 = vmatprep.subr.bf16.mxu1 %v3227_v1  ;;  %v3455_v20 = vld [vmem:[%s3339_s21 + $0x48] sm:$0xff]   ;;  %v3480_v23 = vld [vmem:[%s3339_s21 + $0x50] sm:$0xff]   ;;  %v3505_v26 = vld [vmem:[%s3339_s21 + $0x58] sm:$0xff]  }
  0x15   : > { %v3257_v35 = vld [vmem:[%s3339_s21 + $0x60] sm:$0xff]   ;;  %v3258_v36 = vld [vmem:[%s3339_s21 + $0x68] sm:$0xff]   ;;  %v3259_v37 = vld [vmem:[%s3339_s21 + $0x70] sm:$0xff]  }
  0x16   : > { %2859 = vmatmul.mubr.msk.bf16.vlgmr.msra.gmra.mrb[0].mxu0 %vm233_vm0, %v3345_v2  ;;  %2913 = vmatmul.mubr.msk.bf16.vlgmr.msra.gmra.mrb[0].mxu1 %vm233_vm0, %v3345_v2  ;;  %v3260_v38 = vld [vmem:[%s3339_s21 + $0x78] sm:$0xff]   ;;  %s2743_s21 = sshll.u32 %s3680_s12, 4 }
  0x17   : > { %2863 = vmatpush3.bf16.msra.mxu0 %v3231_v4  ;;  %2917 = vmatpush3.bf16.msra.mxu1 %v3227_v1  ;;  %s201_s22 = scalar_lea.vmem %s3674_s3, %s2743_s21 }
  0x18   : > { %2864 = vmatprep.mubr.msk.bf16.mxu0 %vm233_vm0, %v3352_v5  ;;  %2918 = vmatprep.mubr.msk.bf16.mxu1 %vm233_vm0, %v3352_v5 }
  0x19   : > { %2868 = vmatprep.subr.bf16.mxu0 %v3228_v3  ;;  %2922 = vmatprep.subr.bf16.mxu1 %v3234_v6 }
  0x22   : > { %2865 = vmatmul.mubr.msk.bf16.vlgmr.msra.gmra.mrb[0].mxu0 %vm233_vm0, %v3366_v7  ;;  %2919 = vmatmul.mubr.msk.bf16.vlgmr.msra.gmra.mrb[0].mxu1 %vm233_vm0, %v3366_v7 }
  0x23   : > { %2869 = vmatpush3.bf16.msra.mxu0 %v3228_v3  ;;  %2923 = vmatpush3.bf16.msra.mxu1 %v3234_v6 }
  0x24   : > { %2870 = vmatprep.mubr.msk.bf16.mxu0 %vm233_vm0, %v3371_v8  ;;  %2924 = vmatprep.mubr.msk.bf16.mxu1 %vm233_vm0, %v3371_v8 }
  0x25   : > { %2874 = vmatprep.subr.bf16.mxu0 %v3374_v9  ;;  %2928 = vmatprep.subr.bf16.mxu1 %v3379_v10 }
  0x2e   : > { %2871 = vmatmul.mubr.msk.bf16.vlgmr.msra.gmra.mrb[0].mxu0 %vm233_vm0, %v3392_v11  ;;  %2925 = vmatmul.mubr.msk.bf16.vlgmr.msra.gmra.mrb[0].mxu1 %vm233_vm0, %v3392_v11 }
  0x2f   : > { %2875 = vmatpush3.bf16.msra.mxu0 %v3374_v9  ;;  %2929 = vmatpush3.bf16.msra.mxu1 %v3379_v10 }
  0x30   : > { %2876 = vmatprep.mubr.msk.bf16.mxu0 %vm233_vm0, %v3397_v12  ;;  %2930 = vmatprep.mubr.msk.bf16.mxu1 %vm233_vm0, %v3397_v12 }
  0x31   : > { %2880 = vmatprep.subr.bf16.mxu0 %v3379_v10  ;;  %2934 = vmatprep.subr.bf16.mxu1 %v3402_v13 }
  0x3a   : > { %2877 = vmatmul.mubr.msk.bf16.vlgmr.msra.gmra.mrb[0].mxu0 %vm233_vm0, %v3417_v14  ;;  %2931 = vmatmul.mubr.msk.bf16.vlgmr.msra.gmra.mrb[0].mxu1 %vm233_vm0, %v3417_v14 }
  0x3b   : > { %2881 = vmatpush3.bf16.msra.mxu0 %v3379_v10  ;;  %2935 = vmatpush3.bf16.msra.mxu1 %v3402_v13 }
  0x3c   : > { %2882 = vmatprep.mubr.msk.bf16.mxu0 %vm233_vm0, %v3422_v15  ;;  %2936 = vmatprep.mubr.msk.bf16.mxu1 %vm233_vm0, %v3422_v15 }
  0x3d   : > { %2886 = vmatprep.subr.bf16.mxu0 %v3402_v13  ;;  %2940 = vmatprep.subr.bf16.mxu1 %v3427_v16 }
  0x46   : > { %2883 = vmatmul.mubr.msk.bf16.vlgmr.msra.gmra.mrb[0].mxu0 %vm233_vm0, %v3442_v17  ;;  %2937 = vmatmul.mubr.msk.bf16.vlgmr.msra.gmra.mrb[0].mxu1 %vm233_vm0, %v3442_v17 }
  0x47   : > { %2887 = vmatpush3.bf16.msra.mxu0 %v3402_v13  ;;  %2941 = vmatpush3.bf16.msra.mxu1 %v3427_v16 }
  0x48   : > { %2888 = vmatprep.mubr.msk.bf16.mxu0 %vm233_vm0, %v3447_v18  ;;  %2942 = vmatprep.mubr.msk.bf16.mxu1 %vm233_vm0, %v3447_v18 }
  0x49   : > { %2892 = vmatprep.subr.bf16.mxu0 %v3450_v19  ;;  %2946 = vmatprep.subr.bf16.mxu1 %v3455_v20 }
  0x52   : > { %2889 = vmatmul.mubr.msk.bf16.vlgmr.msra.gmra.mrb[0].mxu0 %vm233_vm0, %v3470_v21  ;;  %2943 = vmatmul.mubr.msk.bf16.vlgmr.msra.gmra.mrb[0].mxu1 %vm233_vm0, %v3470_v21 }
  0x53   : > { %2893 = vmatpush3.bf16.msra.mxu0 %v3450_v19  ;;  %2947 = vmatpush3.bf16.msra.mxu1 %v3455_v20 }
  0x54   : > { %2894 = vmatprep.mubr.msk.bf16.mxu0 %vm233_vm0, %v3475_v22  ;;  %2948 = vmatprep.mubr.msk.bf16.mxu1 %vm233_vm0, %v3475_v22 }
  0x55   : > { %2898 = vmatprep.subr.bf16.mxu0 %v3455_v20  ;;  %2952 = vmatprep.subr.bf16.mxu1 %v3480_v23 }
  0x5e   : > { %2895 = vmatmul.mubr.msk.bf16.vlgmr.msra.gmra.mrb[0].mxu0 %vm233_vm0, %v3495_v24  ;;  %2949 = vmatmul.mubr.msk.bf16.vlgmr.msra.gmra.mrb[0].mxu1 %vm233_vm0, %v3495_v24 }
  0x5f   : > { %2899 = vmatpush3.bf16.msra.mxu0 %v3455_v20  ;;  %2953 = vmatpush3.bf16.msra.mxu1 %v3480_v23 }
  0x60   : > { %2900 = vmatprep.mubr.msk.bf16.mxu0 %vm233_vm0, %v3500_v25  ;;  %2954 = vmatprep.mubr.msk.bf16.mxu1 %vm233_vm0, %v3500_v25 }
  0x61   : > { %2904 = vmatprep.subr.bf16.mxu0 %v3480_v23  ;;  %2958 = vmatprep.subr.bf16.mxu1 %v3505_v26 }
  0x6a   : > { %2901 = vmatmul.mubr.msk.bf16.vlgmr.msra.gmra.mrb[0].mxu0 %vm233_vm0, %v3532_v32  ;;  %2955 = vmatmul.mubr.msk.bf16.vlgmr.msra.gmra.mrb[0].mxu1 %vm233_vm0, %v3532_v32 }
  0x6b   : > { %2905 = vmatpush3.bf16.msra.mxu0 %v3480_v23  ;;  %2959 = vmatpush3.bf16.msra.mxu1 %v3505_v26 }
  0x6c   : > { %2906 = vmatprep.mubr.msk.bf16.mxu0 %vm233_vm0, %v3537_v33  ;;  %2960 = vmatprep.mubr.msk.bf16.mxu1 %vm233_vm0, %v3537_v33 }
  0x6d   : > { %2964 = vmatprep.subr.bf16.mxu0 %v3379_v10  ;;  %3018 = vmatprep.subr.bf16.mxu1 %v3402_v13 }
  0x76   : > { %2907 = vmatmul.mubr.msk.bf16.vlgmr.msra.gmra.mrb[0].mxu0 %vm233_vm0, %v3554_v34  ;;  %2961 = vmatmul.mubr.msk.bf16.vlgmr.msra.gmra.mrb[0].mxu1 %vm233_vm0, %v3554_v34 }
  0x77   : > { %2965 = vmatpush3.bf16.msra.mxu0 %v3379_v10  ;;  %3019 = vmatpush3.bf16.msra.mxu1 %v3402_v13 }
  0x78   : > { %2966 = vmatprep.mubr.msk.bf16.mxu0 %vm233_vm0, %v3327_v0  ;;  %3020 = vmatprep.mubr.msk.bf16.mxu1 %vm233_vm0, %v3327_v0 }
  0x79   : > { %2970 = vmatprep.subr.bf16.mxu0 %v3374_v9  ;;  %3024 = vmatprep.subr.bf16.mxu1 %v3379_v10 }
  0x7e   : > { %2967 = vmatmul.mubr.msk.bf16.vlgmr.msra.gmra.mrb[4].mxu0 %vm233_vm0, %v3345_v2  ;;  %3021 = vmatmul.mubr.msk.bf16.vlgmr.msra.gmra.mrb[4].mxu1 %vm233_vm0, %v3345_v2 }
  0x7f   : > { %2971 = vmatpush3.bf16.msra.mxu0 %v3374_v9  ;;  %3025 = vmatpush3.bf16.msra.mxu1 %v3379_v10 }
  0x80   : > { %2972 = vmatprep.mubr.msk.bf16.mxu0 %vm233_vm0, %v3352_v5  ;;  %3026 = vmatprep.mubr.msk.bf16.mxu1 %vm233_vm0, %v3352_v5 }
  0x81   : > { %2976 = vmatprep.subr.bf16.mxu0 %v3402_v13  ;;  %3030 = vmatprep.subr.bf16.mxu1 %v3427_v16 }
  0x8a   : > { %2973 = vmatmul.mubr.msk.bf16.vlgmr.msra.gmra.mrb[4].mxu0 %vm233_vm0, %v3366_v7  ;;  %3027 = vmatmul.mubr.msk.bf16.vlgmr.msra.gmra.mrb[4].mxu1 %vm233_vm0, %v3366_v7 }
  0x8b   : > { %2977 = vmatpush3.bf16.msra.mxu0 %v3402_v13  ;;  %3031 = vmatpush3.bf16.msra.mxu1 %v3427_v16  ;;  %v2440_v51 = vpop.permute.xlu1 %2439  ;;  %v2430_v52 = vpop.permute.xlu0 %2429 }
  0x8c   : > { %2978 = vmatprep.mubr.msk.bf16.mxu0 %vm233_vm0, %v3371_v8  ;;  %3032 = vmatprep.mubr.msk.bf16.mxu1 %vm233_vm0, %v3371_v8 }
  0x8d   : > { %2982 = vmatprep.subr.bf16.mxu0 %v3450_v19  ;;  %3036 = vmatprep.subr.bf16.mxu1 %v3455_v20 }
  0x8f   : > { %v2445_v7 = vpop.permute.xlu1 %2444  ;;  %v2435_v10 = vpop.permute.xlu0 %2434 }
  0x96   : > { %2979 = vmatmul.mubr.msk.bf16.vlgmr.msra.gmra.mrb[4].mxu0 %vm233_vm0, %v3392_v11  ;;  %3033 = vmatmul.mubr.msk.bf16.vlgmr.msra.gmra.mrb[4].mxu1 %vm233_vm0, %v3392_v11 }
  0x97   : > { %2983 = vmatpush3.bf16.msra.mxu0 %v3450_v19  ;;  %3037 = vmatpush3.bf16.msra.mxu1 %v3455_v20 }
  0x98   : > { %2984 = vmatprep.mubr.msk.bf16.mxu0 %vm233_vm0, %v3397_v12  ;;  %3038 = vmatprep.mubr.msk.bf16.mxu1 %vm233_vm0, %v3397_v12 }
  0x99   : > { %2988 = vmatprep.subr.bf16.mxu0 %v3455_v20  ;;  %3042 = vmatprep.subr.bf16.mxu1 %v3480_v23 }
  0xa2   : > { %2985 = vmatmul.mubr.msk.bf16.vlgmr.msra.gmra.mrb[4].mxu0 %vm233_vm0, %v3417_v14  ;;  %3039 = vmatmul.mubr.msk.bf16.vlgmr.msra.gmra.mrb[4].mxu1 %vm233_vm0, %v3417_v14 }
  0xa3   : > { %2989 = vmatpush3.bf16.msra.mxu0 %v3455_v20  ;;  %3043 = vmatpush3.bf16.msra.mxu1 %v3480_v23 }
  0xa4   : > { %2990 = vmatprep.mubr.msk.bf16.mxu0 %vm233_vm0, %v3422_v15  ;;  %3044 = vmatprep.mubr.msk.bf16.mxu1 %vm233_vm0, %v3422_v15 }
  0xa5   : > { %2994 = vmatprep.subr.bf16.mxu0 %v3480_v23  ;;  %3048 = vmatprep.subr.bf16.mxu1 %v3505_v26 }
  0xae   : > { %2991 = vmatmul.mubr.msk.bf16.vlgmr.msra.gmra.mrb[4].mxu0 %vm233_vm0, %v3442_v17  ;;  %3045 = vmatmul.mubr.msk.bf16.vlgmr.msra.gmra.mrb[4].mxu1 %vm233_vm0, %v3442_v17 }
  0xaf   : > { %2995 = vmatpush3.bf16.msra.mxu0 %v3480_v23  ;;  %3049 = vmatpush3.bf16.msra.mxu1 %v3505_v26 }
  0xb0   : > { %2996 = vmatprep.mubr.msk.bf16.mxu0 %vm233_vm0, %v3447_v18  ;;  %3050 = vmatprep.mubr.msk.bf16.mxu1 %vm233_vm0, %v3447_v18 }
  0xb1   : > { %3000 = vmatprep.subr.bf16.mxu0 %v3257_v35  ;;  %3054 = vmatprep.subr.bf16.mxu1 %v3258_v36 }
  0xba   : > { %2997 = vmatmul.mubr.msk.bf16.vlgmr.msra.gmra.mrb[4].mxu0 %vm233_vm0, %v3470_v21  ;;  %3051 = vmatmul.mubr.msk.bf16.vlgmr.msra.gmra.mrb[4].mxu1 %vm233_vm0, %v3470_v21 }
  0xbb   : > { %3001 = vmatpush3.bf16.msra.mxu0 %v3257_v35  ;;  %3055 = vmatpush3.bf16.msra.mxu1 %v3258_v36 }
  0xbc   : > { %3002 = vmatprep.mubr.msk.bf16.mxu0 %vm233_vm0, %v3475_v22  ;;  %3056 = vmatprep.mubr.msk.bf16.mxu1 %vm233_vm0, %v3475_v22 }
  0xbd   : > { %3006 = vmatprep.subr.bf16.mxu0 %v3258_v36  ;;  %3060 = vmatprep.subr.bf16.mxu1 %v3259_v37 }
  0xc6   : > { %3003 = vmatmul.mubr.msk.bf16.vlgmr.msra.gmra.mrb[4].mxu0 %vm233_vm0, %v3495_v24  ;;  %3057 = vmatmul.mubr.msk.bf16.vlgmr.msra.gmra.mrb[4].mxu1 %vm233_vm0, %v3495_v24 }
  0xc7   : > { %3007 = vmatpush3.bf16.msra.mxu0 %v3258_v36  ;;  %3061 = vmatpush3.bf16.msra.mxu1 %v3259_v37 }
  0xc8   : > { %3008 = vmatprep.mubr.msk.bf16.mxu0 %vm233_vm0, %v3500_v25  ;;  %3062 = vmatprep.mubr.msk.bf16.mxu1 %vm233_vm0, %v3500_v25 }
  0xc9   : > { %3012 = vmatprep.subr.bf16.mxu0 %v3259_v37  ;;  %3066 = vmatprep.subr.bf16.mxu1 %v3260_v38 }
  0xd2   : > { %3009 = vmatmul.mubr.msk.bf16.vlgmr.msra.gmra.mrb[4].mxu0 %vm233_vm0, %v3532_v32  ;;  %3063 = vmatmul.mubr.msk.bf16.vlgmr.msra.gmra.mrb[4].mxu1 %vm233_vm0, %v3532_v32 }
  0xd3   : > { %3013 = vmatpush3.bf16.msra.mxu0 %v3259_v37  ;;  %3067 = vmatpush3.bf16.msra.mxu1 %v3260_v38 }
  0xd4   : > { %3014 = vmatprep.mubr.msk.bf16.mxu0 %vm233_vm0, %v3537_v33  ;;  %3068 = vmatprep.mubr.msk.bf16.mxu1 %vm233_vm0, %v3537_v33 }
  0xde   : > { %3015 = vmatmul.mubr.msk.bf16.vlgmr.msra.gmra.mrb[4].mxu0 %vm233_vm0, %v3554_v34  ;;  %3069 = vmatmul.mubr.msk.bf16.vlgmr.msra.gmra.mrb[4].mxu1 %vm233_vm0, %v3554_v34 }
 0x149   : > { %v2908_v39 = vpop.f32.mrb[0].mxu0  ;;  %v2962_v40 = vpop.f32.mrb[0].mxu1 }
 0x14a   : > { %v922_v41 = vpop.f32.mrb[1].mxu0  ;;  %v1439_v42 = vmax.f32 %v2908_v39, %v2962_v40  ;;  %v1418_v43 = vpop.f32.mrb[1].mxu1 }
 0x14b   : > { %v2909_v44 = vpop.f32.mrb[2].mxu0  ;;  %v1437_v45 = vmax.f32 %v922_v41, %v1418_v43  ;;  %v2963_v46 = vpop.f32.mrb[2].mxu1 }
 0x14c   : > { %v925_v47 = vpop.f32.mrb[3].mxu0  ;;  %v1440_v48 = vmax.f32 %v2909_v44, %v2963_v46  ;;  %v1421_v49 = vpop.f32.mrb[3].mxu1 }
 0x14d   : > { %v1438_v50 = vmax.f32 %v925_v47, %v1421_v49 }
 0x1b1   : > { %v3016_v53 = vpop.f32.mrb[4].mxu0  ;;  %v3070_v55 = vpop.f32.mrb[4].mxu1 }
 0x1b2   : > { %v1939_v54 = vmax.f32 %v1439_v42, %v3016_v53  ;;  %v1918_v56 = vpop.f32.mrb[5].mxu0  ;;  %v2400_v58 = vpop.f32.mrb[5].mxu1 }
 0x1b3   : > { %v1937_v57 = vmax.f32 %v1437_v45, %v1918_v56  ;;  %v3017_v59 = vpop.f32.mrb[6].mxu0  ;;  %v3071_v62 = vpop.f32.mrb[6].mxu1 }
 0x1b4   : > { %v2421_v60 = vmax.f32 %v1939_v54, %v3070_v55  ;;  %v1940_v61 = vmax.f32 %v1440_v48, %v3017_v59  ;;  %v1921_v63 = vpop.f32.mrb[7].mxu0  ;;  %v2403_v2 = vpop.f32.mrb[7].mxu1 }
 0x1b5   : > { %v2419_v0 = vmax.f32 %v1937_v57, %v2400_v58  ;;  %v1938_v1 = vmax.f32 %v1438_v50, %v1921_v63 }
 0x1b6   : > { %v2449_v3 = vadd.f32 %v2440_v51, %v2421_v60  ;;  %v2422_v4 = vmax.f32 %v1940_v61, %v3071_v62 }
 0x1b7   : > { %v2447_v5 = vadd.f32 %v2430_v52, %v2419_v0  ;;  %v2420_v6 = vmax.f32 %v1938_v1, %v2403_v2 }
 0x1b8   : > { %v2453_v8 = vmax.f32 %v2449_v3, 0.0  ;;  %v2450_v9 = vadd.f32 %v2445_v7, %v2422_v4 }
 0x1b9   : > { %v2451_v11 = vmax.f32 %v2447_v5, 0.0  ;;  %v2448_v12 = vadd.f32 %v2435_v10, %v2420_v6 }
 0x1ba   : > { %v2746_v13 = vpack.c.bf16 %v2453_v8, %v2453_v8  ;;  %v2454_v14 = vmax.f32 %v2450_v9, 0.0 }
 0x1bb   : > { %v2744_v15 = vpack.c.bf16 %v2451_v11, %v2451_v11  ;;  %v2452_v16 = vmax.f32 %v2448_v12, 0.0 }
 0x1bc   : > { %2474 = vst.msk [vmem:[%s201_s22 + $0x8] sm:$0xf] %vm2471_vm1, %v2746_v13  ;;  %v2747_v17 = vpack.c.bf16 %v2454_v14, %v2454_v14 }
 0x1bd   : > { %2472 = vst.msk [vmem:[%s201_s22] sm:$0xf] %vm2471_vm1, %v2744_v15  ;;  %v2745_v18 = vpack.c.bf16 %v2452_v16, %v2452_v16 }
 0x1be   : > { %2475 = vst.msk [vmem:[%s201_s22 + $0xc] sm:$0xf] %vm2471_vm1, %v2747_v17 }
 0x1bf   : > { %2473 = vst.msk [vmem:[%s201_s22 + $0x4] sm:$0xf] %vm2471_vm1, %v2745_v18 }
 0x1c0 PF: > { %s13_s14 = sadd.s32 1, %s3283_s14   ;;  %s3675_s12 = smov %s3279_s13 }
 0x1c1   : > { %p10_p5 = scmp.ge.s32.totalorder %s13_s14, 4   ;;  %s3676_s13 = smov %s3678_s15 }
 0x1c3   :  { %12 = sbr.rel (!%p10_p5) target bundleno = 2 (0x2), region = 85 }

// kernel: brain_tumor_forward.5
= control target key start
LH: loop header
LB: loop body
LE: loop exit
PB: predicated region body
PF: predicated region fallthrough
CT: control target
= control target key end

     0   :  { %v292_v28 = vlaneseq  ;;  %v2142_v36 = vmov 1966171168   ;;  %s2632_s0 = inlined_call_operand.vmem [shape: bf16[2,2048], index: 0, kind: input, shape index: {}]   ;;  %s2633_s1 = inlined_call_operand.vmem [shape: bf16[2048,128], index: 1, kind: input, shape index: {}]   ;;  %s2634_s2 = inlined_call_operand.vmem [shape: f32[1,128], index: 2, kind: input, shape index: {}]   ;;  %s2635_s3 = inlined_call_operand.vmem [shape: bf16[128,4], index: 3, kind: input, shape index: {}]   ;;  %s2636_s4 = inlined_call_operand.vmem [shape: f32[1,4], index: 4, kind: input, shape index: {}]   ;;  %s2637_s5 = inlined_call_operand.hbm [shape: f32[2,4], index: 5, kind: output, shape index: {}]  }
   0x1   :  { %v1980_v0 = vld [vmem:[%s2633_s1 + $0x40] sm:$0xff]   ;;  %v1984_v4 = vld [vmem:[%s2633_s1 + $0x48] sm:$0xff]   ;;  %v1988_v8 = vld [vmem:[%s2633_s1 + $0x50] sm:$0xff]   ;;  %v290_v37 = vunpack.c.l.s4 %v2142_v36 }
   0x2   :  { %v1981_v1 = vld [vmem:[%s2633_s1 + $0xc0] sm:$0xff]   ;;  %1771 = vmatprep.subr.bf16.mxu0 %v1980_v0  ;;  %v1985_v5 = vld [vmem:[%s2633_s1 + $0xc8] sm:$0xff]   ;;  %v1989_v9 = vld [vmem:[%s2633_s1 + $0xd0] sm:$0xff]   ;;  %v293_v33 = vshrl.u32 %v292_v28, 7 }
   0x3   :  { %v1982_v2 = vld [vmem:[%s2633_s1] sm:$0xff]   ;;  %1793 = vmatprep.subr.bf16.mxu1 %v1981_v1  ;;  %v1986_v6 = vld [vmem:[%s2633_s1 + $0x8] sm:$0xff]   ;;  %v1990_v10 = vld [vmem:[%s2633_s1 + $0x10] sm:$0xff]   ;;  %v291_v40 = vunpack.c.0.s8 %v290_v37 }
   0x4   :  { %v1983_v3 = vld [vmem:[%s2633_s1 + $0x80] sm:$0xff]   ;;  %1772 = vmatpush3.bf16.msra.mxu0 %v1982_v2  ;;  %v1987_v7 = vld [vmem:[%s2633_s1 + $0x88] sm:$0xff]   ;;  %v1991_v11 = vld [vmem:[%s2633_s1 + $0x90] sm:$0xff]  }
   0x5   :  { %1794 = vmatpush3.bf16.msra.mxu1 %v1983_v3  ;;  %1773 = vmatprep.subr.bf16.mxu0 %v1984_v4  ;;  %v1992_v12 = vld [vmem:[%s2633_s1 + $0x58] sm:$0xff]   ;;  %v1996_v16 = vld [vmem:[%s2633_s1 + $0x60] sm:$0xff]   ;;  %v2000_v20 = vld [vmem:[%s2633_s1 + $0x68] sm:$0xff]   ;;  %v2281_v41 = vsub.s32 %v291_v40, %v293_v33 }
   0x6   :  { %1795 = vmatprep.subr.bf16.mxu1 %v1985_v5  ;;  %v1993_v13 = vld [vmem:[%s2633_s1 + $0xd8] sm:$0xff]   ;;  %v1997_v17 = vld [vmem:[%s2633_s1 + $0xe0] sm:$0xff]   ;;  %v2001_v21 = vld [vmem:[%s2633_s1 + $0xe8] sm:$0xff]  }
   0x7   :  { %v1994_v14 = vld [vmem:[%s2633_s1 + $0x18] sm:$0xff]   ;;  %v1998_v18 = vld [vmem:[%s2633_s1 + $0x20] sm:$0xff]   ;;  %v2002_v22 = vld [vmem:[%s2633_s1 + $0x28] sm:$0xff]  }
   0x8   :  { %1774 = vmatpush3.bf16.msra.mxu0 %v1986_v6  ;;  %v1995_v15 = vld [vmem:[%s2633_s1 + $0x98] sm:$0xff]   ;;  %v1999_v19 = vld [vmem:[%s2633_s1 + $0xa0] sm:$0xff]   ;;  %v2003_v23 = vld [vmem:[%s2633_s1 + $0xa8] sm:$0xff]  }
   0x9   :  { %1796 = vmatpush3.bf16.msra.mxu1 %v1987_v7  ;;  %1775 = vmatprep.subr.bf16.mxu0 %v1988_v8  ;;  %v2004_v24 = vld [vmem:[%s2633_s1 + $0x70] sm:$0xff]   ;;  %v2008_v29 = vld [vmem:[%s2633_s1 + $0x78] sm:$0xff]   ;;  %v28_v34 = vld [vmem:[%s2632_s0] sm:$0xff] }
   0xa   :  { %1797 = vmatprep.subr.bf16.mxu1 %v1989_v9  ;;  %v2005_v25 = vld [vmem:[%s2633_s1 + $0xf0] sm:$0xff]   ;;  %v2009_v30 = vld [vmem:[%s2633_s1 + $0xf8] sm:$0xff]   ;;  %v2013_v35 = vld [vmem:[%s2633_s1 + $0x140] sm:$0xff]   ;;  %v288_v39 = vcombine.high %v28_v34, %v28_v34  ;;  %v295_v42 = vrot.slane %v28_v34, %v2281_v41 }
   0xb   :  { %v2006_v26 = vld [vmem:[%s2633_s1 + $0x30] sm:$0xff]   ;;  %v2010_v31 = vld [vmem:[%s2633_s1 + $0x38] sm:$0xff]   ;;  %v2014_v38 = vld [vmem:[%s2633_s1 + $0x1c0] sm:$0xff]  }
   0xc   :  { %1776 = vmatpush3.bf16.msra.mxu0 %v1990_v10  ;;  %v2007_v27 = vld [vmem:[%s2633_s1 + $0xb0] sm:$0xff]   ;;  %v2011_v32 = vld [vmem:[%s2633_s1 + $0xb8] sm:$0xff]   ;;  %v2285_v43 = vrot.slane %v288_v39, %v2281_v41  ;;  %v303_v44 = vcombine.high %v295_v42, %v295_v42  ;;  %v311_v45 = vrot.slane %v295_v42, %v2281_v41  ;;  %v2015_v47 = vld [vmem:[%s2633_s1 + $0x100] sm:$0xff]  }
   0xd   :  { %1798 = vmatpush3.bf16.msra.mxu1 %v1991_v11  ;;  %1777 = vmatprep.subr.bf16.mxu0 %v1992_v12  ;;  %v2016_v49 = vld [vmem:[%s2633_s1 + $0x180] sm:$0xff]   ;;  %v2017_v52 = vld [vmem:[%s2633_s1 + $0x148] sm:$0xff]   ;;  %v2021_v58 = vld [vmem:[%s2633_s1 + $0x150] sm:$0xff]  }
   0xe   :  { %1799 = vmatprep.subr.bf16.mxu1 %v1993_v13  ;;  %v304_v46 = vcombine.high %v2285_v43, %v2285_v43  ;;  %v325_v48 = vrot.slane %v303_v44, %v2281_v41  ;;  %v333_v51 = vcombine.high %v311_v45, %v311_v45  ;;  %v2018_v54 = vld [vmem:[%s2633_s1 + $0x1c8] sm:$0xff]   ;;  %v2022_v59 = vld [vmem:[%s2633_s1 + $0x1d0] sm:$0xff]   ;;  %v2025_v62 = vld [vmem:[%s2633_s1 + $0x158] sm:$0xff]  }
   0xf   :  { %v2019_v55 = vld [vmem:[%s2633_s1 + $0x108] sm:$0xff]   ;;  %v2023_v60 = vld [vmem:[%s2633_s1 + $0x110] sm:$0xff]   ;;  %v2026_v63 = vld [vmem:[%s2633_s1 + $0x1d8] sm:$0xff]  }
  0x10   :  { %1778 = vmatpush3.bf16.msra.mxu0 %v1994_v14  ;;  %v332_v50 = vrot.slane %v304_v46, %v2281_v41  ;;  %1202 = vmatprep.mubr.bf16.mxu0 %v325_v48  ;;  %v335_v53 = vcombine.high %v325_v48, %v325_v48  ;;  %v2020_v57 = vld [vmem:[%s2633_s1 + $0x188] sm:$0xff]   ;;  %v2024_v61 = vld [vmem:[%s2633_s1 + $0x190] sm:$0xff]   ;;  %v2027_v0 = vld [vmem:[%s2633_s1 + $0x118] sm:$0xff]  }
  0x11   :  { %1800 = vmatpush3.bf16.msra.mxu1 %v1995_v15  ;;  %1779 = vmatprep.subr.bf16.mxu0 %v1996_v16  ;;  %v2028_v1 = vld [vmem:[%s2633_s1 + $0x198] sm:$0xff]   ;;  %v2029_v2 = vld [vmem:[%s2633_s1 + $0x160] sm:$0xff]   ;;  %v2033_v6 = vld [vmem:[%s2633_s1 + $0x168] sm:$0xff]  }
  0x12   :  { %1801 = vmatprep.subr.bf16.mxu1 %v1997_v17  ;;  %v336_v56 = vcombine.high %v332_v50, %v332_v50  ;;  %1242 = vmatprep.mubr.bf16.mxu1 %v335_v53  ;;  %v2030_v3 = vld [vmem:[%s2633_s1 + $0x1e0] sm:$0xff]   ;;  %v2034_v7 = vld [vmem:[%s2633_s1 + $0x1e8] sm:$0xff]   ;;  %v2037_v10 = vld [vmem:[%s2633_s1 + $0x170] sm:$0xff]  }
  0x13   :  { %v2031_v4 = vld [vmem:[%s2633_s1 + $0x120] sm:$0xff]   ;;  %v2035_v8 = vld [vmem:[%s2633_s1 + $0x128] sm:$0xff]   ;;  %v2038_v11 = vld [vmem:[%s2633_s1 + $0x1f0] sm:$0xff]  }
  0x14   :  { %1780 = vmatpush3.bf16.msra.mxu0 %v1998_v18  ;;  %v2032_v5 = vld [vmem:[%s2633_s1 + $0x1a0] sm:$0xff]   ;;  %v2036_v9 = vld [vmem:[%s2633_s1 + $0x1a8] sm:$0xff]   ;;  %v2039_v12 = vld [vmem:[%s2633_s1 + $0x130] sm:$0xff]   ;;  %v318_v18 = vrot.slane %v2285_v43, %v2281_v41 }
  0x15   :  { %1802 = vmatpush3.bf16.msra.mxu1 %v1999_v19  ;;  %1781 = vmatprep.subr.bf16.mxu0 %v2000_v20  ;;  %v2040_v13 = vld [vmem:[%s2633_s1 + $0x1b0] sm:$0xff]   ;;  %v2041_v14 = vld [vmem:[%s2633_s1 + $0x178] sm:$0xff]   ;;  %v2045_v19 = vld [vmem:[%s2633_s1 + $0x240] sm:$0xff]  }
  0x16   :  { %1803 = vmatprep.subr.bf16.mxu1 %v2001_v21  ;;  %v2042_v15 = vld [vmem:[%s2633_s1 + $0x1f8] sm:$0xff]   ;;  %v2046_v20 = vld [vmem:[%s2633_s1 + $0x2c0] sm:$0xff]   ;;  %v2053_v28 = vld [vmem:[%s2633_s1 + $0x250] sm:$0xff]  }
  0x17   :  { %v2043_v16 = vld [vmem:[%s2633_s1 + $0x138] sm:$0xff]   ;;  %v2047_v21 = vld [vmem:[%s2633_s1 + $0x200] sm:$0xff]   ;;  %v2065_v40 = vld [vmem:[%s2633_s1 + $0x268] sm:$0xff]  }
  0x18   :  { %1782 = vmatpush3.bf16.msra.mxu0 %v2002_v22  ;;  %v2044_v17 = vld [vmem:[%s2633_s1 + $0x1b8] sm:$0xff]   ;;  %v2048_v22 = vld [vmem:[%s2633_s1 + $0x280] sm:$0xff]   ;;  %v2066_v42 = vld [vmem:[%s2633_s1 + $0x2e8] sm:$0xff]  }
  0x19   :  { %1804 = vmatpush3.bf16.msra.mxu1 %v2003_v23  ;;  %1783 = vmatprep.subr.bf16.mxu0 %v2004_v24  ;;  %v334_v23 = vcombine.high %v318_v18, %v318_v18  ;;  %v2049_v24 = vld [vmem:[%s2633_s1 + $0x248] sm:$0xff]   ;;  %v2058_v33 = vld [vmem:[%s2633_s1 + $0x2d8] sm:$0xff]   ;;  %v2061_v36 = vld [vmem:[%s2633_s1 + $0x260] sm:$0xff]  }
  0x1a   :  { %1805 = vmatprep.subr.bf16.mxu1 %v2005_v25  ;;  %v2050_v25 = vld [vmem:[%s2633_s1 + $0x2c8] sm:$0xff]   ;;  %v2059_v34 = vld [vmem:[%s2633_s1 + $0x218] sm:$0xff]   ;;  %v2062_v37 = vld [vmem:[%s2633_s1 + $0x2e0] sm:$0xff]  }
  0x1b   :  { %v2064_v39 = vld [vmem:[%s2633_s1 + $0x2a0] sm:$0xff]   ;;  %v2067_v43 = vld [vmem:[%s2633_s1 + $0x228] sm:$0xff]  }
  0x1c   :  { %1784 = vmatpush3.bf16.msra.mxu0 %v2006_v26  ;;  %v2051_v26 = vld [vmem:[%s2633_s1 + $0x208] sm:$0xff]  }
  0x1d   :  { %1806 = vmatpush3.bf16.msra.mxu1 %v2007_v27  ;;  %1785 = vmatprep.subr.bf16.mxu0 %v2008_v29  ;;  %v2052_v27 = vld [vmem:[%s2633_s1 + $0x288] sm:$0xff]   ;;  %v2054_v29 = vld [vmem:[%s2633_s1 + $0x2d0] sm:$0xff]  }
  0x1e   :  { %1807 = vmatprep.subr.bf16.mxu1 %v2009_v30  ;;  %v2055_v30 = vld [vmem:[%s2633_s1 + $0x210] sm:$0xff]   ;;  %v2068_v44 = vld [vmem:[%s2633_s1 + $0x2a8] sm:$0xff]  }
  0x1f   :  { %v29_v46 = vld [vmem:[%s2632_s0 + $0x8] sm:$0xff] }
  0x20   :  { %1786 = vmatpush3.bf16.msra.mxu0 %v2010_v31  ;;  %v2056_v31 = vld [vmem:[%s2633_s1 + $0x290] sm:$0xff]   ;;  %v344_v48 = vrot.slane %v29_v46, %v2281_v41 }
  0x21   :  { %1808 = vmatpush3.bf16.msra.mxu1 %v2011_v32  ;;  %1815 = vmatprep.subr.bf16.mxu0 %v2013_v35  ;;  %v2057_v32 = vld [vmem:[%s2633_s1 + $0x258] sm:$0xff]  }
  0x22   :  { %1837 = vmatprep.subr.bf16.mxu1 %v2014_v38  ;;  %v2060_v35 = vld [vmem:[%s2633_s1 + $0x298] sm:$0xff]   ;;  %v2063_v38 = vld [vmem:[%s2633_s1 + $0x220] sm:$0xff]  }
  0x23   :  { %1203 = vmatmul.mubr.bf16.vlgmr.msra.gmra.mrb[0].mxu0 %v311_v45  ;;  %v2069_v45 = vld [vmem:[%s2633_s1 + $0x270] sm:$0xff]  }
  0x24   :  { %1816 = vmatpush3.bf16.msra.mxu0 %v2015_v47  ;;  %1243 = vmatmul.mubr.bf16.vlgmr.msra.gmra.mrb[0].mxu1 %v333_v51  ;;  %v2070_v47 = vld [vmem:[%s2633_s1 + $0x2f0] sm:$0xff]  }
  0x25   :  { %1817 = vmatprep.subr.bf16.mxu0 %v2017_v52  ;;  %1838 = vmatpush3.bf16.msra.mxu1 %v2016_v49  ;;  %v337_v49 = vcombine.high %v29_v46, %v29_v46  ;;  %v2072_v51 = vld [vmem:[%s2633_s1 + $0x2b0] sm:$0xff]   ;;  %v352_v52 = vcombine.high %v344_v48, %v344_v48 }
  0x26   :  { %1282 = vmatprep.mubr.bf16.mxu0 %v332_v50  ;;  %1839 = vmatprep.subr.bf16.mxu1 %v2018_v54  ;;  %v2071_v50 = vld [vmem:[%s2633_s1 + $0x230] sm:$0xff]   ;;  %v2073_v54 = vld [vmem:[%s2633_s1 + $0x278] sm:$0xff]  }
  0x27   :  { %1322 = vmatprep.mubr.bf16.mxu1 %v336_v56  ;;  %v2473_v53 = vrot.slane %v337_v49, %v2281_v41  ;;  %v374_v56 = vrot.slane %v352_v52, %v2281_v41 }
  0x28   :  { %1818 = vmatpush3.bf16.msra.mxu0 %v2019_v55  ;;  %v2074_v55 = vld [vmem:[%s2633_s1 + $0x2f8] sm:$0xff]  }
  0x29   :  { %1819 = vmatprep.subr.bf16.mxu0 %v2021_v58  ;;  %1840 = vmatpush3.bf16.msra.mxu1 %v2020_v57  ;;  %v353_v57 = vcombine.high %v2473_v53, %v2473_v53  ;;  %v2075_v58 = vld [vmem:[%s2633_s1 + $0x238] sm:$0xff]  }
  0x2a   :  { %1841 = vmatprep.subr.bf16.mxu1 %v2022_v59  ;;  %v2076_v59 = vld [vmem:[%s2633_s1 + $0x2b8] sm:$0xff]  }
  0x2c   :  { %1820 = vmatpush3.bf16.msra.mxu0 %v2023_v60  ;;  %v384_v60 = vcombine.high %v374_v56, %v374_v56 }
  0x2d   :  { %1821 = vmatprep.subr.bf16.mxu0 %v2025_v62  ;;  %1842 = vmatpush3.bf16.msra.mxu1 %v2024_v61  ;;  %v360_v61 = vrot.slane %v344_v48, %v2281_v41  ;;  %v2077_v62 = vld [vmem:[%s2633_s1 + $0x340] sm:$0xff]  }
  0x2e   :  { %1843 = vmatprep.subr.bf16.mxu1 %v2026_v63  ;;  %v2078_v63 = vld [vmem:[%s2633_s1 + $0x3c0] sm:$0xff]  }
  0x30   :  { %1822 = vmatpush3.bf16.msra.mxu0 %v2027_v0  ;;  %v381_v0 = vrot.slane %v353_v57, %v2281_v41 }
  0x31   :  { %1823 = vmatprep.subr.bf16.mxu0 %v2029_v2  ;;  %1844 = vmatpush3.bf16.msra.mxu1 %v2028_v1  ;;  %v2079_v1 = vld [vmem:[%s2633_s1 + $0x300] sm:$0xff]  }
  0x32   :  { %1845 = vmatprep.subr.bf16.mxu1 %v2030_v3  ;;  %v2080_v2 = vld [vmem:[%s2633_s1 + $0x380] sm:$0xff]   ;;  %v382_v3 = vcombine.high %v360_v61, %v360_v61 }
  0x34   :  { %1824 = vmatpush3.bf16.msra.mxu0 %v2031_v4  ;;  %v2081_v4 = vld [vmem:[%s2633_s1 + $0x348] sm:$0xff]  }
  0x35   :  { %1825 = vmatprep.subr.bf16.mxu0 %v2033_v6  ;;  %1846 = vmatpush3.bf16.msra.mxu1 %v2032_v5  ;;  %v2082_v5 = vld [vmem:[%s2633_s1 + $0x3c8] sm:$0xff]   ;;  %v385_v6 = vcombine.high %v381_v0, %v381_v0 }
  0x36   :  { %1847 = vmatprep.subr.bf16.mxu1 %v2034_v7  ;;  %v2083_v7 = vld [vmem:[%s2633_s1 + $0x308] sm:$0xff]  }
  0x38   :  { %1826 = vmatpush3.bf16.msra.mxu0 %v2035_v8  ;;  %v2084_v8 = vld [vmem:[%s2633_s1 + $0x388] sm:$0xff]  }
  0x39   :  { %1827 = vmatprep.subr.bf16.mxu0 %v2037_v10  ;;  %1848 = vmatpush3.bf16.msra.mxu1 %v2036_v9  ;;  %v2085_v9 = vld [vmem:[%s2633_s1 + $0x350] sm:$0xff]  }
  0x3a   :  { %1849 = vmatprep.subr.bf16.mxu1 %v2038_v11  ;;  %v2086_v10 = vld [vmem:[%s2633_s1 + $0x3d0] sm:$0xff]  }
  0x3b   :  { %v2087_v11 = vld [vmem:[%s2633_s1 + $0x310] sm:$0xff]  }
  0x3c   :  { %1828 = vmatpush3.bf16.msra.mxu0 %v2039_v12  ;;  %v2088_v12 = vld [vmem:[%s2633_s1 + $0x390] sm:$0xff]  }
  0x3d   :  { %1829 = vmatprep.subr.bf16.mxu0 %v2041_v14  ;;  %1850 = vmatpush3.bf16.msra.mxu1 %v2040_v13  ;;  %v2089_v13 = vld [vmem:[%s2633_s1 + $0x358] sm:$0xff]  }
  0x3e   :  { %1851 = vmatprep.subr.bf16.mxu1 %v2042_v15  ;;  %v2090_v14 = vld [vmem:[%s2633_s1 + $0x3d8] sm:$0xff]  }
  0x3f   :  { %v2091_v15 = vld [vmem:[%s2633_s1 + $0x318] sm:$0xff]  }
  0x40   :  { %1830 = vmatpush3.bf16.msra.mxu0 %v2043_v16  ;;  %v2092_v16 = vld [vmem:[%s2633_s1 + $0x398] sm:$0xff]  }
  0x41   :  { %1859 = vmatprep.subr.bf16.mxu0 %v2045_v19  ;;  %1852 = vmatpush3.bf16.msra.mxu1 %v2044_v17  ;;  %v2093_v17 = vld [vmem:[%s2633_s1 + $0x360] sm:$0xff]  }
  0x42   :  { %1881 = vmatprep.subr.bf16.mxu1 %v2046_v20  ;;  %v2095_v19 = vld [vmem:[%s2633_s1 + $0x320] sm:$0xff]  }
  0x43   :  { %1283 = vmatmul.mubr.bf16.vlgmr.msra.gmra.mrb[4].mxu0 %v318_v18  ;;  %v2094_v18 = vld [vmem:[%s2633_s1 + $0x3e0] sm:$0xff]  }
  0x44   :  { %1860 = vmatpush3.bf16.msra.mxu0 %v2047_v21  ;;  %1323 = vmatmul.mubr.bf16.vlgmr.msra.gmra.mrb[4].mxu1 %v334_v23  ;;  %v2096_v20 = vld [vmem:[%s2633_s1 + $0x3a0] sm:$0xff]   ;;  %v2097_v21 = vld [vmem:[%s2633_s1 + $0x368] sm:$0xff]  }
  0x45   :  { %1861 = vmatprep.subr.bf16.mxu0 %v2049_v24  ;;  %1882 = vmatpush3.bf16.msra.mxu1 %v2048_v22  ;;  %v2098_v22 = vld [vmem:[%s2633_s1 + $0x3e8] sm:$0xff]  }
  0x46   :  { %1883 = vmatprep.subr.bf16.mxu1 %v2050_v25  ;;  %1362 = vmatprep.mubr.bf16.mxu0 %v374_v56  ;;  %v2099_v23 = vld [vmem:[%s2633_s1 + $0x328] sm:$0xff]   ;;  %v2101_v25 = vld [vmem:[%s2633_s1 + $0x370] sm:$0xff]  }
  0x47   :  { %1402 = vmatprep.mubr.bf16.mxu1 %v384_v60  ;;  %v2100_v24 = vld [vmem:[%s2633_s1 + $0x3a8] sm:$0xff]  }
  0x48   :  { %1862 = vmatpush3.bf16.msra.mxu0 %v2051_v26  ;;  %v2102_v26 = vld [vmem:[%s2633_s1 + $0x3f0] sm:$0xff]  }
  0x49   :  { %1863 = vmatprep.subr.bf16.mxu0 %v2053_v28  ;;  %1884 = vmatpush3.bf16.msra.mxu1 %v2052_v27  ;;  %v2103_v27 = vld [vmem:[%s2633_s1 + $0x330] sm:$0xff]   ;;  %v2105_v28 = vld [vmem:[%s2633_s1 + $0x378] sm:$0xff]  }
  0x4a   :  { %1885 = vmatprep.subr.bf16.mxu1 %v2054_v29  ;;  %v2104_v29 = vld [vmem:[%s2633_s1 + $0x3b0] sm:$0xff]  }
  0x4c   :  { %1864 = vmatpush3.bf16.msra.mxu0 %v2055_v30  ;;  %v2106_v30 = vld [vmem:[%s2633_s1 + $0x3f8] sm:$0xff]  }
  0x4d   :  { %1865 = vmatprep.subr.bf16.mxu0 %v2057_v32  ;;  %1886 = vmatpush3.bf16.msra.mxu1 %v2056_v31 }
  0x4e   :  { %1887 = vmatprep.subr.bf16.mxu1 %v2058_v33 }
  0x50   :  { %1866 = vmatpush3.bf16.msra.mxu0 %v2059_v34 }
  0x51   :  { %1867 = vmatprep.subr.bf16.mxu0 %v2061_v36  ;;  %1888 = vmatpush3.bf16.msra.mxu1 %v2060_v35 }
  0x52   :  { %1889 = vmatprep.subr.bf16.mxu1 %v2062_v37 }
  0x54   :  { %1868 = vmatpush3.bf16.msra.mxu0 %v2063_v38 }
  0x55   :  { %1869 = vmatprep.subr.bf16.mxu0 %v2065_v40  ;;  %1890 = vmatpush3.bf16.msra.mxu1 %v2064_v39 }
  0x56   :  { %1891 = vmatprep.subr.bf16.mxu1 %v2066_v42 }
  0x58   :  { %1870 = vmatpush3.bf16.msra.mxu0 %v2067_v43 }
  0x59   :  { %1871 = vmatprep.subr.bf16.mxu0 %v2069_v45  ;;  %1892 = vmatpush3.bf16.msra.mxu1 %v2068_v44 }
  0x5a   :  { %1893 = vmatprep.subr.bf16.mxu1 %v2070_v47 }
  0x5c   :  { %1872 = vmatpush3.bf16.msra.mxu0 %v2071_v50 }
  0x5d   :  { %1873 = vmatprep.subr.bf16.mxu0 %v2073_v54  ;;  %1894 = vmatpush3.bf16.msra.mxu1 %v2072_v51 }
  0x5e   :  { %1895 = vmatprep.subr.bf16.mxu1 %v2074_v55 }
  0x60   :  { %1874 = vmatpush3.bf16.msra.mxu0 %v2075_v58 }
  0x61   :  { %1903 = vmatprep.subr.bf16.mxu0 %v2077_v62  ;;  %1896 = vmatpush3.bf16.msra.mxu1 %v2076_v59 }
  0x62   :  { %1925 = vmatprep.subr.bf16.mxu1 %v2078_v63 }
  0x63   :  { %1363 = vmatmul.mubr.bf16.vlgmr.msra.gmra.mrb[8].mxu0 %v360_v61 }
  0x64   :  { %1904 = vmatpush3.bf16.msra.mxu0 %v2079_v1  ;;  %1442 = vmatprep.mubr.bf16.mxu0 %v381_v0 }
  0x65   :  { %1403 = vmatmul.mubr.bf16.vlgmr.msra.gmra.mrb[8].mxu1 %v382_v3  ;;  %1905 = vmatprep.subr.bf16.mxu0 %v2081_v4 }
  0x66   :  { %1926 = vmatpush3.bf16.msra.mxu1 %v2080_v2  ;;  %1482 = vmatprep.mubr.bf16.mxu1 %v385_v6 }
  0x67   :  { %1927 = vmatprep.subr.bf16.mxu1 %v2082_v5 }
  0x68   :  { %1906 = vmatpush3.bf16.msra.mxu0 %v2083_v7 }
  0x69   :  { %1907 = vmatprep.subr.bf16.mxu0 %v2085_v9 }
  0x6a   :  { %1928 = vmatpush3.bf16.msra.mxu1 %v2084_v8 }
  0x6b   :  { %1929 = vmatprep.subr.bf16.mxu1 %v2086_v10 }
  0x6c   :  { %1908 = vmatpush3.bf16.msra.mxu0 %v2087_v11 }
  0x6d   :  { %1909 = vmatprep.subr.bf16.mxu0 %v2089_v13 }
  0x6e   :  { %1930 = vmatpush3.bf16.msra.mxu1 %v2088_v12 }
  0x6f   :  { %1931 = vmatprep.subr.bf16.mxu1 %v2090_v14 }
  0x70   :  { %1910 = vmatpush3.bf16.msra.mxu0 %v2091_v15 }
  0x71   :  { %1911 = vmatprep.subr.bf16.mxu0 %v2093_v17 }
  0x72   :  { %1932 = vmatpush3.bf16.msra.mxu1 %v2092_v16 }
  0x73   :  { %1933 = vmatprep.subr.bf16.mxu1 %v2094_v18 }
  0x74   :  { %1912 = vmatpush3.bf16.msra.mxu0 %v2095_v19 }
  0x75   :  { %1913 = vmatprep.subr.bf16.mxu0 %v2097_v21 }
  0x76   :  { %1934 = vmatpush3.bf16.msra.mxu1 %v2096_v20 }
  0x77   :  { %1935 = vmatprep.subr.bf16.mxu1 %v2098_v22 }
  0x78   :  { %1914 = vmatpush3.bf16.msra.mxu0 %v2099_v23 }
  0x79   :  { %1915 = vmatprep.subr.bf16.mxu0 %v2101_v25 }
  0x7a   :  { %1936 = vmatpush3.bf16.msra.mxu1 %v2100_v24 }
  0x7b   :  { %1937 = vmatprep.subr.bf16.mxu1 %v2102_v26 }
  0x7c   :  { %10 = vsyncpa [#allocation4], 0  ;;  %1916 = vmatpush3.bf16.msra.mxu0 %v2103_v27  ;;  %v2107_v31 = vld [vmem:[%s2633_s1 + $0x338] sm:$0xff]   ;;  %v367_v32 = vrot.slane %v2473_v53, %v2281_v41  ;;  %v2110_v35 = vld [vmem:[%s2635_s3] sm:$0xff]   ;;  %v2143_v36 = vmov 0.0   ;;  %vm2144_vm0 = vmmov 0  }
  0x7d   :  { %1917 = vmatprep.subr.bf16.mxu0 %v2105_v28  ;;  %v2108_v33 = vld [vmem:[%s2633_s1 + $0x3b8] sm:$0xff]   ;;  %26 = vst [vmem:[#allocation2] sm:$0x3] %v2143_v36  ;;  %v2111_v41 = vld [vmem:[%s2635_s3 + $0x8] sm:$0xff]   ;;  %v2112_v37 = vld [vmem:[%s2635_s3 + $0x10] sm:$0xff]   ;;  %s2145_s17 = smov [#allocation3]  }
  0x7e   :  { %1938 = vmatpush3.bf16.msra.mxu1 %v2104_v29  ;;  %v383_v34 = vcombine.high %v367_v32, %v367_v32  ;;  %v2113_v38 = vld [vmem:[%s2635_s3 + $0x18] sm:$0xff]   ;;  %v2114_v39 = vld [vmem:[%s2635_s3 + $0x20] sm:$0xff]   ;;  %v2115_v40 = vld [vmem:[%s2635_s3 + $0x28] sm:$0xff]   ;;  %s1625_s18 = sshll.u32 %s2145_s17, 4  ;;  %vm1617_vm1 = vcmask 25600   ;;  %s1626_s18 = int_to_ptr.vmem [resolvable:$true] %s1625_s18 }
  0x7f   :  { %1939 = vmatprep.subr.bf16.mxu1 %v2106_v30  ;;  %v2116_v42 = vld [vmem:[%s2635_s3 + $0x30] sm:$0xff]   ;;  %v2117_v43 = vld [vmem:[%s2635_s3 + $0x38] sm:$0xff]   ;;  %v1761_v29 = vld [vmem:[%s2634_s2] ss:$0 sm:$0xff]  ;;  %s2118_s2 = scalar_lea.vmem %s1626_s18, 32  ;;  %p2123_p1 = scmp.lt.s32.totalorder %s1626_s18, %s1626_s18 }
  0x80   :  { %1918 = vmatpush3.bf16.msra.mxu0 %v2107_v31  ;;  %p2119_p0 = scmp.ne.s32.totalorder %s1626_s18, %s2118_s2  ;;  %p2124_p2 = scmp.lt.s32.totalorder %s2118_s2, %s2118_s2 }
  0x81   :  { %1956 = vmatprep.subr.bf16.mxu0 %v2143_v36 }
  0x82   :  { %1940 = vmatpush3.bf16.msra.mxu1 %v2108_v33  ;;  %p2125_p3 = por %p2124_p2, %p2123_p1 }
  0x83   :  { %1443 = vmatmul.mubr.bf16.vlgmr.msra.gmra.mrb[12].mxu0 %v367_v32 }
  0x84   :  { %1957 = vmatpush3.bf16.msra.mxu0 %v2110_v35  ;;  %1972 = vmatprep.mubr.msk.bf16.mxu0 %vm2144_vm0, %v2143_v36  ;;  %v27_v25 = vld [vmem:[#allocation2] sm:$0x3]  ;;  %p2126_p4 = pnand %p2125_p3, %p2119_p0 }
  0x85   :  { %1483 = vmatmul.mubr.bf16.vlgmr.msra.gmra.mrb[12].mxu1 %v383_v34  ;;  %1958 = vmatprep.subr.bf16.mxu0 %v2143_v36  ;;  %v1762_v34 = vld [vmem:[%s2636_s4] ss:$0 sm:$0xff] }
  0x88   :  { %1959 = vmatpush3.bf16.msra.mxu0 %v2111_v41 }
  0x89   :  { %1960 = vmatprep.subr.bf16.mxu0 %v2143_v36 }
  0x8c   :  { %1961 = vmatpush3.bf16.msra.mxu0 %v2112_v37 }
  0x8d   :  { %1962 = vmatprep.subr.bf16.mxu0 %v2143_v36 }
  0x90   :  { %1963 = vmatpush3.bf16.msra.mxu0 %v2113_v38 }
  0x91   :  { %1964 = vmatprep.subr.bf16.mxu0 %v2143_v36 }
  0x94   :  { %1965 = vmatpush3.bf16.msra.mxu0 %v2114_v39 }
  0x95   :  { %1966 = vmatprep.subr.bf16.mxu0 %v2143_v36 }
  0x98   :  { %1967 = vmatpush3.bf16.msra.mxu0 %v2115_v40 }
  0x99   :  { %1968 = vmatprep.subr.bf16.mxu0 %v2143_v36 }
  0x9c   :  { %1969 = vmatpush3.bf16.msra.mxu0 %v2116_v42 }
  0x9d   :  { %1970 = vmatprep.subr.bf16.mxu0 %v2143_v36 }
  0xa0   :  { %1971 = vmatpush3.bf16.msra.mxu0 %v2117_v43 }
  0xf6   :  { %v1787_v44 = vpop.f32.mrb[0].mxu0 }
  0xf7   :  { %v1788_v45 = vpop.f32.mrb[1].mxu0  ;;  %v1809_v46 = vpop.f32.mrb[0].mxu1 }
  0xf8   :  { %v1789_v47 = vadd.f32 %v1788_v45, %v1787_v44  ;;  %v1790_v48 = vpop.f32.mrb[2].mxu0  ;;  %v1810_v49 = vpop.f32.mrb[1].mxu1 }
  0xf9   :  { %v1791_v50 = vpop.f32.mrb[3].mxu0  ;;  %v1811_v51 = vadd.f32 %v1810_v49, %v1809_v46  ;;  %v1812_v52 = vpop.f32.mrb[2].mxu1 }
  0xfa   :  { %v1813_v53 = vpop.f32.mrb[3].mxu1 }
  0xfb   :  { %v1245_v54 = vadd.f32 %v1811_v51, %v1789_v47 }
 0x116   :  { %v1831_v55 = vpop.f32.mrb[4].mxu0 }
 0x117   :  { %v1832_v56 = vpop.f32.mrb[5].mxu0  ;;  %v1853_v57 = vpop.f32.mrb[4].mxu1 }
 0x118   :  { %v1833_v58 = vadd.f32 %v1832_v56, %v1831_v55  ;;  %v1834_v59 = vpop.f32.mrb[6].mxu0  ;;  %v1854_v60 = vpop.f32.mrb[5].mxu1 }
 0x119   :  { %v1835_v61 = vpop.f32.mrb[7].mxu0  ;;  %v1855_v63 = vadd.f32 %v1854_v60, %v1853_v57  ;;  %v1856_v0 = vpop.f32.mrb[6].mxu1 }
 0x11a   :  { %v1285_v62 = vadd.f32 %v1833_v58, %v1245_v54  ;;  %v1857_v1 = vpop.f32.mrb[7].mxu1 }
 0x11c   :  { %v1325_v2 = vadd.f32 %v1855_v63, %v1285_v62 }
 0x136   :  { %v1875_v3 = vpop.f32.mrb[8].mxu0 }
 0x137   :  { %v1876_v4 = vpop.f32.mrb[9].mxu0 }
 0x138   :  { %v1897_v5 = vpop.f32.mrb[8].mxu1  ;;  %v1877_v6 = vadd.f32 %v1876_v4, %v1875_v3  ;;  %v1878_v7 = vpop.f32.mrb[10].mxu0 }
 0x139   :  { %v1898_v8 = vpop.f32.mrb[9].mxu1  ;;  %v1879_v9 = vpop.f32.mrb[11].mxu0 }
 0x13a   :  { %v1365_v10 = vadd.f32 %v1877_v6, %v1325_v2  ;;  %v1899_v11 = vadd.f32 %v1898_v8, %v1897_v5  ;;  %v1900_v12 = vpop.f32.mrb[10].mxu1 }
 0x13b   :  { %v1901_v13 = vpop.f32.mrb[11].mxu1 }
 0x13c   :  { %v1405_v14 = vadd.f32 %v1899_v11, %v1365_v10 }
 0x156   :  { %v1919_v15 = vpop.f32.mrb[12].mxu0 }
 0x157   :  { %v1920_v16 = vpop.f32.mrb[13].mxu0 }
 0x158   :  { %v1941_v17 = vpop.f32.mrb[12].mxu1  ;;  %v1921_v18 = vadd.f32 %v1920_v16, %v1919_v15  ;;  %v1922_v19 = vpop.f32.mrb[14].mxu0 }
 0x159   :  { %v1942_v20 = vpop.f32.mrb[13].mxu1  ;;  %v1923_v21 = vpop.f32.mrb[15].mxu0 }
 0x15a   :  { %v1445_v22 = vadd.f32 %v1921_v18, %v1405_v14  ;;  %v1943_v23 = vadd.f32 %v1942_v20, %v1941_v17  ;;  %v1944_v24 = vpop.f32.mrb[14].mxu1 }
 0x15b   :  { %v1945_v26 = vpop.f32.mrb[15].mxu1 }
 0x15c   :  { %v1485_v27 = vadd.f32 %v1943_v23, %v1445_v22 }
 0x15e   :  { %v1490_v28 = vadd.f32 %v1485_v27, %v27_v25 }
 0x160   :  { %1491 = vst [vmem:[#allocation2] sm:$0x3] %v1490_v28 }
 0x167   :  { %v1495_v30 = vld [vmem:[#allocation2] sm:$0x3] }
 0x168   :  { %v1503_v31 = vadd.f32 %v1761_v29, %v1495_v30 }
 0x16a   :  { %v1504_v32 = vmax.f32 %v1503_v31, 0.0 }
 0x16c   :  { %v1505_v33 = vpack.c.bf16 %v1504_v32, %v1504_v32 }
 0x16e   :  { %1973 = vmatmul.mubr.bf16.vlgmr.msra.gmra.mrb[16].mxu0 %v1505_v33 }
 0x241   :  { %v1611_v35 = vpop.f32.mrb[16].mxu0 }
 0x242   :  { %v1612_v36 = vadd.f32 %v1762_v34, %v1611_v35  ;;  %v1974_v41 = vpop.f32.mrb[17].mxu0 }
 0x243   :  { %v1614_v37 = vpop.f32.mrb[18].mxu0 }
 0x244   :  { %v1975_v38 = vpop.f32.mrb[19].mxu0  ;;  %1618 = vst.msk [vmem:[#allocation3] sm:$0x3] %vm1617_vm1, %v1612_v36 }
 0x245   :  { %2129 = shalt.err (!%p2126_p4)
}
 0x246   :  { %s2130_s4 = scalar_lea.hbm %s2637_s5, 32 }
 0x247   :  { %p2131_p5 = scmp.ne.s32.totalorder %s2637_s5, %s2130_s4  ;;  %p2134_p6 = scmp.lt.u32.totalorder %s2130_s4, %s2637_s5 }
 0x249   :  { %p2136_p7 = pnand %p2134_p6, %p2131_p5 }
 0x24b   :  { %2139 = shalt.err (!%p2136_p7)
}
 0x24c   :  { %1628 = dma.vmem_to_hbm [thread:$0]  %s1626_s18, 32, %s2637_s5, [#allocation4]  }
 0x24d   :  { %2140 = dma.done.wait [#allocation4], 32  }
 0x24e   :  { %2141 = vsyncadd [#allocation4], 4294967264 }
 0x24f   :  { %1632 = vsyncpa [#allocation4], 1 }

</bundles_post_ra>
